<compile_context>
chip_gen: v6e
topology: v6e:2x2x1
jax: 0.10.0
libtpu: 0.0.40
codegen_flags: <defaults>
</compile_context>

<pallas_src>
import math
import jax
import jax.numpy as jnp
from jax.experimental import pallas as pl
from jax.experimental.pallas import tpu as pltpu

# ---------------- configuration (small synthetic sizes) ----------------
B = 2              # batch
IMG = 32           # args.img_size
PATCH = 16         # config.patches['size'][0]  -> self.scale
GRID = IMG // PATCH            # self.h
NTOK = GRID * GRID + 1         # tokens = patches + [CLS]
HIDDEN = 32
HEADS = 4
HEAD_DIM = HIDDEN // HEADS
MLP = 64
LAYERS = 2
NUM_CLASSES = 10
PD = 3 * PATCH * PATCH         # flattened patch dim
H3 = 3 * HIDDEN                # fused QKV output dim


# ---------------- fused ViT + rollout Pallas kernel ----------------
def _fused_vit_kernel(xp_ref, init_ref, pw_ref,
                      ln1g_ref, ln1b_ref, wqkv_ref, bqkv_ref, wo_ref, bo_ref,
                      ln2g_ref, ln2b_ref, w1_ref, b1_ref, w2_ref, b2_ref,
                      lnfg_ref, lnfb_ref, hw_ref, hb_ref,
                      logits_ref, probs_ref, roll_ref,
                      qkv_s, ctx_s):
    """One batch element per grid step.

    xp_ref   : (1, NTOK, PD)   patch pixels (row 0 is zeros -> CLS slot)
    init_ref : (NTOK, HIDDEN)  row0 = cls+pos0, rows 1.. = pos + patch_bias
    weights  : whole arrays, layer-stacked, resident in VMEM across the grid
    outputs  : logits (1,1,C), per-head probs (1, L*H, N, N), rollout (1, N, N)
    """
    def ln(x, g, b, eps=1e-6):
        mu = jnp.mean(x, axis=-1, keepdims=True)
        var = jnp.mean((x - mu) ** 2, axis=-1, keepdims=True)
        return (x - mu) * jax.lax.rsqrt(var + eps) * g + b

    # patch embedding + [CLS] + positional embedding (bias folded into init_ref)
    tok = jnp.dot(xp_ref[0], pw_ref[...],
                  preferred_element_type=jnp.float32) + init_ref[...]   # (NTOK, HIDDEN)

    row = jax.lax.broadcasted_iota(jnp.int32, (NTOK, NTOK), 0)
    col = jax.lax.broadcasted_iota(jnp.int32, (NTOK, NTOK), 1)
    eye = (row == col).astype(jnp.float32)

    scale = 1.0 / math.sqrt(HEAD_DIM)
    joint = eye

    for l in range(LAYERS):
        # ---- attention block ----
        h1 = ln(tok, ln1g_ref[l], ln1b_ref[l])
        qkv_s[...] = jnp.dot(h1, wqkv_ref[l],
                             preferred_element_type=jnp.float32) + bqkv_ref[l]  # (N, 3H)

        psum = jnp.zeros((NTOK, NTOK), jnp.float32)
        for hh in range(HEADS):                      # static unroll, no launch overhead
            o = hh * HEAD_DIM
            qh = qkv_s[:, o:o + HEAD_DIM]                                # (N, Dh)
            kh = qkv_s[:, HIDDEN + o:HIDDEN + o + HEAD_DIM]
            vh = qkv_s[:, 2 * HIDDEN + o:2 * HIDDEN + o + HEAD_DIM]
            s = jax.lax.dot_general(qh, kh, (((1,), (1,)), ((), ())),
                                    preferred_element_type=jnp.float32) * scale
            s = s - jnp.max(s, axis=-1, keepdims=True)
            e = jnp.exp(s)
            p = e / jnp.sum(e, axis=-1, keepdims=True)                   # (N, N)
            probs_ref[0, l * HEADS + hh] = p
            psum = psum + p
            ctx_s[:, o:o + HEAD_DIM] = jnp.dot(p, vh,
                                               preferred_element_type=jnp.float32)

        out = jnp.dot(ctx_s[...], wo_ref[l],
                      preferred_element_type=jnp.float32) + bo_ref[l]
        tok = tok + out

        # ---- MLP block ----
        h2 = ln(tok, ln2g_ref[l], ln2b_ref[l])
        m = jax.nn.gelu(jnp.dot(h2, w1_ref[l],
                                preferred_element_type=jnp.float32) + b1_ref[l])
        m = jnp.dot(m, w2_ref[l], preferred_element_type=jnp.float32) + b2_ref[l]
        tok = tok + m

        # ---- attention rollout (get_attention_flow_maps) ----
        aug = psum * (1.0 / HEADS) + eye
        aug = aug / jnp.sum(aug, axis=-1, keepdims=True)
        joint = aug if l == 0 else jnp.dot(aug, joint,
                                           preferred_element_type=jnp.float32)

    tokf = ln(tok, lnfg_ref[...], lnfb_ref[...])
    cls = tokf[0:1, :]                                                    # (1, HIDDEN)
    logits_ref[0] = jnp.dot(cls, hw_ref[...],
                            preferred_element_type=jnp.float32) + hb_ref[...]
    roll_ref[0] = joint


def vit_forward_fused(params, x):
    """Whole backbone in one pallas_call.

    x: (B, 3, IMG, IMG) float32 -> (logits (B,C), probs (B, L*H, N, N), rollout (B,N,N))
    """
    b = x.shape[0]
    # patchify (conv stride=patch == per-patch flatten + matmul)
    xp = x.reshape(b, 3, GRID, PATCH, GRID, PATCH)
    xp = jnp.transpose(xp, (0, 2, 4, 1, 3, 5)).reshape(b, GRID * GRID, PD)
    # prepend a zero row so the token axis already includes the CLS slot
    xp = jnp.concatenate([jnp.zeros((b, 1, PD), jnp.float32), xp], axis=1)  # (B, NTOK, PD)

    def whole(shp):
        return pl.BlockSpec(shp, lambda i, _n=len(shp): (0,) * _n)

    in_specs = [
        pl.BlockSpec((1, NTOK, PD), lambda i: (i, 0, 0)),        # xp (per batch element)
        whole((NTOK, HIDDEN)),                                   # init_base
        whole((PD, HIDDEN)),                                     # patch_w
        whole((LAYERS, 1, HIDDEN)), whole((LAYERS, 1, HIDDEN)),  # ln1 g/b
        whole((LAYERS, HIDDEN, H3)), whole((LAYERS, 1, H3)),     # wqkv, bqkv
        whole((LAYERS, HIDDEN, HIDDEN)), whole((LAYERS, 1, HIDDEN)),  # wo, bo
        whole((LAYERS, 1, HIDDEN)), whole((LAYERS, 1, HIDDEN)),  # ln2 g/b
        whole((LAYERS, HIDDEN, MLP)), whole((LAYERS, 1, MLP)),   # w1, b1
        whole((LAYERS, MLP, HIDDEN)), whole((LAYERS, 1, HIDDEN)),  # w2, b2
        whole((1, HIDDEN)), whole((1, HIDDEN)),                  # lnf g/b
        whole((HIDDEN, NUM_CLASSES)), whole((1, NUM_CLASSES)),   # head w/b
    ]
    out_specs = (
        pl.BlockSpec((1, 1, NUM_CLASSES), lambda i: (i, 0, 0)),              # logits
        pl.BlockSpec((1, LAYERS * HEADS, NTOK, NTOK), lambda i: (i, 0, 0, 0)),  # probs
        pl.BlockSpec((1, NTOK, NTOK), lambda i: (i, 0, 0)),                  # rollout
    )
    out_shape = (
        jax.ShapeDtypeStruct((b, 1, NUM_CLASSES), jnp.float32),
        jax.ShapeDtypeStruct((b, LAYERS * HEADS, NTOK, NTOK), jnp.float32),
        jax.ShapeDtypeStruct((b, NTOK, NTOK), jnp.float32),
    )

    logits, probs, rollout = pl.pallas_call(
        _fused_vit_kernel,
        out_shape=out_shape,
        grid=(b,),
        in_specs=in_specs,
        out_specs=out_specs,
        scratch_shapes=[pltpu.VMEM((NTOK, H3), jnp.float32),      # fused QKV
                        pltpu.VMEM((NTOK, HIDDEN), jnp.float32)],  # attention context
        compiler_params=pltpu.CompilerParams(dimension_semantics=("parallel",)),
    )(xp, params["init_base"], params["patch_w"],
      params["ln1_g"], params["ln1_b"], params["wqkv"], params["bqkv"],
      params["wo"], params["bo"], params["ln2_g"], params["ln2_b"],
      params["w1"], params["b1"], params["w2"], params["b2"],
      params["lnf_g"], params["lnf_b"], params["head_w"], params["head_b"])

    return logits.reshape(b, NUM_CLASSES), probs, rollout


# ---------------- plain-JAX glue ----------------
def get_coordinates_jax(cls_maps, scale, lam=1.3):
    """cls_maps: (B, h, h). Mirrors get_coordinates().

    The threshold uses mean over dim=[0,1] with keepdim, exactly like the PyTorch
    reference (a per-column threshold shared across the batch).
    # TODO(synk): skimage.measure connected-component labeling (largest-component
    # selection) has no Pallas/JAX equivalent; approximated with the bounding box
    # of ALL above-threshold pixels.
    """
    bb, hh, _ = cls_maps.shape
    mean_v = jnp.mean(cls_maps, axis=(0, 1), keepdims=True) * lam     # (1,1,hh)
    mask = cls_maps > mean_v                                          # (B,hh,hh)
    idx = jnp.arange(hh)
    rows_any = jnp.any(mask, axis=2)
    cols_any = jnp.any(mask, axis=1)
    has = jnp.any(mask, axis=(1, 2))
    rmin = jnp.min(jnp.where(rows_any, idx[None], hh), axis=1)
    rmax = jnp.max(jnp.where(rows_any, idx[None], -1), axis=1) + 1
    cmin = jnp.min(jnp.where(cols_any, idx[None], hh), axis=1)
    cmax = jnp.max(jnp.where(cols_any, idx[None], -1), axis=1) + 1
    rmin = jnp.where(has, rmin, 0)
    cmin = jnp.where(has, cmin, 0)
    rmax = jnp.where(has, rmax, hh)
    cmax = jnp.where(has, cmax, hh)
    x0 = jnp.maximum(rmin * scale - 1, 0)
    y0 = jnp.maximum(cmin * scale - 1, 0)
    x1 = rmax * scale - 1
    y1 = cmax * scale - 1
    return jnp.stack([x0, y0, x1, y1], axis=1)                         # (B,4) int32


def bilinear_crop_resize(img, bbox, out_h, out_w):
    """F.interpolate(x[:, :, x0:x1+1, y0:y1+1], (out_h,out_w), 'bilinear',
    align_corners=True) for one image. img: (C,H,W); bbox dynamic ints.
    # TODO(synk): dynamic-bounds bilinear crop/resize kept in plain JAX (dynamic
    # gather indices are not expressible via BlockSpec index_maps here)."""
    C, H, W = img.shape
    x0 = bbox[0].astype(jnp.float32)
    y0 = bbox[1].astype(jnp.float32)
    x1 = bbox[2].astype(jnp.float32)
    y1 = bbox[3].astype(jnp.float32)
    ti = jnp.arange(out_h, dtype=jnp.float32)
    tj = jnp.arange(out_w, dtype=jnp.float32)
    sx = x0 + ti * (x1 - x0) / (out_h - 1)
    sy = y0 + tj * (y1 - y0) / (out_w - 1)
    x_lo = jnp.clip(jnp.floor(sx).astype(jnp.int32), 0, H - 1)
    y_lo = jnp.clip(jnp.floor(sy).astype(jnp.int32), 0, W - 1)
    x_hi = jnp.clip(x_lo + 1, 0, H - 1)
    y_hi = jnp.clip(y_lo + 1, 0, W - 1)
    wx = (sx - x_lo.astype(jnp.float32))[None, :, None]
    wy = (sy - y_lo.astype(jnp.float32))[None, None, :]

    def g(xi, yi):
        return img[:, xi, :][:, :, yi]

    tl, tr = g(x_lo, y_lo), g(x_lo, y_hi)
    bl, br = g(x_hi, y_lo), g(x_hi, y_hi)
    top = tl * (1 - wy) + tr * wy
    bot = bl * (1 - wy) + br * wy
    return top * (1 - wx) + bot * wx


def mainnet_forward(params, x, labels=None):
    """MainNet.forward."""
    logits1, probs1, rollout = vit_forward_fused(params, x)
    # list of per-layer (B, H, N, N) attention probs, matching the PyTorch attn_weights
    attn_weights = [probs1[:, l * HEADS:(l + 1) * HEADS] for l in range(LAYERS)]

    b = x.shape[0]
    cls_attn = rollout[:, 0, 1:].reshape(b, GRID, GRID)
    coords = get_coordinates_jax(cls_attn, PATCH)

    # local zoomed images (resized to the backbone's expected img size), vmapped over batch
    local = jax.vmap(lambda img, bb: bilinear_crop_resize(img, bb, IMG, IMG))(x, coords)

    logits2, _, _ = vit_forward_fused(params, local)

    if labels is not None:
        def ce(lg):
            logp = jax.nn.log_softmax(lg, axis=-1)
            return -jnp.mean(jnp.take_along_axis(logp, labels[:, None], axis=1))
        return ce(logits1), ce(logits2), logits1, logits2
    return logits1, logits2, attn_weights


# ---------------- deterministic parameter init (layer-stacked / packed) ----------------
def init_params(key):
    keys = jax.random.split(key, 16)
    it = iter(keys)

    def nrm(shape, s=0.02):
        return jax.random.normal(next(it), shape, jnp.float32) * s

    patch_w = nrm((PD, HIDDEN))
    patch_b = jnp.zeros((HIDDEN,), jnp.float32)
    cls = nrm((1, 1, HIDDEN))
    pos = nrm((1, NTOK, HIDDEN))
    # init_base: row 0 = cls + pos[0]; rows 1.. = pos[1:] + patch bias (bias folded here
    # so the kernel needs a single add after the patch matmul).
    init_base = jnp.concatenate(
        [cls[:, 0:1] + pos[:, 0:1], pos[:, 1:] + patch_b[None, None, :]], axis=1)[0]

    params = {
        "patch_w": patch_w,
        "init_base": init_base,                                    # (NTOK, HIDDEN)
        "ln1_g": jnp.ones((LAYERS, 1, HIDDEN), jnp.float32),
        "ln1_b": jnp.zeros((LAYERS, 1, HIDDEN), jnp.float32),
        "wqkv": nrm((LAYERS, HIDDEN, H3)),                         # fused Q|K|V weight
        "bqkv": jnp.zeros((LAYERS, 1, H3), jnp.float32),
        "wo": nrm((LAYERS, HIDDEN, HIDDEN)),
        "bo": jnp.zeros((LAYERS, 1, HIDDEN), jnp.float32),
        "ln2_g": jnp.ones((LAYERS, 1, HIDDEN), jnp.float32),
        "ln2_b": jnp.zeros((LAYERS, 1, HIDDEN), jnp.float32),
        "w1": nrm((LAYERS, HIDDEN, MLP)),
        "b1": jnp.zeros((LAYERS, 1, MLP), jnp.float32),
        "w2": nrm((LAYERS, MLP, HIDDEN)),
        "b2": jnp.zeros((LAYERS, 1, HIDDEN), jnp.float32),
        "lnf_g": jnp.ones((1, HIDDEN), jnp.float32),
        "lnf_b": jnp.zeros((1, HIDDEN), jnp.float32),
        "head_w": nrm((HIDDEN, NUM_CLASSES)),
        "head_b": jnp.zeros((1, NUM_CLASSES), jnp.float32),
    }
    return params


if __name__ == "__main__":
    key = jax.random.PRNGKey(0)
    pkey, xkey = jax.random.split(key)
    params = init_params(pkey)
    x = jax.random.normal(xkey, (B, 3, IMG, IMG), jnp.float32)   # NCHW like PyTorch

    fwd = jax.jit(mainnet_forward)
    logits1, logits2, attn_weights = fwd(params, x)
    jax.block_until_ready((logits1, logits2, attn_weights))

    assert logits1.shape == (B, NUM_CLASSES)
    assert logits2.shape == (B, NUM_CLASSES)
    assert len(attn_weights) == LAYERS
    assert attn_weights[0].shape == (B, HEADS, NTOK, NTOK)
    print("KERNEL_OK")
</pallas_src>

<mosaic_0001>
module attributes {stable_mosaic.version = 11 : i64} {
  func.func @_fused_vit_kernel(%arg0: i32, %arg1: memref<1x5x768xf32, #tpu.memory_space<vmem>>, %arg2: memref<5x32xf32, #tpu.memory_space<vmem>>, %arg3: memref<768x32xf32, #tpu.memory_space<vmem>>, %arg4: memref<2x1x32xf32, #tpu.memory_space<vmem>>, %arg5: memref<2x1x32xf32, #tpu.memory_space<vmem>>, %arg6: memref<2x32x96xf32, #tpu.memory_space<vmem>>, %arg7: memref<2x1x96xf32, #tpu.memory_space<vmem>>, %arg8: memref<2x32x32xf32, #tpu.memory_space<vmem>>, %arg9: memref<2x1x32xf32, #tpu.memory_space<vmem>>, %arg10: memref<2x1x32xf32, #tpu.memory_space<vmem>>, %arg11: memref<2x1x32xf32, #tpu.memory_space<vmem>>, %arg12: memref<2x32x64xf32, #tpu.memory_space<vmem>>, %arg13: memref<2x1x64xf32, #tpu.memory_space<vmem>>, %arg14: memref<2x64x32xf32, #tpu.memory_space<vmem>>, %arg15: memref<2x1x32xf32, #tpu.memory_space<vmem>>, %arg16: memref<1x32xf32, #tpu.memory_space<vmem>>, %arg17: memref<1x32xf32, #tpu.memory_space<vmem>>, %arg18: memref<32x10xf32, #tpu.memory_space<vmem>>, %arg19: memref<1x10xf32, #tpu.memory_space<vmem>>, %arg20: memref<1x1x10xf32, #tpu.memory_space<vmem>>, %arg21: memref<1x8x5x5xf32, #tpu.memory_space<vmem>>, %arg22: memref<1x5x5xf32, #tpu.memory_space<vmem>>, %arg23: memref<5x96xf32, #tpu.memory_space<vmem>>, %arg24: memref<5x32xf32, #tpu.memory_space<vmem>>) attributes {dimension_semantics = [#tpu.dimension_semantics<parallel>], iteration_bounds = array<i64: 2>, scalar_prefetch = 0 : i64, scratch_operands = 2 : i64, tpu.core_type = #tpu.core_type<tc>, window_params = [{transform_indices = @transform_0, window_bounds = array<i64: 1, 5, 768>}, {pipeline_mode = #tpu.pipeline_mode<synchronous>, transform_indices = @transform_1, window_bounds = array<i64: 5, 32>}, {pipeline_mode = #tpu.pipeline_mode<synchronous>, transform_indices = @transform_2, window_bounds = array<i64: 768, 32>}, {pipeline_mode = #tpu.pipeline_mode<synchronous>, transform_indices = @transform_3, window_bounds = array<i64: 2, 1, 32>}, {pipeline_mode = #tpu.pipeline_mode<synchronous>, transform_indices = @transform_4, window_bounds = array<i64: 2, 1, 32>}, {pipeline_mode = #tpu.pipeline_mode<synchronous>, transform_indices = @transform_5, window_bounds = array<i64: 2, 32, 96>}, {pipeline_mode = #tpu.pipeline_mode<synchronous>, transform_indices = @transform_6, window_bounds = array<i64: 2, 1, 96>}, {pipeline_mode = #tpu.pipeline_mode<synchronous>, transform_indices = @transform_7, window_bounds = array<i64: 2, 32, 32>}, {pipeline_mode = #tpu.pipeline_mode<synchronous>, transform_indices = @transform_8, window_bounds = array<i64: 2, 1, 32>}, {pipeline_mode = #tpu.pipeline_mode<synchronous>, transform_indices = @transform_9, window_bounds = array<i64: 2, 1, 32>}, {pipeline_mode = #tpu.pipeline_mode<synchronous>, transform_indices = @transform_10, window_bounds = array<i64: 2, 1, 32>}, {pipeline_mode = #tpu.pipeline_mode<synchronous>, transform_indices = @transform_11, window_bounds = array<i64: 2, 32, 64>}, {pipeline_mode = #tpu.pipeline_mode<synchronous>, transform_indices = @transform_12, window_bounds = array<i64: 2, 1, 64>}, {pipeline_mode = #tpu.pipeline_mode<synchronous>, transform_indices = @transform_13, window_bounds = array<i64: 2, 64, 32>}, {pipeline_mode = #tpu.pipeline_mode<synchronous>, transform_indices = @transform_14, window_bounds = array<i64: 2, 1, 32>}, {pipeline_mode = #tpu.pipeline_mode<synchronous>, transform_indices = @transform_15, window_bounds = array<i64: 1, 32>}, {pipeline_mode = #tpu.pipeline_mode<synchronous>, transform_indices = @transform_16, window_bounds = array<i64: 1, 32>}, {pipeline_mode = #tpu.pipeline_mode<synchronous>, transform_indices = @transform_17, window_bounds = array<i64: 32, 10>}, {pipeline_mode = #tpu.pipeline_mode<synchronous>, transform_indices = @transform_18, window_bounds = array<i64: 1, 10>}, {transform_indices = @transform_19, window_bounds = array<i64: 1, 1, 10>}, {transform_indices = @transform_20, window_bounds = array<i64: 1, 8, 5, 5>}, {transform_indices = @transform_21, window_bounds = array<i64: 1, 5, 5>}]} {
    %c0 = arith.constant 0 : index
    %c0_0 = arith.constant 0 : index
    %c0_1 = arith.constant 0 : index
    %0 = vector.load %arg1[%c0, %c0_0, %c0_1] : memref<1x5x768xf32, #tpu.memory_space<vmem>>, vector<1x5x768xf32>
    %1 = vector.shape_cast %0 : vector<1x5x768xf32> to vector<5x768xf32>
    %c0_2 = arith.constant 0 : index
    %c0_3 = arith.constant 0 : index
    %2 = vector.load %arg3[%c0_2, %c0_3] : memref<768x32xf32, #tpu.memory_space<vmem>>, vector<768x32xf32>
    %cst = arith.constant dense<0.000000e+00> : vector<5x32xf32>
    %3 = tpu.matmul %1, %2, %cst {dimension_numbers = #tpu.dot_dimension_numbers<[1], [0], [0], [1], [0, 0, 1, 1], [], []>} : vector<5x768xf32>, vector<768x32xf32>, vector<5x32xf32> -> vector<5x32xf32>
    %c0_4 = arith.constant 0 : index
    %c0_5 = arith.constant 0 : index
    %4 = vector.load %arg2[%c0_4, %c0_5] : memref<5x32xf32, #tpu.memory_space<vmem>>, vector<5x32xf32>
    %5 = arith.addf %3, %4 : vector<5x32xf32>
    %6 = tpu.iota {dimensions = array<i32: 0>} : vector<5x5xi32>
    %7 = tpu.iota {dimensions = array<i32: 1>} : vector<5x5xi32>
    %8 = arith.cmpi eq, %6, %7 : vector<5x5xi32>
    %9 = arith.extui %8 : vector<5x5xi1> to vector<5x5xi32>
    %10 = arith.sitofp %9 : vector<5x5xi32> to vector<5x5xf32>
    %c0_6 = arith.constant 0 : index
    %c0_7 = arith.constant 0 : index
    %c0_8 = arith.constant 0 : index
    %11 = vector.load %arg4[%c0_6, %c0_7, %c0_8] : memref<2x1x32xf32, #tpu.memory_space<vmem>>, vector<1x1x32xf32>
    %12 = vector.shape_cast %11 : vector<1x1x32xf32> to vector<1x32xf32>
    %c0_9 = arith.constant 0 : index
    %c0_10 = arith.constant 0 : index
    %c0_11 = arith.constant 0 : index
    %13 = vector.load %arg5[%c0_9, %c0_10, %c0_11] : memref<2x1x32xf32, #tpu.memory_space<vmem>>, vector<1x1x32xf32>
    %14 = vector.shape_cast %13 : vector<1x1x32xf32> to vector<1x32xf32>
    %cst_12 = arith.constant dense<0.000000e+00> : vector<5xf32>
    %15 = vector.multi_reduction <add>, %5, %cst_12 [1] : vector<5x32xf32> to vector<5xf32>
    %16 = vector.shape_cast %15 : vector<5xf32> to vector<5x1xf32>
    %cst_13 = arith.constant 3.200000e+01 : f32
    %17 = vector.broadcast %cst_13 : f32 to vector<5x1xf32>
    %18 = arith.divf %16, %17 : vector<5x1xf32>
    %19 = vector.broadcast %18 : vector<5x1xf32> to vector<5x32xf32>
    %20 = arith.subf %5, %19 : vector<5x32xf32>
    %21 = arith.mulf %20, %20 : vector<5x32xf32>
    %cst_14 = arith.constant dense<0.000000e+00> : vector<5xf32>
    %22 = vector.multi_reduction <add>, %21, %cst_14 [1] : vector<5x32xf32> to vector<5xf32>
    %23 = vector.shape_cast %22 : vector<5xf32> to vector<5x1xf32>
    %cst_15 = arith.constant 3.200000e+01 : f32
    %24 = vector.broadcast %cst_15 : f32 to vector<5x1xf32>
    %25 = arith.divf %23, %24 : vector<5x1xf32>
    %26 = vector.broadcast %18 : vector<5x1xf32> to vector<5x32xf32>
    %27 = arith.subf %5, %26 : vector<5x32xf32>
    %cst_16 = arith.constant 9.99999997E-7 : f32
    %28 = vector.broadcast %cst_16 : f32 to vector<5x1xf32>
    %29 = arith.addf %25, %28 : vector<5x1xf32>
    %30 = math.rsqrt %29 : vector<5x1xf32>
    %31 = vector.broadcast %30 : vector<5x1xf32> to vector<5x32xf32>
    %32 = arith.mulf %27, %31 : vector<5x32xf32>
    %33 = vector.broadcast %12 : vector<1x32xf32> to vector<5x32xf32>
    %34 = arith.mulf %32, %33 : vector<5x32xf32>
    %35 = vector.broadcast %14 : vector<1x32xf32> to vector<5x32xf32>
    %36 = arith.addf %34, %35 : vector<5x32xf32>
    %c0_17 = arith.constant 0 : index
    %c0_18 = arith.constant 0 : index
    %c0_19 = arith.constant 0 : index
    %37 = vector.load %arg6[%c0_17, %c0_18, %c0_19] : memref<2x32x96xf32, #tpu.memory_space<vmem>>, vector<1x32x96xf32>
    %38 = vector.shape_cast %37 : vector<1x32x96xf32> to vector<32x96xf32>
    %cst_20 = arith.constant dense<0.000000e+00> : vector<5x96xf32>
    %39 = tpu.matmul %36, %38, %cst_20 {dimension_numbers = #tpu.dot_dimension_numbers<[1], [0], [0], [1], [0, 0, 1, 1], [], []>} : vector<5x32xf32>, vector<32x96xf32>, vector<5x96xf32> -> vector<5x96xf32>
    %c0_21 = arith.constant 0 : index
    %c0_22 = arith.constant 0 : index
    %c0_23 = arith.constant 0 : index
    %40 = vector.load %arg7[%c0_21, %c0_22, %c0_23] : memref<2x1x96xf32, #tpu.memory_space<vmem>>, vector<1x1x96xf32>
    %41 = vector.shape_cast %40 : vector<1x1x96xf32> to vector<1x96xf32>
    %42 = vector.broadcast %41 : vector<1x96xf32> to vector<5x96xf32>
    %43 = arith.addf %39, %42 : vector<5x96xf32>
    %c0_24 = arith.constant 0 : index
    %c0_25 = arith.constant 0 : index
    %44 = vector.load %arg23[%c0_24, %c0_25] : memref<5x96xf32, #tpu.memory_space<vmem>>, vector<5x96xf32>
    tpu.vector_store %arg23[%c0_24, %c0_25], %43 {strides = array<i32>} : memref<5x96xf32, #tpu.memory_space<vmem>>, vector<5x96xf32>,
    %cst_26 = arith.constant 0.000000e+00 : f32
    %45 = vector.broadcast %cst_26 : f32 to vector<5x5xf32>
    %c0_27 = arith.constant 0 : index
    %c0_28 = arith.constant 0 : index
    %46 = vector.load %arg23[%c0_27, %c0_28] : memref<5x96xf32, #tpu.memory_space<vmem>>, vector<5x8xf32>
    %c0_29 = arith.constant 0 : index
    %c32 = arith.constant 32 : index
    %47 = vector.load %arg23[%c0_29, %c32] : memref<5x96xf32, #tpu.memory_space<vmem>>, vector<5x8xf32>
    %c0_30 = arith.constant 0 : index
    %c64 = arith.constant 64 : index
    %48 = vector.load %arg23[%c0_30, %c64] : memref<5x96xf32, #tpu.memory_space<vmem>>, vector<5x8xf32>
    %cst_31 = arith.constant dense<0.000000e+00> : vector<5x5xf32>
    %49 = tpu.matmul %46, %47, %cst_31 {dimension_numbers = #tpu.dot_dimension_numbers<[1], [1], [0], [0], [0, 0, 1, 0], [], []>} : vector<5x8xf32>, vector<5x8xf32>, vector<5x5xf32> -> vector<5x5xf32>
    %cst_32 = arith.constant 0.353553385 : f32
    %50 = vector.broadcast %cst_32 : f32 to vector<5x5xf32>
    %51 = arith.mulf %49, %50 : vector<5x5xf32>
    %cst_33 = arith.constant dense<0xFF800000> : vector<5xf32>
    %52 = vector.multi_reduction <maximumf>, %51, %cst_33 [1] : vector<5x5xf32> to vector<5xf32>
    %53 = vector.shape_cast %52 : vector<5xf32> to vector<5x1xf32>
    %54 = vector.broadcast %53 : vector<5x1xf32> to vector<5x5xf32>
    %55 = arith.subf %51, %54 : vector<5x5xf32>
    %56 = math.exp %55 : vector<5x5xf32>
    %cst_34 = arith.constant dense<0.000000e+00> : vector<5xf32>
    %57 = vector.multi_reduction <add>, %56, %cst_34 [1] : vector<5x5xf32> to vector<5xf32>
    %58 = vector.shape_cast %57 : vector<5xf32> to vector<5x1xf32>
    %59 = vector.broadcast %58 : vector<5x1xf32> to vector<5x5xf32>
    %60 = arith.divf %56, %59 : vector<5x5xf32>
    %c0_35 = arith.constant 0 : index
    %c0_36 = arith.constant 0 : index
    %c0_37 = arith.constant 0 : index
    %c0_38 = arith.constant 0 : index
    %61 = vector.load %arg21[%c0_35, %c0_36, %c0_37, %c0_38] : memref<1x8x5x5xf32, #tpu.memory_space<vmem>>, vector<1x1x5x5xf32>
    %62 = vector.shape_cast %61 : vector<1x1x5x5xf32> to vector<5x5xf32>
    %63 = vector.shape_cast %60 : vector<5x5xf32> to vector<1x1x5x5xf32>
    tpu.vector_store %arg21[%c0_35, %c0_36, %c0_37, %c0_38], %63 {strides = array<i32>} : memref<1x8x5x5xf32, #tpu.memory_space<vmem>>, vector<1x1x5x5xf32>,
    %64 = arith.addf %45, %60 : vector<5x5xf32>
    %cst_39 = arith.constant dense<0.000000e+00> : vector<5x8xf32>
    %65 = tpu.matmul %60, %48, %cst_39 {dimension_numbers = #tpu.dot_dimension_numbers<[1], [0], [0], [1], [0, 0, 1, 1], [], []>} : vector<5x5xf32>, vector<5x8xf32>, vector<5x8xf32> -> vector<5x8xf32>
    %c0_40 = arith.constant 0 : index
    %c0_41 = arith.constant 0 : index
    %66 = vector.load %arg24[%c0_40, %c0_41] : memref<5x32xf32, #tpu.memory_space<vmem>>, vector<5x8xf32>
    tpu.vector_store %arg24[%c0_40, %c0_41], %65 {strides = array<i32>} : memref<5x32xf32, #tpu.memory_space<vmem>>, vector<5x8xf32>,
    %c0_42 = arith.constant 0 : index
    %c8 = arith.constant 8 : index
    %67 = vector.load %arg23[%c0_42, %c8] : memref<5x96xf32, #tpu.memory_space<vmem>>, vector<5x8xf32>
    %c0_43 = arith.constant 0 : index
    %c40 = arith.constant 40 : index
    %68 = vector.load %arg23[%c0_43, %c40] : memref<5x96xf32, #tpu.memory_space<vmem>>, vector<5x8xf32>
    %c0_44 = arith.constant 0 : index
    %c72 = arith.constant 72 : index
    %69 = vector.load %arg23[%c0_44, %c72] : memref<5x96xf32, #tpu.memory_space<vmem>>, vector<5x8xf32>
    %cst_45 = arith.constant dense<0.000000e+00> : vector<5x5xf32>
    %70 = tpu.matmul %67, %68, %cst_45 {dimension_numbers = #tpu.dot_dimension_numbers<[1], [1], [0], [0], [0, 0, 1, 0], [], []>} : vector<5x8xf32>, vector<5x8xf32>, vector<5x5xf32> -> vector<5x5xf32>
    %cst_46 = arith.constant 0.353553385 : f32
    %71 = vector.broadcast %cst_46 : f32 to vector<5x5xf32>
    %72 = arith.mulf %70, %71 : vector<5x5xf32>
    %cst_47 = arith.constant dense<0xFF800000> : vector<5xf32>
    %73 = vector.multi_reduction <maximumf>, %72, %cst_47 [1] : vector<5x5xf32> to vector<5xf32>
    %74 = vector.shape_cast %73 : vector<5xf32> to vector<5x1xf32>
    %75 = vector.broadcast %74 : vector<5x1xf32> to vector<5x5xf32>
    %76 = arith.subf %72, %75 : vector<5x5xf32>
    %77 = math.exp %76 : vector<5x5xf32>
    %cst_48 = arith.constant dense<0.000000e+00> : vector<5xf32>
    %78 = vector.multi_reduction <add>, %77, %cst_48 [1] : vector<5x5xf32> to vector<5xf32>
    %79 = vector.shape_cast %78 : vector<5xf32> to vector<5x1xf32>
    %80 = vector.broadcast %79 : vector<5x1xf32> to vector<5x5xf32>
    %81 = arith.divf %77, %80 : vector<5x5xf32>
    %c0_49 = arith.constant 0 : index
    %c1 = arith.constant 1 : index
    %c0_50 = arith.constant 0 : index
    %c0_51 = arith.constant 0 : index
    %82 = vector.load %arg21[%c0_49, %c1, %c0_50, %c0_51] : memref<1x8x5x5xf32, #tpu.memory_space<vmem>>, vector<1x1x5x5xf32>
    %83 = vector.shape_cast %82 : vector<1x1x5x5xf32> to vector<5x5xf32>
    %84 = vector.shape_cast %81 : vector<5x5xf32> to vector<1x1x5x5xf32>
    tpu.vector_store %arg21[%c0_49, %c1, %c0_50, %c0_51], %84 {strides = array<i32>} : memref<1x8x5x5xf32, #tpu.memory_space<vmem>>, vector<1x1x5x5xf32>,
    %85 = arith.addf %64, %81 : vector<5x5xf32>
    %cst_52 = arith.constant dense<0.000000e+00> : vector<5x8xf32>
    %86 = tpu.matmul %81, %69, %cst_52 {dimension_numbers = #tpu.dot_dimension_numbers<[1], [0], [0], [1], [0, 0, 1, 1], [], []>} : vector<5x5xf32>, vector<5x8xf32>, vector<5x8xf32> -> vector<5x8xf32>
    %c0_53 = arith.constant 0 : index
    %c8_54 = arith.constant 8 : index
    %87 = vector.load %arg24[%c0_53, %c8_54] : memref<5x32xf32, #tpu.memory_space<vmem>>, vector<5x8xf32>
    tpu.vector_store %arg24[%c0_53, %c8_54], %86 {strides = array<i32>} : memref<5x32xf32, #tpu.memory_space<vmem>>, vector<5x8xf32>,
    %c0_55 = arith.constant 0 : index
    %c16 = arith.constant 16 : index
    %88 = vector.load %arg23[%c0_55, %c16] : memref<5x96xf32, #tpu.memory_space<vmem>>, vector<5x8xf32>
    %c0_56 = arith.constant 0 : index
    %c48 = arith.constant 48 : index
    %89 = vector.load %arg23[%c0_56, %c48] : memref<5x96xf32, #tpu.memory_space<vmem>>, vector<5x8xf32>
    %c0_57 = arith.constant 0 : index
    %c80 = arith.constant 80 : index
    %90 = vector.load %arg23[%c0_57, %c80] : memref<5x96xf32, #tpu.memory_space<vmem>>, vector<5x8xf32>
    %cst_58 = arith.constant dense<0.000000e+00> : vector<5x5xf32>
    %91 = tpu.matmul %88, %89, %cst_58 {dimension_numbers = #tpu.dot_dimension_numbers<[1], [1], [0], [0], [0, 0, 1, 0], [], []>} : vector<5x8xf32>, vector<5x8xf32>, vector<5x5xf32> -> vector<5x5xf32>
    %cst_59 = arith.constant 0.353553385 : f32
    %92 = vector.broadcast %cst_59 : f32 to vector<5x5xf32>
    %93 = arith.mulf %91, %92 : vector<5x5xf32>
    %cst_60 = arith.constant dense<0xFF800000> : vector<5xf32>
    %94 = vector.multi_reduction <maximumf>, %93, %cst_60 [1] : vector<5x5xf32> to vector<5xf32>
    %95 = vector.shape_cast %94 : vector<5xf32> to vector<5x1xf32>
    %96 = vector.broadcast %95 : vector<5x1xf32> to vector<5x5xf32>
    %97 = arith.subf %93, %96 : vector<5x5xf32>
    %98 = math.exp %97 : vector<5x5xf32>
    %cst_61 = arith.constant dense<0.000000e+00> : vector<5xf32>
    %99 = vector.multi_reduction <add>, %98, %cst_61 [1] : vector<5x5xf32> to vector<5xf32>
    %100 = vector.shape_cast %99 : vector<5xf32> to vector<5x1xf32>
    %101 = vector.broadcast %100 : vector<5x1xf32> to vector<5x5xf32>
    %102 = arith.divf %98, %101 : vector<5x5xf32>
    %c0_62 = arith.constant 0 : index
    %c2 = arith.constant 2 : index
    %c0_63 = arith.constant 0 : index
    %c0_64 = arith.constant 0 : index
    %103 = vector.load %arg21[%c0_62, %c2, %c0_63, %c0_64] : memref<1x8x5x5xf32, #tpu.memory_space<vmem>>, vector<1x1x5x5xf32>
    %104 = vector.shape_cast %103 : vector<1x1x5x5xf32> to vector<5x5xf32>
    %105 = vector.shape_cast %102 : vector<5x5xf32> to vector<1x1x5x5xf32>
    tpu.vector_store %arg21[%c0_62, %c2, %c0_63, %c0_64], %105 {strides = array<i32>} : memref<1x8x5x5xf32, #tpu.memory_space<vmem>>, vector<1x1x5x5xf32>,
    %106 = arith.addf %85, %102 : vector<5x5xf32>
    %cst_65 = arith.constant dense<0.000000e+00> : vector<5x8xf32>
    %107 = tpu.matmul %102, %90, %cst_65 {dimension_numbers = #tpu.dot_dimension_numbers<[1], [0], [0], [1], [0, 0, 1, 1], [], []>} : vector<5x5xf32>, vector<5x8xf32>, vector<5x8xf32> -> vector<5x8xf32>
    %c0_66 = arith.constant 0 : index
    %c16_67 = arith.constant 16 : index
    %108 = vector.load %arg24[%c0_66, %c16_67] : memref<5x32xf32, #tpu.memory_space<vmem>>, vector<5x8xf32>
    tpu.vector_store %arg24[%c0_66, %c16_67], %107 {strides = array<i32>} : memref<5x32xf32, #tpu.memory_space<vmem>>, vector<5x8xf32>,
    %c0_68 = arith.constant 0 : index
    %c24 = arith.constant 24 : index
    %109 = vector.load %arg23[%c0_68, %c24] : memref<5x96xf32, #tpu.memory_space<vmem>>, vector<5x8xf32>
    %c0_69 = arith.constant 0 : index
    %c56 = arith.constant 56 : index
    %110 = vector.load %arg23[%c0_69, %c56] : memref<5x96xf32, #tpu.memory_space<vmem>>, vector<5x8xf32>
    %c0_70 = arith.constant 0 : index
    %c88 = arith.constant 88 : index
    %111 = vector.load %arg23[%c0_70, %c88] : memref<5x96xf32, #tpu.memory_space<vmem>>, vector<5x8xf32>
    %cst_71 = arith.constant dense<0.000000e+00> : vector<5x5xf32>
    %112 = tpu.matmul %109, %110, %cst_71 {dimension_numbers = #tpu.dot_dimension_numbers<[1], [1], [0], [0], [0, 0, 1, 0], [], []>} : vector<5x8xf32>, vector<5x8xf32>, vector<5x5xf32> -> vector<5x5xf32>
    %cst_72 = arith.constant 0.353553385 : f32
    %113 = vector.broadcast %cst_72 : f32 to vector<5x5xf32>
    %114 = arith.mulf %112, %113 : vector<5x5xf32>
    %cst_73 = arith.constant dense<0xFF800000> : vector<5xf32>
    %115 = vector.multi_reduction <maximumf>, %114, %cst_73 [1] : vector<5x5xf32> to vector<5xf32>
    %116 = vector.shape_cast %115 : vector<5xf32> to vector<5x1xf32>
    %117 = vector.broadcast %116 : vector<5x1xf32> to vector<5x5xf32>
    %118 = arith.subf %114, %117 : vector<5x5xf32>
    %119 = math.exp %118 : vector<5x5xf32>
    %cst_74 = arith.constant dense<0.000000e+00> : vector<5xf32>
    %120 = vector.multi_reduction <add>, %119, %cst_74 [1] : vector<5x5xf32> to vector<5xf32>
    %121 = vector.shape_cast %120 : vector<5xf32> to vector<5x1xf32>
    %122 = vector.broadcast %121 : vector<5x1xf32> to vector<5x5xf32>
    %123 = arith.divf %119, %122 : vector<5x5xf32>
    %c0_75 = arith.constant 0 : index
    %c3 = arith.constant 3 : index
    %c0_76 = arith.constant 0 : index
    %c0_77 = arith.constant 0 : index
    %124 = vector.load %arg21[%c0_75, %c3, %c0_76, %c0_77] : memref<1x8x5x5xf32, #tpu.memory_space<vmem>>, vector<1x1x5x5xf32>
    %125 = vector.shape_cast %124 : vector<1x1x5x5xf32> to vector<5x5xf32>
    %126 = vector.shape_cast %123 : vector<5x5xf32> to vector<1x1x5x5xf32>
    tpu.vector_store %arg21[%c0_75, %c3, %c0_76, %c0_77], %126 {strides = array<i32>} : memref<1x8x5x5xf32, #tpu.memory_space<vmem>>, vector<1x1x5x5xf32>,
    %127 = arith.addf %106, %123 : vector<5x5xf32>
    %cst_78 = arith.constant dense<0.000000e+00> : vector<5x8xf32>
    %128 = tpu.matmul %123, %111, %cst_78 {dimension_numbers = #tpu.dot_dimension_numbers<[1], [0], [0], [1], [0, 0, 1, 1], [], []>} : vector<5x5xf32>, vector<5x8xf32>, vector<5x8xf32> -> vector<5x8xf32>
    %c0_79 = arith.constant 0 : index
    %c24_80 = arith.constant 24 : index
    %129 = vector.load %arg24[%c0_79, %c24_80] : memref<5x32xf32, #tpu.memory_space<vmem>>, vector<5x8xf32>
    tpu.vector_store %arg24[%c0_79, %c24_80], %128 {strides = array<i32>} : memref<5x32xf32, #tpu.memory_space<vmem>>, vector<5x8xf32>,
    %c0_81 = arith.constant 0 : index
    %c0_82 = arith.constant 0 : index
    %130 = vector.load %arg24[%c0_81, %c0_82] : memref<5x32xf32, #tpu.memory_space<vmem>>, vector<5x32xf32>
    %c0_83 = arith.constant 0 : index
    %c0_84 = arith.constant 0 : index
    %c0_85 = arith.constant 0 : index
    %131 = vector.load %arg8[%c0_83, %c0_84, %c0_85] : memref<2x32x32xf32, #tpu.memory_space<vmem>>, vector<1x32x32xf32>
    %132 = vector.shape_cast %131 : vector<1x32x32xf32> to vector<32x32xf32>
    %cst_86 = arith.constant dense<0.000000e+00> : vector<5x32xf32>
    %133 = tpu.matmul %130, %132, %cst_86 {dimension_numbers = #tpu.dot_dimension_numbers<[1], [0], [0], [1], [0, 0, 1, 1], [], []>} : vector<5x32xf32>, vector<32x32xf32>, vector<5x32xf32> -> vector<5x32xf32>
    %c0_87 = arith.constant 0 : index
    %c0_88 = arith.constant 0 : index
    %c0_89 = arith.constant 0 : index
    %134 = vector.load %arg9[%c0_87, %c0_88, %c0_89] : memref<2x1x32xf32, #tpu.memory_space<vmem>>, vector<1x1x32xf32>
    %135 = vector.shape_cast %134 : vector<1x1x32xf32> to vector<1x32xf32>
    %136 = vector.broadcast %135 : vector<1x32xf32> to vector<5x32xf32>
    %137 = arith.addf %133, %136 : vector<5x32xf32>
    %138 = arith.addf %5, %137 : vector<5x32xf32>
    %c0_90 = arith.constant 0 : index
    %c0_91 = arith.constant 0 : index
    %c0_92 = arith.constant 0 : index
    %139 = vector.load %arg10[%c0_90, %c0_91, %c0_92] : memref<2x1x32xf32, #tpu.memory_space<vmem>>, vector<1x1x32xf32>
    %140 = vector.shape_cast %139 : vector<1x1x32xf32> to vector<1x32xf32>
    %c0_93 = arith.constant 0 : index
    %c0_94 = arith.constant 0 : index
    %c0_95 = arith.constant 0 : index
    %141 = vector.load %arg11[%c0_93, %c0_94, %c0_95] : memref<2x1x32xf32, #tpu.memory_space<vmem>>, vector<1x1x32xf32>
    %142 = vector.shape_cast %141 : vector<1x1x32xf32> to vector<1x32xf32>
    %cst_96 = arith.constant dense<0.000000e+00> : vector<5xf32>
    %143 = vector.multi_reduction <add>, %138, %cst_96 [1] : vector<5x32xf32> to vector<5xf32>
    %144 = vector.shape_cast %143 : vector<5xf32> to vector<5x1xf32>
    %cst_97 = arith.constant 3.200000e+01 : f32
    %145 = vector.broadcast %cst_97 : f32 to vector<5x1xf32>
    %146 = arith.divf %144, %145 : vector<5x1xf32>
    %147 = vector.broadcast %146 : vector<5x1xf32> to vector<5x32xf32>
    %148 = arith.subf %138, %147 : vector<5x32xf32>
    %149 = arith.mulf %148, %148 : vector<5x32xf32>
    %cst_98 = arith.constant dense<0.000000e+00> : vector<5xf32>
    %150 = vector.multi_reduction <add>, %149, %cst_98 [1] : vector<5x32xf32> to vector<5xf32>
    %151 = vector.shape_cast %150 : vector<5xf32> to vector<5x1xf32>
    %cst_99 = arith.constant 3.200000e+01 : f32
    %152 = vector.broadcast %cst_99 : f32 to vector<5x1xf32>
    %153 = arith.divf %151, %152 : vector<5x1xf32>
    %154 = vector.broadcast %146 : vector<5x1xf32> to vector<5x32xf32>
    %155 = arith.subf %138, %154 : vector<5x32xf32>
    %cst_100 = arith.constant 9.99999997E-7 : f32
    %156 = vector.broadcast %cst_100 : f32 to vector<5x1xf32>
    %157 = arith.addf %153, %156 : vector<5x1xf32>
    %158 = math.rsqrt %157 : vector<5x1xf32>
    %159 = vector.broadcast %158 : vector<5x1xf32> to vector<5x32xf32>
    %160 = arith.mulf %155, %159 : vector<5x32xf32>
    %161 = vector.broadcast %140 : vector<1x32xf32> to vector<5x32xf32>
    %162 = arith.mulf %160, %161 : vector<5x32xf32>
    %163 = vector.broadcast %142 : vector<1x32xf32> to vector<5x32xf32>
    %164 = arith.addf %162, %163 : vector<5x32xf32>
    %c0_101 = arith.constant 0 : index
    %c0_102 = arith.constant 0 : index
    %c0_103 = arith.constant 0 : index
    %165 = vector.load %arg12[%c0_101, %c0_102, %c0_103] : memref<2x32x64xf32, #tpu.memory_space<vmem>>, vector<1x32x64xf32>
    %166 = vector.shape_cast %165 : vector<1x32x64xf32> to vector<32x64xf32>
    %cst_104 = arith.constant dense<0.000000e+00> : vector<5x64xf32>
    %167 = tpu.matmul %164, %166, %cst_104 {dimension_numbers = #tpu.dot_dimension_numbers<[1], [0], [0], [1], [0, 0, 1, 1], [], []>} : vector<5x32xf32>, vector<32x64xf32>, vector<5x64xf32> -> vector<5x64xf32>
    %c0_105 = arith.constant 0 : index
    %c0_106 = arith.constant 0 : index
    %c0_107 = arith.constant 0 : index
    %168 = vector.load %arg13[%c0_105, %c0_106, %c0_107] : memref<2x1x64xf32, #tpu.memory_space<vmem>>, vector<1x1x64xf32>
    %169 = vector.shape_cast %168 : vector<1x1x64xf32> to vector<1x64xf32>
    %170 = vector.broadcast %169 : vector<1x64xf32> to vector<5x64xf32>
    %171 = arith.addf %167, %170 : vector<5x64xf32>
    %172 = arith.mulf %171, %171 : vector<5x64xf32>
    %173 = arith.mulf %171, %172 : vector<5x64xf32>
    %cst_108 = arith.constant 4.471500e-02 : f32
    %174 = vector.broadcast %cst_108 : f32 to vector<5x64xf32>
    %175 = arith.mulf %174, %173 : vector<5x64xf32>
    %176 = arith.addf %171, %175 : vector<5x64xf32>
    %cst_109 = arith.constant 0.797884583 : f32
    %177 = vector.broadcast %cst_109 : f32 to vector<5x64xf32>
    %178 = arith.mulf %177, %176 : vector<5x64xf32>
    %179 = math.tanh %178 : vector<5x64xf32>
    %cst_110 = arith.constant 1.000000e+00 : f32
    %180 = vector.broadcast %cst_110 : f32 to vector<5x64xf32>
    %181 = arith.addf %180, %179 : vector<5x64xf32>
    %cst_111 = arith.constant 5.000000e-01 : f32
    %182 = vector.broadcast %cst_111 : f32 to vector<5x64xf32>
    %183 = arith.mulf %182, %181 : vector<5x64xf32>
    %184 = arith.mulf %171, %183 : vector<5x64xf32>
    %c0_112 = arith.constant 0 : index
    %c0_113 = arith.constant 0 : index
    %c0_114 = arith.constant 0 : index
    %185 = vector.load %arg14[%c0_112, %c0_113, %c0_114] : memref<2x64x32xf32, #tpu.memory_space<vmem>>, vector<1x64x32xf32>
    %186 = vector.shape_cast %185 : vector<1x64x32xf32> to vector<64x32xf32>
    %cst_115 = arith.constant dense<0.000000e+00> : vector<5x32xf32>
    %187 = tpu.matmul %184, %186, %cst_115 {dimension_numbers = #tpu.dot_dimension_numbers<[1], [0], [0], [1], [0, 0, 1, 1], [], []>} : vector<5x64xf32>, vector<64x32xf32>, vector<5x32xf32> -> vector<5x32xf32>
    %c0_116 = arith.constant 0 : index
    %c0_117 = arith.constant 0 : index
    %c0_118 = arith.constant 0 : index
    %188 = vector.load %arg15[%c0_116, %c0_117, %c0_118] : memref<2x1x32xf32, #tpu.memory_space<vmem>>, vector<1x1x32xf32>
    %189 = vector.shape_cast %188 : vector<1x1x32xf32> to vector<1x32xf32>
    %190 = vector.broadcast %189 : vector<1x32xf32> to vector<5x32xf32>
    %191 = arith.addf %187, %190 : vector<5x32xf32>
    %192 = arith.addf %138, %191 : vector<5x32xf32>
    %cst_119 = arith.constant 2.500000e-01 : f32
    %193 = vector.broadcast %cst_119 : f32 to vector<5x5xf32>
    %194 = arith.mulf %127, %193 : vector<5x5xf32>
    %195 = arith.addf %194, %10 : vector<5x5xf32>
    %cst_120 = arith.constant dense<0.000000e+00> : vector<5xf32>
    %196 = vector.multi_reduction <add>, %195, %cst_120 [1] : vector<5x5xf32> to vector<5xf32>
    %197 = vector.shape_cast %196 : vector<5xf32> to vector<5x1xf32>
    %198 = vector.broadcast %197 : vector<5x1xf32> to vector<5x5xf32>
    %199 = arith.divf %195, %198 : vector<5x5xf32>
    %c1_121 = arith.constant 1 : index
    %c0_122 = arith.constant 0 : index
    %c0_123 = arith.constant 0 : index
    %200 = vector.load %arg4[%c1_121, %c0_122, %c0_123] : memref<2x1x32xf32, #tpu.memory_space<vmem>>, vector<1x1x32xf32>
    %201 = vector.shape_cast %200 : vector<1x1x32xf32> to vector<1x32xf32>
    %c1_124 = arith.constant 1 : index
    %c0_125 = arith.constant 0 : index
    %c0_126 = arith.constant 0 : index
    %202 = vector.load %arg5[%c1_124, %c0_125, %c0_126] : memref<2x1x32xf32, #tpu.memory_space<vmem>>, vector<1x1x32xf32>
    %203 = vector.shape_cast %202 : vector<1x1x32xf32> to vector<1x32xf32>
    %cst_127 = arith.constant dense<0.000000e+00> : vector<5xf32>
    %204 = vector.multi_reduction <add>, %192, %cst_127 [1] : vector<5x32xf32> to vector<5xf32>
    %205 = vector.shape_cast %204 : vector<5xf32> to vector<5x1xf32>
    %cst_128 = arith.constant 3.200000e+01 : f32
    %206 = vector.broadcast %cst_128 : f32 to vector<5x1xf32>
    %207 = arith.divf %205, %206 : vector<5x1xf32>
    %208 = vector.broadcast %207 : vector<5x1xf32> to vector<5x32xf32>
    %209 = arith.subf %192, %208 : vector<5x32xf32>
    %210 = arith.mulf %209, %209 : vector<5x32xf32>
    %cst_129 = arith.constant dense<0.000000e+00> : vector<5xf32>
    %211 = vector.multi_reduction <add>, %210, %cst_129 [1] : vector<5x32xf32> to vector<5xf32>
    %212 = vector.shape_cast %211 : vector<5xf32> to vector<5x1xf32>
    %cst_130 = arith.constant 3.200000e+01 : f32
    %213 = vector.broadcast %cst_130 : f32 to vector<5x1xf32>
    %214 = arith.divf %212, %213 : vector<5x1xf32>
    %215 = vector.broadcast %207 : vector<5x1xf32> to vector<5x32xf32>
    %216 = arith.subf %192, %215 : vector<5x32xf32>
    %cst_131 = arith.constant 9.99999997E-7 : f32
    %217 = vector.broadcast %cst_131 : f32 to vector<5x1xf32>
    %218 = arith.addf %214, %217 : vector<5x1xf32>
    %219 = math.rsqrt %218 : vector<5x1xf32>
    %220 = vector.broadcast %219 : vector<5x1xf32> to vector<5x32xf32>
    %221 = arith.mulf %216, %220 : vector<5x32xf32>
    %222 = vector.broadcast %201 : vector<1x32xf32> to vector<5x32xf32>
    %223 = arith.mulf %221, %222 : vector<5x32xf32>
    %224 = vector.broadcast %203 : vector<1x32xf32> to vector<5x32xf32>
    %225 = arith.addf %223, %224 : vector<5x32xf32>
    %c1_132 = arith.constant 1 : index
    %c0_133 = arith.constant 0 : index
    %c0_134 = arith.constant 0 : index
    %226 = vector.load %arg6[%c1_132, %c0_133, %c0_134] : memref<2x32x96xf32, #tpu.memory_space<vmem>>, vector<1x32x96xf32>
    %227 = vector.shape_cast %226 : vector<1x32x96xf32> to vector<32x96xf32>
    %cst_135 = arith.constant dense<0.000000e+00> : vector<5x96xf32>
    %228 = tpu.matmul %225, %227, %cst_135 {dimension_numbers = #tpu.dot_dimension_numbers<[1], [0], [0], [1], [0, 0, 1, 1], [], []>} : vector<5x32xf32>, vector<32x96xf32>, vector<5x96xf32> -> vector<5x96xf32>
    %c1_136 = arith.constant 1 : index
    %c0_137 = arith.constant 0 : index
    %c0_138 = arith.constant 0 : index
    %229 = vector.load %arg7[%c1_136, %c0_137, %c0_138] : memref<2x1x96xf32, #tpu.memory_space<vmem>>, vector<1x1x96xf32>
    %230 = vector.shape_cast %229 : vector<1x1x96xf32> to vector<1x96xf32>
    %231 = vector.broadcast %230 : vector<1x96xf32> to vector<5x96xf32>
    %232 = arith.addf %228, %231 : vector<5x96xf32>
    %c0_139 = arith.constant 0 : index
    %c0_140 = arith.constant 0 : index
    %233 = vector.load %arg23[%c0_139, %c0_140] : memref<5x96xf32, #tpu.memory_space<vmem>>, vector<5x96xf32>
    tpu.vector_store %arg23[%c0_139, %c0_140], %232 {strides = array<i32>} : memref<5x96xf32, #tpu.memory_space<vmem>>, vector<5x96xf32>,
    %cst_141 = arith.constant 0.000000e+00 : f32
    %234 = vector.broadcast %cst_141 : f32 to vector<5x5xf32>
    %c0_142 = arith.constant 0 : index
    %c0_143 = arith.constant 0 : index
    %235 = vector.load %arg23[%c0_142, %c0_143] : memref<5x96xf32, #tpu.memory_space<vmem>>, vector<5x8xf32>
    %c0_144 = arith.constant 0 : index
    %c32_145 = arith.constant 32 : index
    %236 = vector.load %arg23[%c0_144, %c32_145] : memref<5x96xf32, #tpu.memory_space<vmem>>, vector<5x8xf32>
    %c0_146 = arith.constant 0 : index
    %c64_147 = arith.constant 64 : index
    %237 = vector.load %arg23[%c0_146, %c64_147] : memref<5x96xf32, #tpu.memory_space<vmem>>, vector<5x8xf32>
    %cst_148 = arith.constant dense<0.000000e+00> : vector<5x5xf32>
    %238 = tpu.matmul %235, %236, %cst_148 {dimension_numbers = #tpu.dot_dimension_numbers<[1], [1], [0], [0], [0, 0, 1, 0], [], []>} : vector<5x8xf32>, vector<5x8xf32>, vector<5x5xf32> -> vector<5x5xf32>
    %cst_149 = arith.constant 0.353553385 : f32
    %239 = vector.broadcast %cst_149 : f32 to vector<5x5xf32>
    %240 = arith.mulf %238, %239 : vector<5x5xf32>
    %cst_150 = arith.constant dense<0xFF800000> : vector<5xf32>
    %241 = vector.multi_reduction <maximumf>, %240, %cst_150 [1] : vector<5x5xf32> to vector<5xf32>
    %242 = vector.shape_cast %241 : vector<5xf32> to vector<5x1xf32>
    %243 = vector.broadcast %242 : vector<5x1xf32> to vector<5x5xf32>
    %244 = arith.subf %240, %243 : vector<5x5xf32>
    %245 = math.exp %244 : vector<5x5xf32>
    %cst_151 = arith.constant dense<0.000000e+00> : vector<5xf32>
    %246 = vector.multi_reduction <add>, %245, %cst_151 [1] : vector<5x5xf32> to vector<5xf32>
    %247 = vector.shape_cast %246 : vector<5xf32> to vector<5x1xf32>
    %248 = vector.broadcast %247 : vector<5x1xf32> to vector<5x5xf32>
    %249 = arith.divf %245, %248 : vector<5x5xf32>
    %c0_152 = arith.constant 0 : index
    %c4 = arith.constant 4 : index
    %c0_153 = arith.constant 0 : index
    %c0_154 = arith.constant 0 : index
    %250 = vector.load %arg21[%c0_152, %c4, %c0_153, %c0_154] : memref<1x8x5x5xf32, #tpu.memory_space<vmem>>, vector<1x1x5x5xf32>
    %251 = vector.shape_cast %250 : vector<1x1x5x5xf32> to vector<5x5xf32>
    %252 = vector.shape_cast %249 : vector<5x5xf32> to vector<1x1x5x5xf32>
    tpu.vector_store %arg21[%c0_152, %c4, %c0_153, %c0_154], %252 {strides = array<i32>} : memref<1x8x5x5xf32, #tpu.memory_space<vmem>>, vector<1x1x5x5xf32>,
    %253 = arith.addf %234, %249 : vector<5x5xf32>
    %cst_155 = arith.constant dense<0.000000e+00> : vector<5x8xf32>
    %254 = tpu.matmul %249, %237, %cst_155 {dimension_numbers = #tpu.dot_dimension_numbers<[1], [0], [0], [1], [0, 0, 1, 1], [], []>} : vector<5x5xf32>, vector<5x8xf32>, vector<5x8xf32> -> vector<5x8xf32>
    %c0_156 = arith.constant 0 : index
    %c0_157 = arith.constant 0 : index
    %255 = vector.load %arg24[%c0_156, %c0_157] : memref<5x32xf32, #tpu.memory_space<vmem>>, vector<5x8xf32>
    tpu.vector_store %arg24[%c0_156, %c0_157], %254 {strides = array<i32>} : memref<5x32xf32, #tpu.memory_space<vmem>>, vector<5x8xf32>,
    %c0_158 = arith.constant 0 : index
    %c8_159 = arith.constant 8 : index
    %256 = vector.load %arg23[%c0_158, %c8_159] : memref<5x96xf32, #tpu.memory_space<vmem>>, vector<5x8xf32>
    %c0_160 = arith.constant 0 : index
    %c40_161 = arith.constant 40 : index
    %257 = vector.load %arg23[%c0_160, %c40_161] : memref<5x96xf32, #tpu.memory_space<vmem>>, vector<5x8xf32>
    %c0_162 = arith.constant 0 : index
    %c72_163 = arith.constant 72 : index
    %258 = vector.load %arg23[%c0_162, %c72_163] : memref<5x96xf32, #tpu.memory_space<vmem>>, vector<5x8xf32>
    %cst_164 = arith.constant dense<0.000000e+00> : vector<5x5xf32>
    %259 = tpu.matmul %256, %257, %cst_164 {dimension_numbers = #tpu.dot_dimension_numbers<[1], [1], [0], [0], [0, 0, 1, 0], [], []>} : vector<5x8xf32>, vector<5x8xf32>, vector<5x5xf32> -> vector<5x5xf32>
    %cst_165 = arith.constant 0.353553385 : f32
    %260 = vector.broadcast %cst_165 : f32 to vector<5x5xf32>
    %261 = arith.mulf %259, %260 : vector<5x5xf32>
    %cst_166 = arith.constant dense<0xFF800000> : vector<5xf32>
    %262 = vector.multi_reduction <maximumf>, %261, %cst_166 [1] : vector<5x5xf32> to vector<5xf32>
    %263 = vector.shape_cast %262 : vector<5xf32> to vector<5x1xf32>
    %264 = vector.broadcast %263 : vector<5x1xf32> to vector<5x5xf32>
    %265 = arith.subf %261, %264 : vector<5x5xf32>
    %266 = math.exp %265 : vector<5x5xf32>
    %cst_167 = arith.constant dense<0.000000e+00> : vector<5xf32>
    %267 = vector.multi_reduction <add>, %266, %cst_167 [1] : vector<5x5xf32> to vector<5xf32>
    %268 = vector.shape_cast %267 : vector<5xf32> to vector<5x1xf32>
    %269 = vector.broadcast %268 : vector<5x1xf32> to vector<5x5xf32>
    %270 = arith.divf %266, %269 : vector<5x5xf32>
    %c0_168 = arith.constant 0 : index
    %c5 = arith.constant 5 : index
    %c0_169 = arith.constant 0 : index
    %c0_170 = arith.constant 0 : index
    %271 = vector.load %arg21[%c0_168, %c5, %c0_169, %c0_170] : memref<1x8x5x5xf32, #tpu.memory_space<vmem>>, vector<1x1x5x5xf32>
    %272 = vector.shape_cast %271 : vector<1x1x5x5xf32> to vector<5x5xf32>
    %273 = vector.shape_cast %270 : vector<5x5xf32> to vector<1x1x5x5xf32>
    tpu.vector_store %arg21[%c0_168, %c5, %c0_169, %c0_170], %273 {strides = array<i32>} : memref<1x8x5x5xf32, #tpu.memory_space<vmem>>, vector<1x1x5x5xf32>,
    %274 = arith.addf %253, %270 : vector<5x5xf32>
    %cst_171 = arith.constant dense<0.000000e+00> : vector<5x8xf32>
    %275 = tpu.matmul %270, %258, %cst_171 {dimension_numbers = #tpu.dot_dimension_numbers<[1], [0], [0], [1], [0, 0, 1, 1], [], []>} : vector<5x5xf32>, vector<5x8xf32>, vector<5x8xf32> -> vector<5x8xf32>
    %c0_172 = arith.constant 0 : index
    %c8_173 = arith.constant 8 : index
    %276 = vector.load %arg24[%c0_172, %c8_173] : memref<5x32xf32, #tpu.memory_space<vmem>>, vector<5x8xf32>
    tpu.vector_store %arg24[%c0_172, %c8_173], %275 {strides = array<i32>} : memref<5x32xf32, #tpu.memory_space<vmem>>, vector<5x8xf32>,
    %c0_174 = arith.constant 0 : index
    %c16_175 = arith.constant 16 : index
    %277 = vector.load %arg23[%c0_174, %c16_175] : memref<5x96xf32, #tpu.memory_space<vmem>>, vector<5x8xf32>
    %c0_176 = arith.constant 0 : index
    %c48_177 = arith.constant 48 : index
    %278 = vector.load %arg23[%c0_176, %c48_177] : memref<5x96xf32, #tpu.memory_space<vmem>>, vector<5x8xf32>
    %c0_178 = arith.constant 0 : index
    %c80_179 = arith.constant 80 : index
    %279 = vector.load %arg23[%c0_178, %c80_179] : memref<5x96xf32, #tpu.memory_space<vmem>>, vector<5x8xf32>
    %cst_180 = arith.constant dense<0.000000e+00> : vector<5x5xf32>
    %280 = tpu.matmul %277, %278, %cst_180 {dimension_numbers = #tpu.dot_dimension_numbers<[1], [1], [0], [0], [0, 0, 1, 0], [], []>} : vector<5x8xf32>, vector<5x8xf32>, vector<5x5xf32> -> vector<5x5xf32>
    %cst_181 = arith.constant 0.353553385 : f32
    %281 = vector.broadcast %cst_181 : f32 to vector<5x5xf32>
    %282 = arith.mulf %280, %281 : vector<5x5xf32>
    %cst_182 = arith.constant dense<0xFF800000> : vector<5xf32>
    %283 = vector.multi_reduction <maximumf>, %282, %cst_182 [1] : vector<5x5xf32> to vector<5xf32>
    %284 = vector.shape_cast %283 : vector<5xf32> to vector<5x1xf32>
    %285 = vector.broadcast %284 : vector<5x1xf32> to vector<5x5xf32>
    %286 = arith.subf %282, %285 : vector<5x5xf32>
    %287 = math.exp %286 : vector<5x5xf32>
    %cst_183 = arith.constant dense<0.000000e+00> : vector<5xf32>
    %288 = vector.multi_reduction <add>, %287, %cst_183 [1] : vector<5x5xf32> to vector<5xf32>
    %289 = vector.shape_cast %288 : vector<5xf32> to vector<5x1xf32>
    %290 = vector.broadcast %289 : vector<5x1xf32> to vector<5x5xf32>
    %291 = arith.divf %287, %290 : vector<5x5xf32>
    %c0_184 = arith.constant 0 : index
    %c6 = arith.constant 6 : index
    %c0_185 = arith.constant 0 : index
    %c0_186 = arith.constant 0 : index
    %292 = vector.load %arg21[%c0_184, %c6, %c0_185, %c0_186] : memref<1x8x5x5xf32, #tpu.memory_space<vmem>>, vector<1x1x5x5xf32>
    %293 = vector.shape_cast %292 : vector<1x1x5x5xf32> to vector<5x5xf32>
    %294 = vector.shape_cast %291 : vector<5x5xf32> to vector<1x1x5x5xf32>
    tpu.vector_store %arg21[%c0_184, %c6, %c0_185, %c0_186], %294 {strides = array<i32>} : memref<1x8x5x5xf32, #tpu.memory_space<vmem>>, vector<1x1x5x5xf32>,
    %295 = arith.addf %274, %291 : vector<5x5xf32>
    %cst_187 = arith.constant dense<0.000000e+00> : vector<5x8xf32>
    %296 = tpu.matmul %291, %279, %cst_187 {dimension_numbers = #tpu.dot_dimension_numbers<[1], [0], [0], [1], [0, 0, 1, 1], [], []>} : vector<5x5xf32>, vector<5x8xf32>, vector<5x8xf32> -> vector<5x8xf32>
    %c0_188 = arith.constant 0 : index
    %c16_189 = arith.constant 16 : index
    %297 = vector.load %arg24[%c0_188, %c16_189] : memref<5x32xf32, #tpu.memory_space<vmem>>, vector<5x8xf32>
    tpu.vector_store %arg24[%c0_188, %c16_189], %296 {strides = array<i32>} : memref<5x32xf32, #tpu.memory_space<vmem>>, vector<5x8xf32>,
    %c0_190 = arith.constant 0 : index
    %c24_191 = arith.constant 24 : index
    %298 = vector.load %arg23[%c0_190, %c24_191] : memref<5x96xf32, #tpu.memory_space<vmem>>, vector<5x8xf32>
    %c0_192 = arith.constant 0 : index
    %c56_193 = arith.constant 56 : index
    %299 = vector.load %arg23[%c0_192, %c56_193] : memref<5x96xf32, #tpu.memory_space<vmem>>, vector<5x8xf32>
    %c0_194 = arith.constant 0 : index
    %c88_195 = arith.constant 88 : index
    %300 = vector.load %arg23[%c0_194, %c88_195] : memref<5x96xf32, #tpu.memory_space<vmem>>, vector<5x8xf32>
    %cst_196 = arith.constant dense<0.000000e+00> : vector<5x5xf32>
    %301 = tpu.matmul %298, %299, %cst_196 {dimension_numbers = #tpu.dot_dimension_numbers<[1], [1], [0], [0], [0, 0, 1, 0], [], []>} : vector<5x8xf32>, vector<5x8xf32>, vector<5x5xf32> -> vector<5x5xf32>
    %cst_197 = arith.constant 0.353553385 : f32
    %302 = vector.broadcast %cst_197 : f32 to vector<5x5xf32>
    %303 = arith.mulf %301, %302 : vector<5x5xf32>
    %cst_198 = arith.constant dense<0xFF800000> : vector<5xf32>
    %304 = vector.multi_reduction <maximumf>, %303, %cst_198 [1] : vector<5x5xf32> to vector<5xf32>
    %305 = vector.shape_cast %304 : vector<5xf32> to vector<5x1xf32>
    %306 = vector.broadcast %305 : vector<5x1xf32> to vector<5x5xf32>
    %307 = arith.subf %303, %306 : vector<5x5xf32>
    %308 = math.exp %307 : vector<5x5xf32>
    %cst_199 = arith.constant dense<0.000000e+00> : vector<5xf32>
    %309 = vector.multi_reduction <add>, %308, %cst_199 [1] : vector<5x5xf32> to vector<5xf32>
    %310 = vector.shape_cast %309 : vector<5xf32> to vector<5x1xf32>
    %311 = vector.broadcast %310 : vector<5x1xf32> to vector<5x5xf32>
    %312 = arith.divf %308, %311 : vector<5x5xf32>
    %c0_200 = arith.constant 0 : index
    %c7 = arith.constant 7 : index
    %c0_201 = arith.constant 0 : index
    %c0_202 = arith.constant 0 : index
    %313 = vector.load %arg21[%c0_200, %c7, %c0_201, %c0_202] : memref<1x8x5x5xf32, #tpu.memory_space<vmem>>, vector<1x1x5x5xf32>
    %314 = vector.shape_cast %313 : vector<1x1x5x5xf32> to vector<5x5xf32>
    %315 = vector.shape_cast %312 : vector<5x5xf32> to vector<1x1x5x5xf32>
    tpu.vector_store %arg21[%c0_200, %c7, %c0_201, %c0_202], %315 {strides = array<i32>} : memref<1x8x5x5xf32, #tpu.memory_space<vmem>>, vector<1x1x5x5xf32>,
    %316 = arith.addf %295, %312 : vector<5x5xf32>
    %cst_203 = arith.constant dense<0.000000e+00> : vector<5x8xf32>
    %317 = tpu.matmul %312, %300, %cst_203 {dimension_numbers = #tpu.dot_dimension_numbers<[1], [0], [0], [1], [0, 0, 1, 1], [], []>} : vector<5x5xf32>, vector<5x8xf32>, vector<5x8xf32> -> vector<5x8xf32>
    %c0_204 = arith.constant 0 : index
    %c24_205 = arith.constant 24 : index
    %318 = vector.load %arg24[%c0_204, %c24_205] : memref<5x32xf32, #tpu.memory_space<vmem>>, vector<5x8xf32>
    tpu.vector_store %arg24[%c0_204, %c24_205], %317 {strides = array<i32>} : memref<5x32xf32, #tpu.memory_space<vmem>>, vector<5x8xf32>,
    %c0_206 = arith.constant 0 : index
    %c0_207 = arith.constant 0 : index
    %319 = vector.load %arg24[%c0_206, %c0_207] : memref<5x32xf32, #tpu.memory_space<vmem>>, vector<5x32xf32>
    %c1_208 = arith.constant 1 : index
    %c0_209 = arith.constant 0 : index
    %c0_210 = arith.constant 0 : index
    %320 = vector.load %arg8[%c1_208, %c0_209, %c0_210] : memref<2x32x32xf32, #tpu.memory_space<vmem>>, vector<1x32x32xf32>
    %321 = vector.shape_cast %320 : vector<1x32x32xf32> to vector<32x32xf32>
    %cst_211 = arith.constant dense<0.000000e+00> : vector<5x32xf32>
    %322 = tpu.matmul %319, %321, %cst_211 {dimension_numbers = #tpu.dot_dimension_numbers<[1], [0], [0], [1], [0, 0, 1, 1], [], []>} : vector<5x32xf32>, vector<32x32xf32>, vector<5x32xf32> -> vector<5x32xf32>
    %c1_212 = arith.constant 1 : index
    %c0_213 = arith.constant 0 : index
    %c0_214 = arith.constant 0 : index
    %323 = vector.load %arg9[%c1_212, %c0_213, %c0_214] : memref<2x1x32xf32, #tpu.memory_space<vmem>>, vector<1x1x32xf32>
    %324 = vector.shape_cast %323 : vector<1x1x32xf32> to vector<1x32xf32>
    %325 = vector.broadcast %324 : vector<1x32xf32> to vector<5x32xf32>
    %326 = arith.addf %322, %325 : vector<5x32xf32>
    %327 = arith.addf %192, %326 : vector<5x32xf32>
    %c1_215 = arith.constant 1 : index
    %c0_216 = arith.constant 0 : index
    %c0_217 = arith.constant 0 : index
    %328 = vector.load %arg10[%c1_215, %c0_216, %c0_217] : memref<2x1x32xf32, #tpu.memory_space<vmem>>, vector<1x1x32xf32>
    %329 = vector.shape_cast %328 : vector<1x1x32xf32> to vector<1x32xf32>
    %c1_218 = arith.constant 1 : index
    %c0_219 = arith.constant 0 : index
    %c0_220 = arith.constant 0 : index
    %330 = vector.load %arg11[%c1_218, %c0_219, %c0_220] : memref<2x1x32xf32, #tpu.memory_space<vmem>>, vector<1x1x32xf32>
    %331 = vector.shape_cast %330 : vector<1x1x32xf32> to vector<1x32xf32>
    %cst_221 = arith.constant dense<0.000000e+00> : vector<5xf32>
    %332 = vector.multi_reduction <add>, %327, %cst_221 [1] : vector<5x32xf32> to vector<5xf32>
    %333 = vector.shape_cast %332 : vector<5xf32> to vector<5x1xf32>
    %cst_222 = arith.constant 3.200000e+01 : f32
    %334 = vector.broadcast %cst_222 : f32 to vector<5x1xf32>
    %335 = arith.divf %333, %334 : vector<5x1xf32>
    %336 = vector.broadcast %335 : vector<5x1xf32> to vector<5x32xf32>
    %337 = arith.subf %327, %336 : vector<5x32xf32>
    %338 = arith.mulf %337, %337 : vector<5x32xf32>
    %cst_223 = arith.constant dense<0.000000e+00> : vector<5xf32>
    %339 = vector.multi_reduction <add>, %338, %cst_223 [1] : vector<5x32xf32> to vector<5xf32>
    %340 = vector.shape_cast %339 : vector<5xf32> to vector<5x1xf32>
    %cst_224 = arith.constant 3.200000e+01 : f32
    %341 = vector.broadcast %cst_224 : f32 to vector<5x1xf32>
    %342 = arith.divf %340, %341 : vector<5x1xf32>
    %343 = vector.broadcast %335 : vector<5x1xf32> to vector<5x32xf32>
    %344 = arith.subf %327, %343 : vector<5x32xf32>
    %cst_225 = arith.constant 9.99999997E-7 : f32
    %345 = vector.broadcast %cst_225 : f32 to vector<5x1xf32>
    %346 = arith.addf %342, %345 : vector<5x1xf32>
    %347 = math.rsqrt %346 : vector<5x1xf32>
    %348 = vector.broadcast %347 : vector<5x1xf32> to vector<5x32xf32>
    %349 = arith.mulf %344, %348 : vector<5x32xf32>
    %350 = vector.broadcast %329 : vector<1x32xf32> to vector<5x32xf32>
    %351 = arith.mulf %349, %350 : vector<5x32xf32>
    %352 = vector.broadcast %331 : vector<1x32xf32> to vector<5x32xf32>
    %353 = arith.addf %351, %352 : vector<5x32xf32>
    %c1_226 = arith.constant 1 : index
    %c0_227 = arith.constant 0 : index
    %c0_228 = arith.constant 0 : index
    %354 = vector.load %arg12[%c1_226, %c0_227, %c0_228] : memref<2x32x64xf32, #tpu.memory_space<vmem>>, vector<1x32x64xf32>
    %355 = vector.shape_cast %354 : vector<1x32x64xf32> to vector<32x64xf32>
    %cst_229 = arith.constant dense<0.000000e+00> : vector<5x64xf32>
    %356 = tpu.matmul %353, %355, %cst_229 {dimension_numbers = #tpu.dot_dimension_numbers<[1], [0], [0], [1], [0, 0, 1, 1], [], []>} : vector<5x32xf32>, vector<32x64xf32>, vector<5x64xf32> -> vector<5x64xf32>
    %c1_230 = arith.constant 1 : index
    %c0_231 = arith.constant 0 : index
    %c0_232 = arith.constant 0 : index
    %357 = vector.load %arg13[%c1_230, %c0_231, %c0_232] : memref<2x1x64xf32, #tpu.memory_space<vmem>>, vector<1x1x64xf32>
    %358 = vector.shape_cast %357 : vector<1x1x64xf32> to vector<1x64xf32>
    %359 = vector.broadcast %358 : vector<1x64xf32> to vector<5x64xf32>
    %360 = arith.addf %356, %359 : vector<5x64xf32>
    %361 = arith.mulf %360, %360 : vector<5x64xf32>
    %362 = arith.mulf %360, %361 : vector<5x64xf32>
    %cst_233 = arith.constant 4.471500e-02 : f32
    %363 = vector.broadcast %cst_233 : f32 to vector<5x64xf32>
    %364 = arith.mulf %363, %362 : vector<5x64xf32>
    %365 = arith.addf %360, %364 : vector<5x64xf32>
    %cst_234 = arith.constant 0.797884583 : f32
    %366 = vector.broadcast %cst_234 : f32 to vector<5x64xf32>
    %367 = arith.mulf %366, %365 : vector<5x64xf32>
    %368 = math.tanh %367 : vector<5x64xf32>
    %cst_235 = arith.constant 1.000000e+00 : f32
    %369 = vector.broadcast %cst_235 : f32 to vector<5x64xf32>
    %370 = arith.addf %369, %368 : vector<5x64xf32>
    %cst_236 = arith.constant 5.000000e-01 : f32
    %371 = vector.broadcast %cst_236 : f32 to vector<5x64xf32>
    %372 = arith.mulf %371, %370 : vector<5x64xf32>
    %373 = arith.mulf %360, %372 : vector<5x64xf32>
    %c1_237 = arith.constant 1 : index
    %c0_238 = arith.constant 0 : index
    %c0_239 = arith.constant 0 : index
    %374 = vector.load %arg14[%c1_237, %c0_238, %c0_239] : memref<2x64x32xf32, #tpu.memory_space<vmem>>, vector<1x64x32xf32>
    %375 = vector.shape_cast %374 : vector<1x64x32xf32> to vector<64x32xf32>
    %cst_240 = arith.constant dense<0.000000e+00> : vector<5x32xf32>
    %376 = tpu.matmul %373, %375, %cst_240 {dimension_numbers = #tpu.dot_dimension_numbers<[1], [0], [0], [1], [0, 0, 1, 1], [], []>} : vector<5x64xf32>, vector<64x32xf32>, vector<5x32xf32> -> vector<5x32xf32>
    %c1_241 = arith.constant 1 : index
    %c0_242 = arith.constant 0 : index
    %c0_243 = arith.constant 0 : index
    %377 = vector.load %arg15[%c1_241, %c0_242, %c0_243] : memref<2x1x32xf32, #tpu.memory_space<vmem>>, vector<1x1x32xf32>
    %378 = vector.shape_cast %377 : vector<1x1x32xf32> to vector<1x32xf32>
    %379 = vector.broadcast %378 : vector<1x32xf32> to vector<5x32xf32>
    %380 = arith.addf %376, %379 : vector<5x32xf32>
    %381 = arith.addf %327, %380 : vector<5x32xf32>
    %cst_244 = arith.constant 2.500000e-01 : f32
    %382 = vector.broadcast %cst_244 : f32 to vector<5x5xf32>
    %383 = arith.mulf %316, %382 : vector<5x5xf32>
    %384 = arith.addf %383, %10 : vector<5x5xf32>
    %cst_245 = arith.constant dense<0.000000e+00> : vector<5xf32>
    %385 = vector.multi_reduction <add>, %384, %cst_245 [1] : vector<5x5xf32> to vector<5xf32>
    %386 = vector.shape_cast %385 : vector<5xf32> to vector<5x1xf32>
    %387 = vector.broadcast %386 : vector<5x1xf32> to vector<5x5xf32>
    %388 = arith.divf %384, %387 : vector<5x5xf32>
    %cst_246 = arith.constant dense<0.000000e+00> : vector<5x5xf32>
    %389 = tpu.matmul %388, %199, %cst_246 {dimension_numbers = #tpu.dot_dimension_numbers<[1], [0], [0], [1], [0, 0, 1, 1], [], []>} : vector<5x5xf32>, vector<5x5xf32>, vector<5x5xf32> -> vector<5x5xf32>
    %c0_247 = arith.constant 0 : index
    %c0_248 = arith.constant 0 : index
    %390 = vector.load %arg16[%c0_247, %c0_248] : memref<1x32xf32, #tpu.memory_space<vmem>>, vector<1x32xf32>
    %c0_249 = arith.constant 0 : index
    %c0_250 = arith.constant 0 : index
    %391 = vector.load %arg17[%c0_249, %c0_250] : memref<1x32xf32, #tpu.memory_space<vmem>>, vector<1x32xf32>
    %cst_251 = arith.constant dense<0.000000e+00> : vector<5xf32>
    %392 = vector.multi_reduction <add>, %381, %cst_251 [1] : vector<5x32xf32> to vector<5xf32>
    %393 = vector.shape_cast %392 : vector<5xf32> to vector<5x1xf32>
    %cst_252 = arith.constant 3.200000e+01 : f32
    %394 = vector.broadcast %cst_252 : f32 to vector<5x1xf32>
    %395 = arith.divf %393, %394 : vector<5x1xf32>
    %396 = vector.broadcast %395 : vector<5x1xf32> to vector<5x32xf32>
    %397 = arith.subf %381, %396 : vector<5x32xf32>
    %398 = arith.mulf %397, %397 : vector<5x32xf32>
    %cst_253 = arith.constant dense<0.000000e+00> : vector<5xf32>
    %399 = vector.multi_reduction <add>, %398, %cst_253 [1] : vector<5x32xf32> to vector<5xf32>
    %400 = vector.shape_cast %399 : vector<5xf32> to vector<5x1xf32>
    %cst_254 = arith.constant 3.200000e+01 : f32
    %401 = vector.broadcast %cst_254 : f32 to vector<5x1xf32>
    %402 = arith.divf %400, %401 : vector<5x1xf32>
    %403 = vector.broadcast %395 : vector<5x1xf32> to vector<5x32xf32>
    %404 = arith.subf %381, %403 : vector<5x32xf32>
    %cst_255 = arith.constant 9.99999997E-7 : f32
    %405 = vector.broadcast %cst_255 : f32 to vector<5x1xf32>
    %406 = arith.addf %402, %405 : vector<5x1xf32>
    %407 = math.rsqrt %406 : vector<5x1xf32>
    %408 = vector.broadcast %407 : vector<5x1xf32> to vector<5x32xf32>
    %409 = arith.mulf %404, %408 : vector<5x32xf32>
    %410 = vector.broadcast %390 : vector<1x32xf32> to vector<5x32xf32>
    %411 = arith.mulf %409, %410 : vector<5x32xf32>
    %412 = vector.broadcast %391 : vector<1x32xf32> to vector<5x32xf32>
    %413 = arith.addf %411, %412 : vector<5x32xf32>
    %414 = vector.extract_strided_slice %413 {offsets = [0, 0], sizes = [1, 32], strides = [1, 1]} : vector<5x32xf32> to vector<1x32xf32>
    %c0_256 = arith.constant 0 : index
    %c0_257 = arith.constant 0 : index
    %415 = vector.load %arg18[%c0_256, %c0_257] : memref<32x10xf32, #tpu.memory_space<vmem>>, vector<32x10xf32>
    %cst_258 = arith.constant dense<0.000000e+00> : vector<1x10xf32>
    %416 = tpu.matmul %414, %415, %cst_258 {dimension_numbers = #tpu.dot_dimension_numbers<[1], [0], [0], [1], [0, 0, 1, 1], [], []>} : vector<1x32xf32>, vector<32x10xf32>, vector<1x10xf32> -> vector<1x10xf32>
    %c0_259 = arith.constant 0 : index
    %c0_260 = arith.constant 0 : index
    %417 = vector.load %arg19[%c0_259, %c0_260] : memref<1x10xf32, #tpu.memory_space<vmem>>, vector<1x10xf32>
    %418 = arith.addf %416, %417 : vector<1x10xf32>
    %c0_261 = arith.constant 0 : index
    %c0_262 = arith.constant 0 : index
    %c0_263 = arith.constant 0 : index
    %419 = vector.load %arg20[%c0_261, %c0_262, %c0_263] : memref<1x1x10xf32, #tpu.memory_space<vmem>>, vector<1x1x10xf32>
    %420 = vector.shape_cast %419 : vector<1x1x10xf32> to vector<1x10xf32>
    %421 = vector.shape_cast %418 : vector<1x10xf32> to vector<1x1x10xf32>
    tpu.vector_store %arg20[%c0_261, %c0_262, %c0_263], %421 {strides = array<i32>} : memref<1x1x10xf32, #tpu.memory_space<vmem>>, vector<1x1x10xf32>,
    %c0_264 = arith.constant 0 : index
    %c0_265 = arith.constant 0 : index
    %c0_266 = arith.constant 0 : index
    %422 = vector.load %arg22[%c0_264, %c0_265, %c0_266] : memref<1x5x5xf32, #tpu.memory_space<vmem>>, vector<1x5x5xf32>
    %423 = vector.shape_cast %422 : vector<1x5x5xf32> to vector<5x5xf32>
    %424 = vector.shape_cast %389 : vector<5x5xf32> to vector<1x5x5xf32>
    tpu.vector_store %arg22[%c0_264, %c0_265, %c0_266], %424 {strides = array<i32>} : memref<1x5x5xf32, #tpu.memory_space<vmem>>, vector<1x5x5xf32>,
    return
  }
  func.func @transform_0(%arg0: i32) -> (i32, i32, i32) {
    %c0_i32 = arith.constant 0 : i32
    %c0_i32_0 = arith.constant 0 : i32
    %c0_i32_1 = arith.constant 0 : i32
    return %arg0, %c0_i32, %c0_i32_0 : i32, i32, i32
  }
  func.func @transform_1(%arg0: i32) -> (i32, i32) {
    %c0_i32 = arith.constant 0 : i32
    %c0_i32_0 = arith.constant 0 : i32
    %c0_i32_1 = arith.constant 0 : i32
    return %c0_i32, %c0_i32_0 : i32, i32
  }
  func.func @transform_2(%arg0: i32) -> (i32, i32) {
    %c0_i32 = arith.constant 0 : i32
    %c0_i32_0 = arith.constant 0 : i32
    %c0_i32_1 = arith.constant 0 : i32
    return %c0_i32, %c0_i32_0 : i32, i32
  }
  func.func @transform_3(%arg0: i32) -> (i32, i32, i32) {
    %c0_i32 = arith.constant 0 : i32
    %c0_i32_0 = arith.constant 0 : i32
    %c0_i32_1 = arith.constant 0 : i32
    %c0_i32_2 = arith.constant 0 : i32
    return %c0_i32, %c0_i32_0, %c0_i32_1 : i32, i32, i32
  }
  func.func @transform_4(%arg0: i32) -> (i32, i32, i32) {
    %c0_i32 = arith.constant 0 : i32
    %c0_i32_0 = arith.constant 0 : i32
    %c0_i32_1 = arith.constant 0 : i32
    %c0_i32_2 = arith.constant 0 : i32
    return %c0_i32, %c0_i32_0, %c0_i32_1 : i32, i32, i32
  }
  func.func @transform_5(%arg0: i32) -> (i32, i32, i32) {
    %c0_i32 = arith.constant 0 : i32
    %c0_i32_0 = arith.constant 0 : i32
    %c0_i32_1 = arith.constant 0 : i32
    %c0_i32_2 = arith.constant 0 : i32
    return %c0_i32, %c0_i32_0, %c0_i32_1 : i32, i32, i32
  }
  func.func @transform_6(%arg0: i32) -> (i32, i32, i32) {
    %c0_i32 = arith.constant 0 : i32
    %c0_i32_0 = arith.constant 0 : i32
    %c0_i32_1 = arith.constant 0 : i32
    %c0_i32_2 = arith.constant 0 : i32
    return %c0_i32, %c0_i32_0, %c0_i32_1 : i32, i32, i32
  }
  func.func @transform_7(%arg0: i32) -> (i32, i32, i32) {
    %c0_i32 = arith.constant 0 : i32
    %c0_i32_0 = arith.constant 0 : i32
    %c0_i32_1 = arith.constant 0 : i32
    %c0_i32_2 = arith.constant 0 : i32
    return %c0_i32, %c0_i32_0, %c0_i32_1 : i32, i32, i32
  }
  func.func @transform_8(%arg0: i32) -> (i32, i32, i32) {
    %c0_i32 = arith.constant 0 : i32
    %c0_i32_0 = arith.constant 0 : i32
    %c0_i32_1 = arith.constant 0 : i32
    %c0_i32_2 = arith.constant 0 : i32
    return %c0_i32, %c0_i32_0, %c0_i32_1 : i32, i32, i32
  }
  func.func @transform_9(%arg0: i32) -> (i32, i32, i32) {
    %c0_i32 = arith.constant 0 : i32
    %c0_i32_0 = arith.constant 0 : i32
    %c0_i32_1 = arith.constant 0 : i32
    %c0_i32_2 = arith.constant 0 : i32
    return %c0_i32, %c0_i32_0, %c0_i32_1 : i32, i32, i32
  }
  func.func @transform_10(%arg0: i32) -> (i32, i32, i32) {
    %c0_i32 = arith.constant 0 : i32
    %c0_i32_0 = arith.constant 0 : i32
    %c0_i32_1 = arith.constant 0 : i32
    %c0_i32_2 = arith.constant 0 : i32
    return %c0_i32, %c0_i32_0, %c0_i32_1 : i32, i32, i32
  }
  func.func @transform_11(%arg0: i32) -> (i32, i32, i32) {
    %c0_i32 = arith.constant 0 : i32
    %c0_i32_0 = arith.constant 0 : i32
    %c0_i32_1 = arith.constant 0 : i32
    %c0_i32_2 = arith.constant 0 : i32
    return %c0_i32, %c0_i32_0, %c0_i32_1 : i32, i32, i32
  }
  func.func @transform_12(%arg0: i32) -> (i32, i32, i32) {
    %c0_i32 = arith.constant 0 : i32
    %c0_i32_0 = arith.constant 0 : i32
    %c0_i32_1 = arith.constant 0 : i32
    %c0_i32_2 = arith.constant 0 : i32
    return %c0_i32, %c0_i32_0, %c0_i32_1 : i32, i32, i32
  }
  func.func @transform_13(%arg0: i32) -> (i32, i32, i32) {
    %c0_i32 = arith.constant 0 : i32
    %c0_i32_0 = arith.constant 0 : i32
    %c0_i32_1 = arith.constant 0 : i32
    %c0_i32_2 = arith.constant 0 : i32
    return %c0_i32, %c0_i32_0, %c0_i32_1 : i32, i32, i32
  }
  func.func @transform_14(%arg0: i32) -> (i32, i32, i32) {
    %c0_i32 = arith.constant 0 : i32
    %c0_i32_0 = arith.constant 0 : i32
    %c0_i32_1 = arith.constant 0 : i32
    %c0_i32_2 = arith.constant 0 : i32
    return %c0_i32, %c0_i32_0, %c0_i32_1 : i32, i32, i32
  }
  func.func @transform_15(%arg0: i32) -> (i32, i32) {
    %c0_i32 = arith.constant 0 : i32
    %c0_i32_0 = arith.constant 0 : i32
    %c0_i32_1 = arith.constant 0 : i32
    return %c0_i32, %c0_i32_0 : i32, i32
  }
  func.func @transform_16(%arg0: i32) -> (i32, i32) {
    %c0_i32 = arith.constant 0 : i32
    %c0_i32_0 = arith.constant 0 : i32
    %c0_i32_1 = arith.constant 0 : i32
    return %c0_i32, %c0_i32_0 : i32, i32
  }
  func.func @transform_17(%arg0: i32) -> (i32, i32) {
    %c0_i32 = arith.constant 0 : i32
    %c0_i32_0 = arith.constant 0 : i32
    %c0_i32_1 = arith.constant 0 : i32
    return %c0_i32, %c0_i32_0 : i32, i32
  }
  func.func @transform_18(%arg0: i32) -> (i32, i32) {
    %c0_i32 = arith.constant 0 : i32
    %c0_i32_0 = arith.constant 0 : i32
    %c0_i32_1 = arith.constant 0 : i32
    return %c0_i32, %c0_i32_0 : i32, i32
  }
  func.func @transform_19(%arg0: i32) -> (i32, i32, i32) {
    %c0_i32 = arith.constant 0 : i32
    %c0_i32_0 = arith.constant 0 : i32
    %c0_i32_1 = arith.constant 0 : i32
    return %arg0, %c0_i32, %c0_i32_0 : i32, i32, i32
  }
  func.func @transform_20(%arg0: i32) -> (i32, i32, i32, i32) {
    %c0_i32 = arith.constant 0 : i32
    %c0_i32_0 = arith.constant 0 : i32
    %c0_i32_1 = arith.constant 0 : i32
    %c0_i32_2 = arith.constant 0 : i32
    return %arg0, %c0_i32, %c0_i32_0, %c0_i32_1 : i32, i32, i32, i32
  }
  func.func @transform_21(%arg0: i32) -> (i32, i32, i32) {
    %c0_i32 = arith.constant 0 : i32
    %c0_i32_0 = arith.constant 0 : i32
    %c0_i32_1 = arith.constant 0 : i32
    return %arg0, %c0_i32, %c0_i32_0 : i32, i32, i32
  }
}

module attributes {stable_mosaic.version = 11 : i64} {
  func.func @_fused_vit_kernel(%arg0: i32, %arg1: memref<1x5x768xf32, #tpu.memory_space<vmem>>, %arg2: memref<5x32xf32, #tpu.memory_space<vmem>>, %arg3: memref<768x32xf32, #tpu.memory_space<vmem>>, %arg4: memref<2x1x32xf32, #tpu.memory_space<vmem>>, %arg5: memref<2x1x32xf32, #tpu.memory_space<vmem>>, %arg6: memref<2x32x96xf32, #tpu.memory_space<vmem>>, %arg7: memref<2x1x96xf32, #tpu.memory_space<vmem>>, %arg8: memref<2x32x32xf32, #tpu.memory_space<vmem>>, %arg9: memref<2x1x32xf32, #tpu.memory_space<vmem>>, %arg10: memref<2x1x32xf32, #tpu.memory_space<vmem>>, %arg11: memref<2x1x32xf32, #tpu.memory_space<vmem>>, %arg12: memref<2x32x64xf32, #tpu.memory_space<vmem>>, %arg13: memref<2x1x64xf32, #tpu.memory_space<vmem>>, %arg14: memref<2x64x32xf32, #tpu.memory_space<vmem>>, %arg15: memref<2x1x32xf32, #tpu.memory_space<vmem>>, %arg16: memref<1x32xf32, #tpu.memory_space<vmem>>, %arg17: memref<1x32xf32, #tpu.memory_space<vmem>>, %arg18: memref<32x10xf32, #tpu.memory_space<vmem>>, %arg19: memref<1x10xf32, #tpu.memory_space<vmem>>, %arg20: memref<1x1x10xf32, #tpu.memory_space<vmem>>, %arg21: memref<1x8x5x5xf32, #tpu.memory_space<vmem>>, %arg22: memref<1x5x5xf32, #tpu.memory_space<vmem>>, %arg23: memref<5x96xf32, #tpu.memory_space<vmem>>, %arg24: memref<5x32xf32, #tpu.memory_space<vmem>>) attributes {dimension_semantics = [#tpu.dimension_semantics<parallel>], iteration_bounds = array<i64: 2>, scalar_prefetch = 0 : i64, scratch_operands = 2 : i64, tpu.core_type = #tpu.core_type<tc>, window_params = [{transform_indices = @transform_0, window_bounds = array<i64: 1, 5, 768>}, {pipeline_mode = #tpu.pipeline_mode<synchronous>, transform_indices = @transform_1, window_bounds = array<i64: 5, 32>}, {pipeline_mode = #tpu.pipeline_mode<synchronous>, transform_indices = @transform_2, window_bounds = array<i64: 768, 32>}, {pipeline_mode = #tpu.pipeline_mode<synchronous>, transform_indices = @transform_3, window_bounds = array<i64: 2, 1, 32>}, {pipeline_mode = #tpu.pipeline_mode<synchronous>, transform_indices = @transform_4, window_bounds = array<i64: 2, 1, 32>}, {pipeline_mode = #tpu.pipeline_mode<synchronous>, transform_indices = @transform_5, window_bounds = array<i64: 2, 32, 96>}, {pipeline_mode = #tpu.pipeline_mode<synchronous>, transform_indices = @transform_6, window_bounds = array<i64: 2, 1, 96>}, {pipeline_mode = #tpu.pipeline_mode<synchronous>, transform_indices = @transform_7, window_bounds = array<i64: 2, 32, 32>}, {pipeline_mode = #tpu.pipeline_mode<synchronous>, transform_indices = @transform_8, window_bounds = array<i64: 2, 1, 32>}, {pipeline_mode = #tpu.pipeline_mode<synchronous>, transform_indices = @transform_9, window_bounds = array<i64: 2, 1, 32>}, {pipeline_mode = #tpu.pipeline_mode<synchronous>, transform_indices = @transform_10, window_bounds = array<i64: 2, 1, 32>}, {pipeline_mode = #tpu.pipeline_mode<synchronous>, transform_indices = @transform_11, window_bounds = array<i64: 2, 32, 64>}, {pipeline_mode = #tpu.pipeline_mode<synchronous>, transform_indices = @transform_12, window_bounds = array<i64: 2, 1, 64>}, {pipeline_mode = #tpu.pipeline_mode<synchronous>, transform_indices = @transform_13, window_bounds = array<i64: 2, 64, 32>}, {pipeline_mode = #tpu.pipeline_mode<synchronous>, transform_indices = @transform_14, window_bounds = array<i64: 2, 1, 32>}, {pipeline_mode = #tpu.pipeline_mode<synchronous>, transform_indices = @transform_15, window_bounds = array<i64: 1, 32>}, {pipeline_mode = #tpu.pipeline_mode<synchronous>, transform_indices = @transform_16, window_bounds = array<i64: 1, 32>}, {pipeline_mode = #tpu.pipeline_mode<synchronous>, transform_indices = @transform_17, window_bounds = array<i64: 32, 10>}, {pipeline_mode = #tpu.pipeline_mode<synchronous>, transform_indices = @transform_18, window_bounds = array<i64: 1, 10>}, {transform_indices = @transform_19, window_bounds = array<i64: 1, 1, 10>}, {transform_indices = @transform_20, window_bounds = array<i64: 1, 8, 5, 5>}, {transform_indices = @transform_21, window_bounds = array<i64: 1, 5, 5>}]} {
    %c0 = arith.constant 0 : index
    %c0_0 = arith.constant 0 : index
    %c0_1 = arith.constant 0 : index
    %0 = vector.load %arg1[%c0, %c0_0, %c0_1] : memref<1x5x768xf32, #tpu.memory_space<vmem>>, vector<1x5x768xf32>
    %1 = vector.shape_cast %0 : vector<1x5x768xf32> to vector<5x768xf32>
    %c0_2 = arith.constant 0 : index
    %c0_3 = arith.constant 0 : index
    %2 = vector.load %arg3[%c0_2, %c0_3] : memref<768x32xf32, #tpu.memory_space<vmem>>, vector<768x32xf32>
    %cst = arith.constant dense<0.000000e+00> : vector<5x32xf32>
    %3 = tpu.matmul %1, %2, %cst {dimension_numbers = #tpu.dot_dimension_numbers<[1], [0], [0], [1], [0, 0, 1, 1], [], []>} : vector<5x768xf32>, vector<768x32xf32>, vector<5x32xf32> -> vector<5x32xf32>
    %c0_4 = arith.constant 0 : index
    %c0_5 = arith.constant 0 : index
    %4 = vector.load %arg2[%c0_4, %c0_5] : memref<5x32xf32, #tpu.memory_space<vmem>>, vector<5x32xf32>
    %5 = arith.addf %3, %4 : vector<5x32xf32>
    %6 = tpu.iota {dimensions = array<i32: 0>} : vector<5x5xi32>
    %7 = tpu.iota {dimensions = array<i32: 1>} : vector<5x5xi32>
    %8 = arith.cmpi eq, %6, %7 : vector<5x5xi32>
    %9 = arith.extui %8 : vector<5x5xi1> to vector<5x5xi32>
    %10 = arith.sitofp %9 : vector<5x5xi32> to vector<5x5xf32>
    %c0_6 = arith.constant 0 : index
    %c0_7 = arith.constant 0 : index
    %c0_8 = arith.constant 0 : index
    %11 = vector.load %arg4[%c0_6, %c0_7, %c0_8] : memref<2x1x32xf32, #tpu.memory_space<vmem>>, vector<1x1x32xf32>
    %12 = vector.shape_cast %11 : vector<1x1x32xf32> to vector<1x32xf32>
    %c0_9 = arith.constant 0 : index
    %c0_10 = arith.constant 0 : index
    %c0_11 = arith.constant 0 : index
    %13 = vector.load %arg5[%c0_9, %c0_10, %c0_11] : memref<2x1x32xf32, #tpu.memory_space<vmem>>, vector<1x1x32xf32>
    %14 = vector.shape_cast %13 : vector<1x1x32xf32> to vector<1x32xf32>
    %cst_12 = arith.constant dense<0.000000e+00> : vector<5xf32>
    %15 = vector.multi_reduction <add>, %5, %cst_12 [1] : vector<5x32xf32> to vector<5xf32>
    %16 = vector.shape_cast %15 : vector<5xf32> to vector<5x1xf32>
    %cst_13 = arith.constant 3.200000e+01 : f32
    %17 = vector.broadcast %cst_13 : f32 to vector<5x1xf32>
    %18 = arith.divf %16, %17 : vector<5x1xf32>
    %19 = vector.broadcast %18 : vector<5x1xf32> to vector<5x32xf32>
    %20 = arith.subf %5, %19 : vector<5x32xf32>
    %21 = arith.mulf %20, %20 : vector<5x32xf32>
    %cst_14 = arith.constant dense<0.000000e+00> : vector<5xf32>
    %22 = vector.multi_reduction <add>, %21, %cst_14 [1] : vector<5x32xf32> to vector<5xf32>
    %23 = vector.shape_cast %22 : vector<5xf32> to vector<5x1xf32>
    %cst_15 = arith.constant 3.200000e+01 : f32
    %24 = vector.broadcast %cst_15 : f32 to vector<5x1xf32>
    %25 = arith.divf %23, %24 : vector<5x1xf32>
    %26 = vector.broadcast %18 : vector<5x1xf32> to vector<5x32xf32>
    %27 = arith.subf %5, %26 : vector<5x32xf32>
    %cst_16 = arith.constant 9.99999997E-7 : f32
    %28 = vector.broadcast %cst_16 : f32 to vector<5x1xf32>
    %29 = arith.addf %25, %28 : vector<5x1xf32>
    %30 = math.rsqrt %29 : vector<5x1xf32>
    %31 = vector.broadcast %30 : vector<5x1xf32> to vector<5x32xf32>
    %32 = arith.mulf %27, %31 : vector<5x32xf32>
    %33 = vector.broadcast %12 : vector<1x32xf32> to vector<5x32xf32>
    %34 = arith.mulf %32, %33 : vector<5x32xf32>
    %35 = vector.broadcast %14 : vector<1x32xf32> to vector<5x32xf32>
    %36 = arith.addf %34, %35 : vector<5x32xf32>
    %c0_17 = arith.constant 0 : index
    %c0_18 = arith.constant 0 : index
    %c0_19 = arith.constant 0 : index
    %37 = vector.load %arg6[%c0_17, %c0_18, %c0_19] : memref<2x32x96xf32, #tpu.memory_space<vmem>>, vector<1x32x96xf32>
    %38 = vector.shape_cast %37 : vector<1x32x96xf32> to vector<32x96xf32>
    %cst_20 = arith.constant dense<0.000000e+00> : vector<5x96xf32>
    %39 = tpu.matmul %36, %38, %cst_20 {dimension_numbers = #tpu.dot_dimension_numbers<[1], [0], [0], [1], [0, 0, 1, 1], [], []>} : vector<5x32xf32>, vector<32x96xf32>, vector<5x96xf32> -> vector<5x96xf32>
    %c0_21 = arith.constant 0 : index
    %c0_22 = arith.constant 0 : index
    %c0_23 = arith.constant 0 : index
    %40 = vector.load %arg7[%c0_21, %c0_22, %c0_23] : memref<2x1x96xf32, #tpu.memory_space<vmem>>, vector<1x1x96xf32>
    %41 = vector.shape_cast %40 : vector<1x1x96xf32> to vector<1x96xf32>
    %42 = vector.broadcast %41 : vector<1x96xf32> to vector<5x96xf32>
    %43 = arith.addf %39, %42 : vector<5x96xf32>
    %c0_24 = arith.constant 0 : index
    %c0_25 = arith.constant 0 : index
    %44 = vector.load %arg23[%c0_24, %c0_25] : memref<5x96xf32, #tpu.memory_space<vmem>>, vector<5x96xf32>
    tpu.vector_store %arg23[%c0_24, %c0_25], %43 {strides = array<i32>} : memref<5x96xf32, #tpu.memory_space<vmem>>, vector<5x96xf32>,
    %cst_26 = arith.constant 0.000000e+00 : f32
    %45 = vector.broadcast %cst_26 : f32 to vector<5x5xf32>
    %c0_27 = arith.constant 0 : index
    %c0_28 = arith.constant 0 : index
    %46 = vector.load %arg23[%c0_27, %c0_28] : memref<5x96xf32, #tpu.memory_space<vmem>>, vector<5x8xf32>
    %c0_29 = arith.constant 0 : index
    %c32 = arith.constant 32 : index
    %47 = vector.load %arg23[%c0_29, %c32] : memref<5x96xf32, #tpu.memory_space<vmem>>, vector<5x8xf32>
    %c0_30 = arith.constant 0 : index
    %c64 = arith.constant 64 : index
    %48 = vector.load %arg23[%c0_30, %c64] : memref<5x96xf32, #tpu.memory_space<vmem>>, vector<5x8xf32>
    %cst_31 = arith.constant dense<0.000000e+00> : vector<5x5xf32>
    %49 = tpu.matmul %46, %47, %cst_31 {dimension_numbers = #tpu.dot_dimension_numbers<[1], [1], [0], [0], [0, 0, 1, 0], [], []>} : vector<5x8xf32>, vector<5x8xf32>, vector<5x5xf32> -> vector<5x5xf32>
    %cst_32 = arith.constant 0.353553385 : f32
    %50 = vector.broadcast %cst_32 : f32 to vector<5x5xf32>
    %51 = arith.mulf %49, %50 : vector<5x5xf32>
    %cst_33 = arith.constant dense<0xFF800000> : vector<5xf32>
    %52 = vector.multi_reduction <maximumf>, %51, %cst_33 [1] : vector<5x5xf32> to vector<5xf32>
    %53 = vector.shape_cast %52 : vector<5xf32> to vector<5x1xf32>
    %54 = vector.broadcast %53 : vector<5x1xf32> to vector<5x5xf32>
    %55 = arith.subf %51, %54 : vector<5x5xf32>
    %56 = math.exp %55 : vector<5x5xf32>
    %cst_34 = arith.constant dense<0.000000e+00> : vector<5xf32>
    %57 = vector.multi_reduction <add>, %56, %cst_34 [1] : vector<5x5xf32> to vector<5xf32>
    %58 = vector.shape_cast %57 : vector<5xf32> to vector<5x1xf32>
    %59 = vector.broadcast %58 : vector<5x1xf32> to vector<5x5xf32>
    %60 = arith.divf %56, %59 : vector<5x5xf32>
    %c0_35 = arith.constant 0 : index
    %c0_36 = arith.constant 0 : index
    %c0_37 = arith.constant 0 : index
    %c0_38 = arith.constant 0 : index
    %61 = vector.load %arg21[%c0_35, %c0_36, %c0_37, %c0_38] : memref<1x8x5x5xf32, #tpu.memory_space<vmem>>, vector<1x1x5x5xf32>
    %62 = vector.shape_cast %61 : vector<1x1x5x5xf32> to vector<5x5xf32>
    %63 = vector.shape_cast %60 : vector<5x5xf32> to vector<1x1x5x5xf32>
    tpu.vector_store %arg21[%c0_35, %c0_36, %c0_37, %c0_38], %63 {strides = array<i32>} : memref<1x8x5x5xf32, #tpu.memory_space<vmem>>, vector<1x1x5x5xf32>,
    %64 = arith.addf %45, %60 : vector<5x5xf32>
    %cst_39 = arith.constant dense<0.000000e+00> : vector<5x8xf32>
    %65 = tpu.matmul %60, %48, %cst_39 {dimension_numbers = #tpu.dot_dimension_numbers<[1], [0], [0], [1], [0, 0, 1, 1], [], []>} : vector<5x5xf32>, vector<5x8xf32>, vector<5x8xf32> -> vector<5x8xf32>
    %c0_40 = arith.constant 0 : index
    %c0_41 = arith.constant 0 : index
    %66 = vector.load %arg24[%c0_40, %c0_41] : memref<5x32xf32, #tpu.memory_space<vmem>>, vector<5x8xf32>
    tpu.vector_store %arg24[%c0_40, %c0_41], %65 {strides = array<i32>} : memref<5x32xf32, #tpu.memory_space<vmem>>, vector<5x8xf32>,
    %c0_42 = arith.constant 0 : index
    %c8 = arith.constant 8 : index
    %67 = vector.load %arg23[%c0_42, %c8] : memref<5x96xf32, #tpu.memory_space<vmem>>, vector<5x8xf32>
    %c0_43 = arith.constant 0 : index
    %c40 = arith.constant 40 : index
    %68 = vector.load %arg23[%c0_43, %c40] : memref<5x96xf32, #tpu.memory_space<vmem>>, vector<5x8xf32>
    %c0_44 = arith.constant 0 : index
    %c72 = arith.constant 72 : index
    %69 = vector.load %arg23[%c0_44, %c72] : memref<5x96xf32, #tpu.memory_space<vmem>>, vector<5x8xf32>
    %cst_45 = arith.constant dense<0.000000e+00> : vector<5x5xf32>
    %70 = tpu.matmul %67, %68, %cst_45 {dimension_numbers = #tpu.dot_dimension_numbers<[1], [1], [0], [0], [0, 0, 1, 0], [], []>} : vector<5x8xf32>, vector<5x8xf32>, vector<5x5xf32> -> vector<5x5xf32>
    %cst_46 = arith.constant 0.353553385 : f32
    %71 = vector.broadcast %cst_46 : f32 to vector<5x5xf32>
    %72 = arith.mulf %70, %71 : vector<5x5xf32>
    %cst_47 = arith.constant dense<0xFF800000> : vector<5xf32>
    %73 = vector.multi_reduction <maximumf>, %72, %cst_47 [1] : vector<5x5xf32> to vector<5xf32>
    %74 = vector.shape_cast %73 : vector<5xf32> to vector<5x1xf32>
    %75 = vector.broadcast %74 : vector<5x1xf32> to vector<5x5xf32>
    %76 = arith.subf %72, %75 : vector<5x5xf32>
    %77 = math.exp %76 : vector<5x5xf32>
    %cst_48 = arith.constant dense<0.000000e+00> : vector<5xf32>
    %78 = vector.multi_reduction <add>, %77, %cst_48 [1] : vector<5x5xf32> to vector<5xf32>
    %79 = vector.shape_cast %78 : vector<5xf32> to vector<5x1xf32>
    %80 = vector.broadcast %79 : vector<5x1xf32> to vector<5x5xf32>
    %81 = arith.divf %77, %80 : vector<5x5xf32>
    %c0_49 = arith.constant 0 : index
    %c1 = arith.constant 1 : index
    %c0_50 = arith.constant 0 : index
    %c0_51 = arith.constant 0 : index
    %82 = vector.load %arg21[%c0_49, %c1, %c0_50, %c0_51] : memref<1x8x5x5xf32, #tpu.memory_space<vmem>>, vector<1x1x5x5xf32>
    %83 = vector.shape_cast %82 : vector<1x1x5x5xf32> to vector<5x5xf32>
    %84 = vector.shape_cast %81 : vector<5x5xf32> to vector<1x1x5x5xf32>
    tpu.vector_store %arg21[%c0_49, %c1, %c0_50, %c0_51], %84 {strides = array<i32>} : memref<1x8x5x5xf32, #tpu.memory_space<vmem>>, vector<1x1x5x5xf32>,
    %85 = arith.addf %64, %81 : vector<5x5xf32>
    %cst_52 = arith.constant dense<0.000000e+00> : vector<5x8xf32>
    %86 = tpu.matmul %81, %69, %cst_52 {dimension_numbers = #tpu.dot_dimension_numbers<[1], [0], [0], [1], [0, 0, 1, 1], [], []>} : vector<5x5xf32>, vector<5x8xf32>, vector<5x8xf32> -> vector<5x8xf32>
    %c0_53 = arith.constant 0 : index
    %c8_54 = arith.constant 8 : index
    %87 = vector.load %arg24[%c0_53, %c8_54] : memref<5x32xf32, #tpu.memory_space<vmem>>, vector<5x8xf32>
    tpu.vector_store %arg24[%c0_53, %c8_54], %86 {strides = array<i32>} : memref<5x32xf32, #tpu.memory_space<vmem>>, vector<5x8xf32>,
    %c0_55 = arith.constant 0 : index
    %c16 = arith.constant 16 : index
    %88 = vector.load %arg23[%c0_55, %c16] : memref<5x96xf32, #tpu.memory_space<vmem>>, vector<5x8xf32>
    %c0_56 = arith.constant 0 : index
    %c48 = arith.constant 48 : index
    %89 = vector.load %arg23[%c0_56, %c48] : memref<5x96xf32, #tpu.memory_space<vmem>>, vector<5x8xf32>
    %c0_57 = arith.constant 0 : index
    %c80 = arith.constant 80 : index
    %90 = vector.load %arg23[%c0_57, %c80] : memref<5x96xf32, #tpu.memory_space<vmem>>, vector<5x8xf32>
    %cst_58 = arith.constant dense<0.000000e+00> : vector<5x5xf32>
    %91 = tpu.matmul %88, %89, %cst_58 {dimension_numbers = #tpu.dot_dimension_numbers<[1], [1], [0], [0], [0, 0, 1, 0], [], []>} : vector<5x8xf32>, vector<5x8xf32>, vector<5x5xf32> -> vector<5x5xf32>
    %cst_59 = arith.constant 0.353553385 : f32
    %92 = vector.broadcast %cst_59 : f32 to vector<5x5xf32>
    %93 = arith.mulf %91, %92 : vector<5x5xf32>
    %cst_60 = arith.constant dense<0xFF800000> : vector<5xf32>
    %94 = vector.multi_reduction <maximumf>, %93, %cst_60 [1] : vector<5x5xf32> to vector<5xf32>
    %95 = vector.shape_cast %94 : vector<5xf32> to vector<5x1xf32>
    %96 = vector.broadcast %95 : vector<5x1xf32> to vector<5x5xf32>
    %97 = arith.subf %93, %96 : vector<5x5xf32>
    %98 = math.exp %97 : vector<5x5xf32>
    %cst_61 = arith.constant dense<0.000000e+00> : vector<5xf32>
    %99 = vector.multi_reduction <add>, %98, %cst_61 [1] : vector<5x5xf32> to vector<5xf32>
    %100 = vector.shape_cast %99 : vector<5xf32> to vector<5x1xf32>
    %101 = vector.broadcast %100 : vector<5x1xf32> to vector<5x5xf32>
    %102 = arith.divf %98, %101 : vector<5x5xf32>
    %c0_62 = arith.constant 0 : index
    %c2 = arith.constant 2 : index
    %c0_63 = arith.constant 0 : index
    %c0_64 = arith.constant 0 : index
    %103 = vector.load %arg21[%c0_62, %c2, %c0_63, %c0_64] : memref<1x8x5x5xf32, #tpu.memory_space<vmem>>, vector<1x1x5x5xf32>
    %104 = vector.shape_cast %103 : vector<1x1x5x5xf32> to vector<5x5xf32>
    %105 = vector.shape_cast %102 : vector<5x5xf32> to vector<1x1x5x5xf32>
    tpu.vector_store %arg21[%c0_62, %c2, %c0_63, %c0_64], %105 {strides = array<i32>} : memref<1x8x5x5xf32, #tpu.memory_space<vmem>>, vector<1x1x5x5xf32>,
    %106 = arith.addf %85, %102 : vector<5x5xf32>
    %cst_65 = arith.constant dense<0.000000e+00> : vector<5x8xf32>
    %107 = tpu.matmul %102, %90, %cst_65 {dimension_numbers = #tpu.dot_dimension_numbers<[1], [0], [0], [1], [0, 0, 1, 1], [], []>} : vector<5x5xf32>, vector<5x8xf32>, vector<5x8xf32> -> vector<5x8xf32>
    %c0_66 = arith.constant 0 : index
    %c16_67 = arith.constant 16 : index
    %108 = vector.load %arg24[%c0_66, %c16_67] : memref<5x32xf32, #tpu.memory_space<vmem>>, vector<5x8xf32>
    tpu.vector_store %arg24[%c0_66, %c16_67], %107 {strides = array<i32>} : memref<5x32xf32, #tpu.memory_space<vmem>>, vector<5x8xf32>,
    %c0_68 = arith.constant 0 : index
    %c24 = arith.constant 24 : index
    %109 = vector.load %arg23[%c0_68, %c24] : memref<5x96xf32, #tpu.memory_space<vmem>>, vector<5x8xf32>
    %c0_69 = arith.constant 0 : index
    %c56 = arith.constant 56 : index
    %110 = vector.load %arg23[%c0_69, %c56] : memref<5x96xf32, #tpu.memory_space<vmem>>, vector<5x8xf32>
    %c0_70 = arith.constant 0 : index
    %c88 = arith.constant 88 : index
    %111 = vector.load %arg23[%c0_70, %c88] : memref<5x96xf32, #tpu.memory_space<vmem>>, vector<5x8xf32>
    %cst_71 = arith.constant dense<0.000000e+00> : vector<5x5xf32>
    %112 = tpu.matmul %109, %110, %cst_71 {dimension_numbers = #tpu.dot_dimension_numbers<[1], [1], [0], [0], [0, 0, 1, 0], [], []>} : vector<5x8xf32>, vector<5x8xf32>, vector<5x5xf32> -> vector<5x5xf32>
    %cst_72 = arith.constant 0.353553385 : f32
    %113 = vector.broadcast %cst_72 : f32 to vector<5x5xf32>
    %114 = arith.mulf %112, %113 : vector<5x5xf32>
    %cst_73 = arith.constant dense<0xFF800000> : vector<5xf32>
    %115 = vector.multi_reduction <maximumf>, %114, %cst_73 [1] : vector<5x5xf32> to vector<5xf32>
    %116 = vector.shape_cast %115 : vector<5xf32> to vector<5x1xf32>
    %117 = vector.broadcast %116 : vector<5x1xf32> to vector<5x5xf32>
    %118 = arith.subf %114, %117 : vector<5x5xf32>
    %119 = math.exp %118 : vector<5x5xf32>
    %cst_74 = arith.constant dense<0.000000e+00> : vector<5xf32>
    %120 = vector.multi_reduction <add>, %119, %cst_74 [1] : vector<5x5xf32> to vector<5xf32>
    %121 = vector.shape_cast %120 : vector<5xf32> to vector<5x1xf32>
    %122 = vector.broadcast %121 : vector<5x1xf32> to vector<5x5xf32>
    %123 = arith.divf %119, %122 : vector<5x5xf32>
    %c0_75 = arith.constant 0 : index
    %c3 = arith.constant 3 : index
    %c0_76 = arith.constant 0 : index
    %c0_77 = arith.constant 0 : index
    %124 = vector.load %arg21[%c0_75, %c3, %c0_76, %c0_77] : memref<1x8x5x5xf32, #tpu.memory_space<vmem>>, vector<1x1x5x5xf32>
    %125 = vector.shape_cast %124 : vector<1x1x5x5xf32> to vector<5x5xf32>
    %126 = vector.shape_cast %123 : vector<5x5xf32> to vector<1x1x5x5xf32>
    tpu.vector_store %arg21[%c0_75, %c3, %c0_76, %c0_77], %126 {strides = array<i32>} : memref<1x8x5x5xf32, #tpu.memory_space<vmem>>, vector<1x1x5x5xf32>,
    %127 = arith.addf %106, %123 : vector<5x5xf32>
    %cst_78 = arith.constant dense<0.000000e+00> : vector<5x8xf32>
    %128 = tpu.matmul %123, %111, %cst_78 {dimension_numbers = #tpu.dot_dimension_numbers<[1], [0], [0], [1], [0, 0, 1, 1], [], []>} : vector<5x5xf32>, vector<5x8xf32>, vector<5x8xf32> -> vector<5x8xf32>
    %c0_79 = arith.constant 0 : index
    %c24_80 = arith.constant 24 : index
    %129 = vector.load %arg24[%c0_79, %c24_80] : memref<5x32xf32, #tpu.memory_space<vmem>>, vector<5x8xf32>
    tpu.vector_store %arg24[%c0_79, %c24_80], %128 {strides = array<i32>} : memref<5x32xf32, #tpu.memory_space<vmem>>, vector<5x8xf32>,
    %c0_81 = arith.constant 0 : index
    %c0_82 = arith.constant 0 : index
    %130 = vector.load %arg24[%c0_81, %c0_82] : memref<5x32xf32, #tpu.memory_space<vmem>>, vector<5x32xf32>
    %c0_83 = arith.constant 0 : index
    %c0_84 = arith.constant 0 : index
    %c0_85 = arith.constant 0 : index
    %131 = vector.load %arg8[%c0_83, %c0_84, %c0_85] : memref<2x32x32xf32, #tpu.memory_space<vmem>>, vector<1x32x32xf32>
    %132 = vector.shape_cast %131 : vector<1x32x32xf32> to vector<32x32xf32>
    %cst_86 = arith.constant dense<0.000000e+00> : vector<5x32xf32>
    %133 = tpu.matmul %130, %132, %cst_86 {dimension_numbers = #tpu.dot_dimension_numbers<[1], [0], [0], [1], [0, 0, 1, 1], [], []>} : vector<5x32xf32>, vector<32x32xf32>, vector<5x32xf32> -> vector<5x32xf32>
    %c0_87 = arith.constant 0 : index
    %c0_88 = arith.constant 0 : index
    %c0_89 = arith.constant 0 : index
    %134 = vector.load %arg9[%c0_87, %c0_88, %c0_89] : memref<2x1x32xf32, #tpu.memory_space<vmem>>, vector<1x1x32xf32>
    %135 = vector.shape_cast %134 : vector<1x1x32xf32> to vector<1x32xf32>
    %136 = vector.broadcast %135 : vector<1x32xf32> to vector<5x32xf32>
    %137 = arith.addf %133, %136 : vector<5x32xf32>
    %138 = arith.addf %5, %137 : vector<5x32xf32>
    %c0_90 = arith.constant 0 : index
    %c0_91 = arith.constant 0 : index
    %c0_92 = arith.constant 0 : index
    %139 = vector.load %arg10[%c0_90, %c0_91, %c0_92] : memref<2x1x32xf32, #tpu.memory_space<vmem>>, vector<1x1x32xf32>
    %140 = vector.shape_cast %139 : vector<1x1x32xf32> to vector<1x32xf32>
    %c0_93 = arith.constant 0 : index
    %c0_94 = arith.constant 0 : index
    %c0_95 = arith.constant 0 : index
    %141 = vector.load %arg11[%c0_93, %c0_94, %c0_95] : memref<2x1x32xf32, #tpu.memory_space<vmem>>, vector<1x1x32xf32>
    %142 = vector.shape_cast %141 : vector<1x1x32xf32> to vector<1x32xf32>
    %cst_96 = arith.constant dense<0.000000e+00> : vector<5xf32>
    %143 = vector.multi_reduction <add>, %138, %cst_96 [1] : vector<5x32xf32> to vector<5xf32>
    %144 = vector.shape_cast %143 : vector<5xf32> to vector<5x1xf32>
    %cst_97 = arith.constant 3.200000e+01 : f32
    %145 = vector.broadcast %cst_97 : f32 to vector<5x1xf32>
    %146 = arith.divf %144, %145 : vector<5x1xf32>
    %147 = vector.broadcast %146 : vector<5x1xf32> to vector<5x32xf32>
    %148 = arith.subf %138, %147 : vector<5x32xf32>
    %149 = arith.mulf %148, %148 : vector<5x32xf32>
    %cst_98 = arith.constant dense<0.000000e+00> : vector<5xf32>
    %150 = vector.multi_reduction <add>, %149, %cst_98 [1] : vector<5x32xf32> to vector<5xf32>
    %151 = vector.shape_cast %150 : vector<5xf32> to vector<5x1xf32>
    %cst_99 = arith.constant 3.200000e+01 : f32
    %152 = vector.broadcast %cst_99 : f32 to vector<5x1xf32>
    %153 = arith.divf %151, %152 : vector<5x1xf32>
    %154 = vector.broadcast %146 : vector<5x1xf32> to vector<5x32xf32>
    %155 = arith.subf %138, %154 : vector<5x32xf32>
    %cst_100 = arith.constant 9.99999997E-7 : f32
    %156 = vector.broadcast %cst_100 : f32 to vector<5x1xf32>
    %157 = arith.addf %153, %156 : vector<5x1xf32>
    %158 = math.rsqrt %157 : vector<5x1xf32>
    %159 = vector.broadcast %158 : vector<5x1xf32> to vector<5x32xf32>
    %160 = arith.mulf %155, %159 : vector<5x32xf32>
    %161 = vector.broadcast %140 : vector<1x32xf32> to vector<5x32xf32>
    %162 = arith.mulf %160, %161 : vector<5x32xf32>
    %163 = vector.broadcast %142 : vector<1x32xf32> to vector<5x32xf32>
    %164 = arith.addf %162, %163 : vector<5x32xf32>
    %c0_101 = arith.constant 0 : index
    %c0_102 = arith.constant 0 : index
    %c0_103 = arith.constant 0 : index
    %165 = vector.load %arg12[%c0_101, %c0_102, %c0_103] : memref<2x32x64xf32, #tpu.memory_space<vmem>>, vector<1x32x64xf32>
    %166 = vector.shape_cast %165 : vector<1x32x64xf32> to vector<32x64xf32>
    %cst_104 = arith.constant dense<0.000000e+00> : vector<5x64xf32>
    %167 = tpu.matmul %164, %166, %cst_104 {dimension_numbers = #tpu.dot_dimension_numbers<[1], [0], [0], [1], [0, 0, 1, 1], [], []>} : vector<5x32xf32>, vector<32x64xf32>, vector<5x64xf32> -> vector<5x64xf32>
    %c0_105 = arith.constant 0 : index
    %c0_106 = arith.constant 0 : index
    %c0_107 = arith.constant 0 : index
    %168 = vector.load %arg13[%c0_105, %c0_106, %c0_107] : memref<2x1x64xf32, #tpu.memory_space<vmem>>, vector<1x1x64xf32>
    %169 = vector.shape_cast %168 : vector<1x1x64xf32> to vector<1x64xf32>
    %170 = vector.broadcast %169 : vector<1x64xf32> to vector<5x64xf32>
    %171 = arith.addf %167, %170 : vector<5x64xf32>
    %172 = arith.mulf %171, %171 : vector<5x64xf32>
    %173 = arith.mulf %171, %172 : vector<5x64xf32>
    %cst_108 = arith.constant 4.471500e-02 : f32
    %174 = vector.broadcast %cst_108 : f32 to vector<5x64xf32>
    %175 = arith.mulf %174, %173 : vector<5x64xf32>
    %176 = arith.addf %171, %175 : vector<5x64xf32>
    %cst_109 = arith.constant 0.797884583 : f32
    %177 = vector.broadcast %cst_109 : f32 to vector<5x64xf32>
    %178 = arith.mulf %177, %176 : vector<5x64xf32>
    %179 = math.tanh %178 : vector<5x64xf32>
    %cst_110 = arith.constant 1.000000e+00 : f32
    %180 = vector.broadcast %cst_110 : f32 to vector<5x64xf32>
    %181 = arith.addf %180, %179 : vector<5x64xf32>
    %cst_111 = arith.constant 5.000000e-01 : f32
    %182 = vector.broadcast %cst_111 : f32 to vector<5x64xf32>
    %183 = arith.mulf %182, %181 : vector<5x64xf32>
    %184 = arith.mulf %171, %183 : vector<5x64xf32>
    %c0_112 = arith.constant 0 : index
    %c0_113 = arith.constant 0 : index
    %c0_114 = arith.constant 0 : index
    %185 = vector.load %arg14[%c0_112, %c0_113, %c0_114] : memref<2x64x32xf32, #tpu.memory_space<vmem>>, vector<1x64x32xf32>
    %186 = vector.shape_cast %185 : vector<1x64x32xf32> to vector<64x32xf32>
    %cst_115 = arith.constant dense<0.000000e+00> : vector<5x32xf32>
    %187 = tpu.matmul %184, %186, %cst_115 {dimension_numbers = #tpu.dot_dimension_numbers<[1], [0], [0], [1], [0, 0, 1, 1], [], []>} : vector<5x64xf32>, vector<64x32xf32>, vector<5x32xf32> -> vector<5x32xf32>
    %c0_116 = arith.constant 0 : index
    %c0_117 = arith.constant 0 : index
    %c0_118 = arith.constant 0 : index
    %188 = vector.load %arg15[%c0_116, %c0_117, %c0_118] : memref<2x1x32xf32, #tpu.memory_space<vmem>>, vector<1x1x32xf32>
    %189 = vector.shape_cast %188 : vector<1x1x32xf32> to vector<1x32xf32>
    %190 = vector.broadcast %189 : vector<1x32xf32> to vector<5x32xf32>
    %191 = arith.addf %187, %190 : vector<5x32xf32>
    %192 = arith.addf %138, %191 : vector<5x32xf32>
    %cst_119 = arith.constant 2.500000e-01 : f32
    %193 = vector.broadcast %cst_119 : f32 to vector<5x5xf32>
    %194 = arith.mulf %127, %193 : vector<5x5xf32>
    %195 = arith.addf %194, %10 : vector<5x5xf32>
    %cst_120 = arith.constant dense<0.000000e+00> : vector<5xf32>
    %196 = vector.multi_reduction <add>, %195, %cst_120 [1] : vector<5x5xf32> to vector<5xf32>
    %197 = vector.shape_cast %196 : vector<5xf32> to vector<5x1xf32>
    %198 = vector.broadcast %197 : vector<5x1xf32> to vector<5x5xf32>
    %199 = arith.divf %195, %198 : vector<5x5xf32>
    %c1_121 = arith.constant 1 : index
    %c0_122 = arith.constant 0 : index
    %c0_123 = arith.constant 0 : index
    %200 = vector.load %arg4[%c1_121, %c0_122, %c0_123] : memref<2x1x32xf32, #tpu.memory_space<vmem>>, vector<1x1x32xf32>
    %201 = vector.shape_cast %200 : vector<1x1x32xf32> to vector<1x32xf32>
    %c1_124 = arith.constant 1 : index
    %c0_125 = arith.constant 0 : index
    %c0_126 = arith.constant 0 : index
    %202 = vector.load %arg5[%c1_124, %c0_125, %c0_126] : memref<2x1x32xf32, #tpu.memory_space<vmem>>, vector<1x1x32xf32>
    %203 = vector.shape_cast %202 : vector<1x1x32xf32> to vector<1x32xf32>
    %cst_127 = arith.constant dense<0.000000e+00> : vector<5xf32>
    %204 = vector.multi_reduction <add>, %192, %cst_127 [1] : vector<5x32xf32> to vector<5xf32>
    %205 = vector.shape_cast %204 : vector<5xf32> to vector<5x1xf32>
    %cst_128 = arith.constant 3.200000e+01 : f32
    %206 = vector.broadcast %cst_128 : f32 to vector<5x1xf32>
    %207 = arith.divf %205, %206 : vector<5x1xf32>
    %208 = vector.broadcast %207 : vector<5x1xf32> to vector<5x32xf32>
    %209 = arith.subf %192, %208 : vector<5x32xf32>
    %210 = arith.mulf %209, %209 : vector<5x32xf32>
    %cst_129 = arith.constant dense<0.000000e+00> : vector<5xf32>
    %211 = vector.multi_reduction <add>, %210, %cst_129 [1] : vector<5x32xf32> to vector<5xf32>
    %212 = vector.shape_cast %211 : vector<5xf32> to vector<5x1xf32>
    %cst_130 = arith.constant 3.200000e+01 : f32
    %213 = vector.broadcast %cst_130 : f32 to vector<5x1xf32>
    %214 = arith.divf %212, %213 : vector<5x1xf32>
    %215 = vector.broadcast %207 : vector<5x1xf32> to vector<5x32xf32>
    %216 = arith.subf %192, %215 : vector<5x32xf32>
    %cst_131 = arith.constant 9.99999997E-7 : f32
    %217 = vector.broadcast %cst_131 : f32 to vector<5x1xf32>
    %218 = arith.addf %214, %217 : vector<5x1xf32>
    %219 = math.rsqrt %218 : vector<5x1xf32>
    %220 = vector.broadcast %219 : vector<5x1xf32> to vector<5x32xf32>
    %221 = arith.mulf %216, %220 : vector<5x32xf32>
    %222 = vector.broadcast %201 : vector<1x32xf32> to vector<5x32xf32>
    %223 = arith.mulf %221, %222 : vector<5x32xf32>
    %224 = vector.broadcast %203 : vector<1x32xf32> to vector<5x32xf32>
    %225 = arith.addf %223, %224 : vector<5x32xf32>
    %c1_132 = arith.constant 1 : index
    %c0_133 = arith.constant 0 : index
    %c0_134 = arith.constant 0 : index
    %226 = vector.load %arg6[%c1_132, %c0_133, %c0_134] : memref<2x32x96xf32, #tpu.memory_space<vmem>>, vector<1x32x96xf32>
    %227 = vector.shape_cast %226 : vector<1x32x96xf32> to vector<32x96xf32>
    %cst_135 = arith.constant dense<0.000000e+00> : vector<5x96xf32>
    %228 = tpu.matmul %225, %227, %cst_135 {dimension_numbers = #tpu.dot_dimension_numbers<[1], [0], [0], [1], [0, 0, 1, 1], [], []>} : vector<5x32xf32>, vector<32x96xf32>, vector<5x96xf32> -> vector<5x96xf32>
    %c1_136 = arith.constant 1 : index
    %c0_137 = arith.constant 0 : index
    %c0_138 = arith.constant 0 : index
    %229 = vector.load %arg7[%c1_136, %c0_137, %c0_138] : memref<2x1x96xf32, #tpu.memory_space<vmem>>, vector<1x1x96xf32>
    %230 = vector.shape_cast %229 : vector<1x1x96xf32> to vector<1x96xf32>
    %231 = vector.broadcast %230 : vector<1x96xf32> to vector<5x96xf32>
    %232 = arith.addf %228, %231 : vector<5x96xf32>
    %c0_139 = arith.constant 0 : index
    %c0_140 = arith.constant 0 : index
    %233 = vector.load %arg23[%c0_139, %c0_140] : memref<5x96xf32, #tpu.memory_space<vmem>>, vector<5x96xf32>
    tpu.vector_store %arg23[%c0_139, %c0_140], %232 {strides = array<i32>} : memref<5x96xf32, #tpu.memory_space<vmem>>, vector<5x96xf32>,
    %cst_141 = arith.constant 0.000000e+00 : f32
    %234 = vector.broadcast %cst_141 : f32 to vector<5x5xf32>
    %c0_142 = arith.constant 0 : index
    %c0_143 = arith.constant 0 : index
    %235 = vector.load %arg23[%c0_142, %c0_143] : memref<5x96xf32, #tpu.memory_space<vmem>>, vector<5x8xf32>
    %c0_144 = arith.constant 0 : index
    %c32_145 = arith.constant 32 : index
    %236 = vector.load %arg23[%c0_144, %c32_145] : memref<5x96xf32, #tpu.memory_space<vmem>>, vector<5x8xf32>
    %c0_146 = arith.constant 0 : index
    %c64_147 = arith.constant 64 : index
    %237 = vector.load %arg23[%c0_146, %c64_147] : memref<5x96xf32, #tpu.memory_space<vmem>>, vector<5x8xf32>
    %cst_148 = arith.constant dense<0.000000e+00> : vector<5x5xf32>
    %238 = tpu.matmul %235, %236, %cst_148 {dimension_numbers = #tpu.dot_dimension_numbers<[1], [1], [0], [0], [0, 0, 1, 0], [], []>} : vector<5x8xf32>, vector<5x8xf32>, vector<5x5xf32> -> vector<5x5xf32>
    %cst_149 = arith.constant 0.353553385 : f32
    %239 = vector.broadcast %cst_149 : f32 to vector<5x5xf32>
    %240 = arith.mulf %238, %239 : vector<5x5xf32>
    %cst_150 = arith.constant dense<0xFF800000> : vector<5xf32>
    %241 = vector.multi_reduction <maximumf>, %240, %cst_150 [1] : vector<5x5xf32> to vector<5xf32>
    %242 = vector.shape_cast %241 : vector<5xf32> to vector<5x1xf32>
    %243 = vector.broadcast %242 : vector<5x1xf32> to vector<5x5xf32>
    %244 = arith.subf %240, %243 : vector<5x5xf32>
    %245 = math.exp %244 : vector<5x5xf32>
    %cst_151 = arith.constant dense<0.000000e+00> : vector<5xf32>
    %246 = vector.multi_reduction <add>, %245, %cst_151 [1] : vector<5x5xf32> to vector<5xf32>
    %247 = vector.shape_cast %246 : vector<5xf32> to vector<5x1xf32>
    %248 = vector.broadcast %247 : vector<5x1xf32> to vector<5x5xf32>
    %249 = arith.divf %245, %248 : vector<5x5xf32>
    %c0_152 = arith.constant 0 : index
    %c4 = arith.constant 4 : index
    %c0_153 = arith.constant 0 : index
    %c0_154 = arith.constant 0 : index
    %250 = vector.load %arg21[%c0_152, %c4, %c0_153, %c0_154] : memref<1x8x5x5xf32, #tpu.memory_space<vmem>>, vector<1x1x5x5xf32>
    %251 = vector.shape_cast %250 : vector<1x1x5x5xf32> to vector<5x5xf32>
    %252 = vector.shape_cast %249 : vector<5x5xf32> to vector<1x1x5x5xf32>
    tpu.vector_store %arg21[%c0_152, %c4, %c0_153, %c0_154], %252 {strides = array<i32>} : memref<1x8x5x5xf32, #tpu.memory_space<vmem>>, vector<1x1x5x5xf32>,
    %253 = arith.addf %234, %249 : vector<5x5xf32>
    %cst_155 = arith.constant dense<0.000000e+00> : vector<5x8xf32>
    %254 = tpu.matmul %249, %237, %cst_155 {dimension_numbers = #tpu.dot_dimension_numbers<[1], [0], [0], [1], [0, 0, 1, 1], [], []>} : vector<5x5xf32>, vector<5x8xf32>, vector<5x8xf32> -> vector<5x8xf32>
    %c0_156 = arith.constant 0 : index
    %c0_157 = arith.constant 0 : index
    %255 = vector.load %arg24[%c0_156, %c0_157] : memref<5x32xf32, #tpu.memory_space<vmem>>, vector<5x8xf32>
    tpu.vector_store %arg24[%c0_156, %c0_157], %254 {strides = array<i32>} : memref<5x32xf32, #tpu.memory_space<vmem>>, vector<5x8xf32>,
    %c0_158 = arith.constant 0 : index
    %c8_159 = arith.constant 8 : index
    %256 = vector.load %arg23[%c0_158, %c8_159] : memref<5x96xf32, #tpu.memory_space<vmem>>, vector<5x8xf32>
    %c0_160 = arith.constant 0 : index
    %c40_161 = arith.constant 40 : index
    %257 = vector.load %arg23[%c0_160, %c40_161] : memref<5x96xf32, #tpu.memory_space<vmem>>, vector<5x8xf32>
    %c0_162 = arith.constant 0 : index
    %c72_163 = arith.constant 72 : index
    %258 = vector.load %arg23[%c0_162, %c72_163] : memref<5x96xf32, #tpu.memory_space<vmem>>, vector<5x8xf32>
    %cst_164 = arith.constant dense<0.000000e+00> : vector<5x5xf32>
    %259 = tpu.matmul %256, %257, %cst_164 {dimension_numbers = #tpu.dot_dimension_numbers<[1], [1], [0], [0], [0, 0, 1, 0], [], []>} : vector<5x8xf32>, vector<5x8xf32>, vector<5x5xf32> -> vector<5x5xf32>
    %cst_165 = arith.constant 0.353553385 : f32
    %260 = vector.broadcast %cst_165 : f32 to vector<5x5xf32>
    %261 = arith.mulf %259, %260 : vector<5x5xf32>
    %cst_166 = arith.constant dense<0xFF800000> : vector<5xf32>
    %262 = vector.multi_reduction <maximumf>, %261, %cst_166 [1] : vector<5x5xf32> to vector<5xf32>
    %263 = vector.shape_cast %262 : vector<5xf32> to vector<5x1xf32>
    %264 = vector.broadcast %263 : vector<5x1xf32> to vector<5x5xf32>
    %265 = arith.subf %261, %264 : vector<5x5xf32>
    %266 = math.exp %265 : vector<5x5xf32>
    %cst_167 = arith.constant dense<0.000000e+00> : vector<5xf32>
    %267 = vector.multi_reduction <add>, %266, %cst_167 [1] : vector<5x5xf32> to vector<5xf32>
    %268 = vector.shape_cast %267 : vector<5xf32> to vector<5x1xf32>
    %269 = vector.broadcast %268 : vector<5x1xf32> to vector<5x5xf32>
    %270 = arith.divf %266, %269 : vector<5x5xf32>
    %c0_168 = arith.constant 0 : index
    %c5 = arith.constant 5 : index
    %c0_169 = arith.constant 0 : index
    %c0_170 = arith.constant 0 : index
    %271 = vector.load %arg21[%c0_168, %c5, %c0_169, %c0_170] : memref<1x8x5x5xf32, #tpu.memory_space<vmem>>, vector<1x1x5x5xf32>
    %272 = vector.shape_cast %271 : vector<1x1x5x5xf32> to vector<5x5xf32>
    %273 = vector.shape_cast %270 : vector<5x5xf32> to vector<1x1x5x5xf32>
    tpu.vector_store %arg21[%c0_168, %c5, %c0_169, %c0_170], %273 {strides = array<i32>} : memref<1x8x5x5xf32, #tpu.memory_space<vmem>>, vector<1x1x5x5xf32>,
    %274 = arith.addf %253, %270 : vector<5x5xf32>
    %cst_171 = arith.constant dense<0.000000e+00> : vector<5x8xf32>
    %275 = tpu.matmul %270, %258, %cst_171 {dimension_numbers = #tpu.dot_dimension_numbers<[1], [0], [0], [1], [0, 0, 1, 1], [], []>} : vector<5x5xf32>, vector<5x8xf32>, vector<5x8xf32> -> vector<5x8xf32>
    %c0_172 = arith.constant 0 : index
    %c8_173 = arith.constant 8 : index
    %276 = vector.load %arg24[%c0_172, %c8_173] : memref<5x32xf32, #tpu.memory_space<vmem>>, vector<5x8xf32>
    tpu.vector_store %arg24[%c0_172, %c8_173], %275 {strides = array<i32>} : memref<5x32xf32, #tpu.memory_space<vmem>>, vector<5x8xf32>,
    %c0_174 = arith.constant 0 : index
    %c16_175 = arith.constant 16 : index
    %277 = vector.load %arg23[%c0_174, %c16_175] : memref<5x96xf32, #tpu.memory_space<vmem>>, vector<5x8xf32>
    %c0_176 = arith.constant 0 : index
    %c48_177 = arith.constant 48 : index
    %278 = vector.load %arg23[%c0_176, %c48_177] : memref<5x96xf32, #tpu.memory_space<vmem>>, vector<5x8xf32>
    %c0_178 = arith.constant 0 : index
    %c80_179 = arith.constant 80 : index
    %279 = vector.load %arg23[%c0_178, %c80_179] : memref<5x96xf32, #tpu.memory_space<vmem>>, vector<5x8xf32>
    %cst_180 = arith.constant dense<0.000000e+00> : vector<5x5xf32>
    %280 = tpu.matmul %277, %278, %cst_180 {dimension_numbers = #tpu.dot_dimension_numbers<[1], [1], [0], [0], [0, 0, 1, 0], [], []>} : vector<5x8xf32>, vector<5x8xf32>, vector<5x5xf32> -> vector<5x5xf32>
    %cst_181 = arith.constant 0.353553385 : f32
    %281 = vector.broadcast %cst_181 : f32 to vector<5x5xf32>
    %282 = arith.mulf %280, %281 : vector<5x5xf32>
    %cst_182 = arith.constant dense<0xFF800000> : vector<5xf32>
    %283 = vector.multi_reduction <maximumf>, %282, %cst_182 [1] : vector<5x5xf32> to vector<5xf32>
    %284 = vector.shape_cast %283 : vector<5xf32> to vector<5x1xf32>
    %285 = vector.broadcast %284 : vector<5x1xf32> to vector<5x5xf32>
    %286 = arith.subf %282, %285 : vector<5x5xf32>
    %287 = math.exp %286 : vector<5x5xf32>
    %cst_183 = arith.constant dense<0.000000e+00> : vector<5xf32>
    %288 = vector.multi_reduction <add>, %287, %cst_183 [1] : vector<5x5xf32> to vector<5xf32>
    %289 = vector.shape_cast %288 : vector<5xf32> to vector<5x1xf32>
    %290 = vector.broadcast %289 : vector<5x1xf32> to vector<5x5xf32>
    %291 = arith.divf %287, %290 : vector<5x5xf32>
    %c0_184 = arith.constant 0 : index
    %c6 = arith.constant 6 : index
    %c0_185 = arith.constant 0 : index
    %c0_186 = arith.constant 0 : index
    %292 = vector.load %arg21[%c0_184, %c6, %c0_185, %c0_186] : memref<1x8x5x5xf32, #tpu.memory_space<vmem>>, vector<1x1x5x5xf32>
    %293 = vector.shape_cast %292 : vector<1x1x5x5xf32> to vector<5x5xf32>
    %294 = vector.shape_cast %291 : vector<5x5xf32> to vector<1x1x5x5xf32>
    tpu.vector_store %arg21[%c0_184, %c6, %c0_185, %c0_186], %294 {strides = array<i32>} : memref<1x8x5x5xf32, #tpu.memory_space<vmem>>, vector<1x1x5x5xf32>,
    %295 = arith.addf %274, %291 : vector<5x5xf32>
    %cst_187 = arith.constant dense<0.000000e+00> : vector<5x8xf32>
    %296 = tpu.matmul %291, %279, %cst_187 {dimension_numbers = #tpu.dot_dimension_numbers<[1], [0], [0], [1], [0, 0, 1, 1], [], []>} : vector<5x5xf32>, vector<5x8xf32>, vector<5x8xf32> -> vector<5x8xf32>
    %c0_188 = arith.constant 0 : index
    %c16_189 = arith.constant 16 : index
    %297 = vector.load %arg24[%c0_188, %c16_189] : memref<5x32xf32, #tpu.memory_space<vmem>>, vector<5x8xf32>
    tpu.vector_store %arg24[%c0_188, %c16_189], %296 {strides = array<i32>} : memref<5x32xf32, #tpu.memory_space<vmem>>, vector<5x8xf32>,
    %c0_190 = arith.constant 0 : index
    %c24_191 = arith.constant 24 : index
    %298 = vector.load %arg23[%c0_190, %c24_191] : memref<5x96xf32, #tpu.memory_space<vmem>>, vector<5x8xf32>
    %c0_192 = arith.constant 0 : index
    %c56_193 = arith.constant 56 : index
    %299 = vector.load %arg23[%c0_192, %c56_193] : memref<5x96xf32, #tpu.memory_space<vmem>>, vector<5x8xf32>
    %c0_194 = arith.constant 0 : index
    %c88_195 = arith.constant 88 : index
    %300 = vector.load %arg23[%c0_194, %c88_195] : memref<5x96xf32, #tpu.memory_space<vmem>>, vector<5x8xf32>
    %cst_196 = arith.constant dense<0.000000e+00> : vector<5x5xf32>
    %301 = tpu.matmul %298, %299, %cst_196 {dimension_numbers = #tpu.dot_dimension_numbers<[1], [1], [0], [0], [0, 0, 1, 0], [], []>} : vector<5x8xf32>, vector<5x8xf32>, vector<5x5xf32> -> vector<5x5xf32>
    %cst_197 = arith.constant 0.353553385 : f32
    %302 = vector.broadcast %cst_197 : f32 to vector<5x5xf32>
    %303 = arith.mulf %301, %302 : vector<5x5xf32>
    %cst_198 = arith.constant dense<0xFF800000> : vector<5xf32>
    %304 = vector.multi_reduction <maximumf>, %303, %cst_198 [1] : vector<5x5xf32> to vector<5xf32>
    %305 = vector.shape_cast %304 : vector<5xf32> to vector<5x1xf32>
    %306 = vector.broadcast %305 : vector<5x1xf32> to vector<5x5xf32>
    %307 = arith.subf %303, %306 : vector<5x5xf32>
    %308 = math.exp %307 : vector<5x5xf32>
    %cst_199 = arith.constant dense<0.000000e+00> : vector<5xf32>
    %309 = vector.multi_reduction <add>, %308, %cst_199 [1] : vector<5x5xf32> to vector<5xf32>
    %310 = vector.shape_cast %309 : vector<5xf32> to vector<5x1xf32>
    %311 = vector.broadcast %310 : vector<5x1xf32> to vector<5x5xf32>
    %312 = arith.divf %308, %311 : vector<5x5xf32>
    %c0_200 = arith.constant 0 : index
    %c7 = arith.constant 7 : index
    %c0_201 = arith.constant 0 : index
    %c0_202 = arith.constant 0 : index
    %313 = vector.load %arg21[%c0_200, %c7, %c0_201, %c0_202] : memref<1x8x5x5xf32, #tpu.memory_space<vmem>>, vector<1x1x5x5xf32>
    %314 = vector.shape_cast %313 : vector<1x1x5x5xf32> to vector<5x5xf32>
    %315 = vector.shape_cast %312 : vector<5x5xf32> to vector<1x1x5x5xf32>
    tpu.vector_store %arg21[%c0_200, %c7, %c0_201, %c0_202], %315 {strides = array<i32>} : memref<1x8x5x5xf32, #tpu.memory_space<vmem>>, vector<1x1x5x5xf32>,
    %316 = arith.addf %295, %312 : vector<5x5xf32>
    %cst_203 = arith.constant dense<0.000000e+00> : vector<5x8xf32>
    %317 = tpu.matmul %312, %300, %cst_203 {dimension_numbers = #tpu.dot_dimension_numbers<[1], [0], [0], [1], [0, 0, 1, 1], [], []>} : vector<5x5xf32>, vector<5x8xf32>, vector<5x8xf32> -> vector<5x8xf32>
    %c0_204 = arith.constant 0 : index
    %c24_205 = arith.constant 24 : index
    %318 = vector.load %arg24[%c0_204, %c24_205] : memref<5x32xf32, #tpu.memory_space<vmem>>, vector<5x8xf32>
    tpu.vector_store %arg24[%c0_204, %c24_205], %317 {strides = array<i32>} : memref<5x32xf32, #tpu.memory_space<vmem>>, vector<5x8xf32>,
    %c0_206 = arith.constant 0 : index
    %c0_207 = arith.constant 0 : index
    %319 = vector.load %arg24[%c0_206, %c0_207] : memref<5x32xf32, #tpu.memory_space<vmem>>, vector<5x32xf32>
    %c1_208 = arith.constant 1 : index
    %c0_209 = arith.constant 0 : index
    %c0_210 = arith.constant 0 : index
    %320 = vector.load %arg8[%c1_208, %c0_209, %c0_210] : memref<2x32x32xf32, #tpu.memory_space<vmem>>, vector<1x32x32xf32>
    %321 = vector.shape_cast %320 : vector<1x32x32xf32> to vector<32x32xf32>
    %cst_211 = arith.constant dense<0.000000e+00> : vector<5x32xf32>
    %322 = tpu.matmul %319, %321, %cst_211 {dimension_numbers = #tpu.dot_dimension_numbers<[1], [0], [0], [1], [0, 0, 1, 1], [], []>} : vector<5x32xf32>, vector<32x32xf32>, vector<5x32xf32> -> vector<5x32xf32>
    %c1_212 = arith.constant 1 : index
    %c0_213 = arith.constant 0 : index
    %c0_214 = arith.constant 0 : index
    %323 = vector.load %arg9[%c1_212, %c0_213, %c0_214] : memref<2x1x32xf32, #tpu.memory_space<vmem>>, vector<1x1x32xf32>
    %324 = vector.shape_cast %323 : vector<1x1x32xf32> to vector<1x32xf32>
    %325 = vector.broadcast %324 : vector<1x32xf32> to vector<5x32xf32>
    %326 = arith.addf %322, %325 : vector<5x32xf32>
    %327 = arith.addf %192, %326 : vector<5x32xf32>
    %c1_215 = arith.constant 1 : index
    %c0_216 = arith.constant 0 : index
    %c0_217 = arith.constant 0 : index
    %328 = vector.load %arg10[%c1_215, %c0_216, %c0_217] : memref<2x1x32xf32, #tpu.memory_space<vmem>>, vector<1x1x32xf32>
    %329 = vector.shape_cast %328 : vector<1x1x32xf32> to vector<1x32xf32>
    %c1_218 = arith.constant 1 : index
    %c0_219 = arith.constant 0 : index
    %c0_220 = arith.constant 0 : index
    %330 = vector.load %arg11[%c1_218, %c0_219, %c0_220] : memref<2x1x32xf32, #tpu.memory_space<vmem>>, vector<1x1x32xf32>
    %331 = vector.shape_cast %330 : vector<1x1x32xf32> to vector<1x32xf32>
    %cst_221 = arith.constant dense<0.000000e+00> : vector<5xf32>
    %332 = vector.multi_reduction <add>, %327, %cst_221 [1] : vector<5x32xf32> to vector<5xf32>
    %333 = vector.shape_cast %332 : vector<5xf32> to vector<5x1xf32>
    %cst_222 = arith.constant 3.200000e+01 : f32
    %334 = vector.broadcast %cst_222 : f32 to vector<5x1xf32>
    %335 = arith.divf %333, %334 : vector<5x1xf32>
    %336 = vector.broadcast %335 : vector<5x1xf32> to vector<5x32xf32>
    %337 = arith.subf %327, %336 : vector<5x32xf32>
    %338 = arith.mulf %337, %337 : vector<5x32xf32>
    %cst_223 = arith.constant dense<0.000000e+00> : vector<5xf32>
    %339 = vector.multi_reduction <add>, %338, %cst_223 [1] : vector<5x32xf32> to vector<5xf32>
    %340 = vector.shape_cast %339 : vector<5xf32> to vector<5x1xf32>
    %cst_224 = arith.constant 3.200000e+01 : f32
    %341 = vector.broadcast %cst_224 : f32 to vector<5x1xf32>
    %342 = arith.divf %340, %341 : vector<5x1xf32>
    %343 = vector.broadcast %335 : vector<5x1xf32> to vector<5x32xf32>
    %344 = arith.subf %327, %343 : vector<5x32xf32>
    %cst_225 = arith.constant 9.99999997E-7 : f32
    %345 = vector.broadcast %cst_225 : f32 to vector<5x1xf32>
    %346 = arith.addf %342, %345 : vector<5x1xf32>
    %347 = math.rsqrt %346 : vector<5x1xf32>
    %348 = vector.broadcast %347 : vector<5x1xf32> to vector<5x32xf32>
    %349 = arith.mulf %344, %348 : vector<5x32xf32>
    %350 = vector.broadcast %329 : vector<1x32xf32> to vector<5x32xf32>
    %351 = arith.mulf %349, %350 : vector<5x32xf32>
    %352 = vector.broadcast %331 : vector<1x32xf32> to vector<5x32xf32>
    %353 = arith.addf %351, %352 : vector<5x32xf32>
    %c1_226 = arith.constant 1 : index
    %c0_227 = arith.constant 0 : index
    %c0_228 = arith.constant 0 : index
    %354 = vector.load %arg12[%c1_226, %c0_227, %c0_228] : memref<2x32x64xf32, #tpu.memory_space<vmem>>, vector<1x32x64xf32>
    %355 = vector.shape_cast %354 : vector<1x32x64xf32> to vector<32x64xf32>
    %cst_229 = arith.constant dense<0.000000e+00> : vector<5x64xf32>
    %356 = tpu.matmul %353, %355, %cst_229 {dimension_numbers = #tpu.dot_dimension_numbers<[1], [0], [0], [1], [0, 0, 1, 1], [], []>} : vector<5x32xf32>, vector<32x64xf32>, vector<5x64xf32> -> vector<5x64xf32>
    %c1_230 = arith.constant 1 : index
    %c0_231 = arith.constant 0 : index
    %c0_232 = arith.constant 0 : index
    %357 = vector.load %arg13[%c1_230, %c0_231, %c0_232] : memref<2x1x64xf32, #tpu.memory_space<vmem>>, vector<1x1x64xf32>
    %358 = vector.shape_cast %357 : vector<1x1x64xf32> to vector<1x64xf32>
    %359 = vector.broadcast %358 : vector<1x64xf32> to vector<5x64xf32>
    %360 = arith.addf %356, %359 : vector<5x64xf32>
    %361 = arith.mulf %360, %360 : vector<5x64xf32>
    %362 = arith.mulf %360, %361 : vector<5x64xf32>
    %cst_233 = arith.constant 4.471500e-02 : f32
    %363 = vector.broadcast %cst_233 : f32 to vector<5x64xf32>
    %364 = arith.mulf %363, %362 : vector<5x64xf32>
    %365 = arith.addf %360, %364 : vector<5x64xf32>
    %cst_234 = arith.constant 0.797884583 : f32
    %366 = vector.broadcast %cst_234 : f32 to vector<5x64xf32>
    %367 = arith.mulf %366, %365 : vector<5x64xf32>
    %368 = math.tanh %367 : vector<5x64xf32>
    %cst_235 = arith.constant 1.000000e+00 : f32
    %369 = vector.broadcast %cst_235 : f32 to vector<5x64xf32>
    %370 = arith.addf %369, %368 : vector<5x64xf32>
    %cst_236 = arith.constant 5.000000e-01 : f32
    %371 = vector.broadcast %cst_236 : f32 to vector<5x64xf32>
    %372 = arith.mulf %371, %370 : vector<5x64xf32>
    %373 = arith.mulf %360, %372 : vector<5x64xf32>
    %c1_237 = arith.constant 1 : index
    %c0_238 = arith.constant 0 : index
    %c0_239 = arith.constant 0 : index
    %374 = vector.load %arg14[%c1_237, %c0_238, %c0_239] : memref<2x64x32xf32, #tpu.memory_space<vmem>>, vector<1x64x32xf32>
    %375 = vector.shape_cast %374 : vector<1x64x32xf32> to vector<64x32xf32>
    %cst_240 = arith.constant dense<0.000000e+00> : vector<5x32xf32>
    %376 = tpu.matmul %373, %375, %cst_240 {dimension_numbers = #tpu.dot_dimension_numbers<[1], [0], [0], [1], [0, 0, 1, 1], [], []>} : vector<5x64xf32>, vector<64x32xf32>, vector<5x32xf32> -> vector<5x32xf32>
    %c1_241 = arith.constant 1 : index
    %c0_242 = arith.constant 0 : index
    %c0_243 = arith.constant 0 : index
    %377 = vector.load %arg15[%c1_241, %c0_242, %c0_243] : memref<2x1x32xf32, #tpu.memory_space<vmem>>, vector<1x1x32xf32>
    %378 = vector.shape_cast %377 : vector<1x1x32xf32> to vector<1x32xf32>
    %379 = vector.broadcast %378 : vector<1x32xf32> to vector<5x32xf32>
    %380 = arith.addf %376, %379 : vector<5x32xf32>
    %381 = arith.addf %327, %380 : vector<5x32xf32>
    %cst_244 = arith.constant 2.500000e-01 : f32
    %382 = vector.broadcast %cst_244 : f32 to vector<5x5xf32>
    %383 = arith.mulf %316, %382 : vector<5x5xf32>
    %384 = arith.addf %383, %10 : vector<5x5xf32>
    %cst_245 = arith.constant dense<0.000000e+00> : vector<5xf32>
    %385 = vector.multi_reduction <add>, %384, %cst_245 [1] : vector<5x5xf32> to vector<5xf32>
    %386 = vector.shape_cast %385 : vector<5xf32> to vector<5x1xf32>
    %387 = vector.broadcast %386 : vector<5x1xf32> to vector<5x5xf32>
    %388 = arith.divf %384, %387 : vector<5x5xf32>
    %cst_246 = arith.constant dense<0.000000e+00> : vector<5x5xf32>
    %389 = tpu.matmul %388, %199, %cst_246 {dimension_numbers = #tpu.dot_dimension_numbers<[1], [0], [0], [1], [0, 0, 1, 1], [], []>} : vector<5x5xf32>, vector<5x5xf32>, vector<5x5xf32> -> vector<5x5xf32>
    %c0_247 = arith.constant 0 : index
    %c0_248 = arith.constant 0 : index
    %390 = vector.load %arg16[%c0_247, %c0_248] : memref<1x32xf32, #tpu.memory_space<vmem>>, vector<1x32xf32>
    %c0_249 = arith.constant 0 : index
    %c0_250 = arith.constant 0 : index
    %391 = vector.load %arg17[%c0_249, %c0_250] : memref<1x32xf32, #tpu.memory_space<vmem>>, vector<1x32xf32>
    %cst_251 = arith.constant dense<0.000000e+00> : vector<5xf32>
    %392 = vector.multi_reduction <add>, %381, %cst_251 [1] : vector<5x32xf32> to vector<5xf32>
    %393 = vector.shape_cast %392 : vector<5xf32> to vector<5x1xf32>
    %cst_252 = arith.constant 3.200000e+01 : f32
    %394 = vector.broadcast %cst_252 : f32 to vector<5x1xf32>
    %395 = arith.divf %393, %394 : vector<5x1xf32>
    %396 = vector.broadcast %395 : vector<5x1xf32> to vector<5x32xf32>
    %397 = arith.subf %381, %396 : vector<5x32xf32>
    %398 = arith.mulf %397, %397 : vector<5x32xf32>
    %cst_253 = arith.constant dense<0.000000e+00> : vector<5xf32>
    %399 = vector.multi_reduction <add>, %398, %cst_253 [1] : vector<5x32xf32> to vector<5xf32>
    %400 = vector.shape_cast %399 : vector<5xf32> to vector<5x1xf32>
    %cst_254 = arith.constant 3.200000e+01 : f32
    %401 = vector.broadcast %cst_254 : f32 to vector<5x1xf32>
    %402 = arith.divf %400, %401 : vector<5x1xf32>
    %403 = vector.broadcast %395 : vector<5x1xf32> to vector<5x32xf32>
    %404 = arith.subf %381, %403 : vector<5x32xf32>
    %cst_255 = arith.constant 9.99999997E-7 : f32
    %405 = vector.broadcast %cst_255 : f32 to vector<5x1xf32>
    %406 = arith.addf %402, %405 : vector<5x1xf32>
    %407 = math.rsqrt %406 : vector<5x1xf32>
    %408 = vector.broadcast %407 : vector<5x1xf32> to vector<5x32xf32>
    %409 = arith.mulf %404, %408 : vector<5x32xf32>
    %410 = vector.broadcast %390 : vector<1x32xf32> to vector<5x32xf32>
    %411 = arith.mulf %409, %410 : vector<5x32xf32>
    %412 = vector.broadcast %391 : vector<1x32xf32> to vector<5x32xf32>
    %413 = arith.addf %411, %412 : vector<5x32xf32>
    %414 = vector.extract_strided_slice %413 {offsets = [0, 0], sizes = [1, 32], strides = [1, 1]} : vector<5x32xf32> to vector<1x32xf32>
    %c0_256 = arith.constant 0 : index
    %c0_257 = arith.constant 0 : index
    %415 = vector.load %arg18[%c0_256, %c0_257] : memref<32x10xf32, #tpu.memory_space<vmem>>, vector<32x10xf32>
    %cst_258 = arith.constant dense<0.000000e+00> : vector<1x10xf32>
    %416 = tpu.matmul %414, %415, %cst_258 {dimension_numbers = #tpu.dot_dimension_numbers<[1], [0], [0], [1], [0, 0, 1, 1], [], []>} : vector<1x32xf32>, vector<32x10xf32>, vector<1x10xf32> -> vector<1x10xf32>
    %c0_259 = arith.constant 0 : index
    %c0_260 = arith.constant 0 : index
    %417 = vector.load %arg19[%c0_259, %c0_260] : memref<1x10xf32, #tpu.memory_space<vmem>>, vector<1x10xf32>
    %418 = arith.addf %416, %417 : vector<1x10xf32>
    %c0_261 = arith.constant 0 : index
    %c0_262 = arith.constant 0 : index
    %c0_263 = arith.constant 0 : index
    %419 = vector.load %arg20[%c0_261, %c0_262, %c0_263] : memref<1x1x10xf32, #tpu.memory_space<vmem>>, vector<1x1x10xf32>
    %420 = vector.shape_cast %419 : vector<1x1x10xf32> to vector<1x10xf32>
    %421 = vector.shape_cast %418 : vector<1x10xf32> to vector<1x1x10xf32>
    tpu.vector_store %arg20[%c0_261, %c0_262, %c0_263], %421 {strides = array<i32>} : memref<1x1x10xf32, #tpu.memory_space<vmem>>, vector<1x1x10xf32>,
    %c0_264 = arith.constant 0 : index
    %c0_265 = arith.constant 0 : index
    %c0_266 = arith.constant 0 : index
    %422 = vector.load %arg22[%c0_264, %c0_265, %c0_266] : memref<1x5x5xf32, #tpu.memory_space<vmem>>, vector<1x5x5xf32>
    %423 = vector.shape_cast %422 : vector<1x5x5xf32> to vector<5x5xf32>
    %424 = vector.shape_cast %389 : vector<5x5xf32> to vector<1x5x5xf32>
    tpu.vector_store %arg22[%c0_264, %c0_265, %c0_266], %424 {strides = array<i32>} : memref<1x5x5xf32, #tpu.memory_space<vmem>>, vector<1x5x5xf32>,
    return
  }
  func.func @transform_0(%arg0: i32) -> (i32, i32, i32) {
    %c0_i32 = arith.constant 0 : i32
    %c0_i32_0 = arith.constant 0 : i32
    %c0_i32_1 = arith.constant 0 : i32
    return %arg0, %c0_i32, %c0_i32_0 : i32, i32, i32
  }
  func.func @transform_1(%arg0: i32) -> (i32, i32) {
    %c0_i32 = arith.constant 0 : i32
    %c0_i32_0 = arith.constant 0 : i32
    %c0_i32_1 = arith.constant 0 : i32
    return %c0_i32, %c0_i32_0 : i32, i32
  }
  func.func @transform_2(%arg0: i32) -> (i32, i32) {
    %c0_i32 = arith.constant 0 : i32
    %c0_i32_0 = arith.constant 0 : i32
    %c0_i32_1 = arith.constant 0 : i32
    return %c0_i32, %c0_i32_0 : i32, i32
  }
  func.func @transform_3(%arg0: i32) -> (i32, i32, i32) {
    %c0_i32 = arith.constant 0 : i32
    %c0_i32_0 = arith.constant 0 : i32
    %c0_i32_1 = arith.constant 0 : i32
    %c0_i32_2 = arith.constant 0 : i32
    return %c0_i32, %c0_i32_0, %c0_i32_1 : i32, i32, i32
  }
  func.func @transform_4(%arg0: i32) -> (i32, i32, i32) {
    %c0_i32 = arith.constant 0 : i32
    %c0_i32_0 = arith.constant 0 : i32
    %c0_i32_1 = arith.constant 0 : i32
    %c0_i32_2 = arith.constant 0 : i32
    return %c0_i32, %c0_i32_0, %c0_i32_1 : i32, i32, i32
  }
  func.func @transform_5(%arg0: i32) -> (i32, i32, i32) {
    %c0_i32 = arith.constant 0 : i32
    %c0_i32_0 = arith.constant 0 : i32
    %c0_i32_1 = arith.constant 0 : i32
    %c0_i32_2 = arith.constant 0 : i32
    return %c0_i32, %c0_i32_0, %c0_i32_1 : i32, i32, i32
  }
  func.func @transform_6(%arg0: i32) -> (i32, i32, i32) {
    %c0_i32 = arith.constant 0 : i32
    %c0_i32_0 = arith.constant 0 : i32
    %c0_i32_1 = arith.constant 0 : i32
    %c0_i32_2 = arith.constant 0 : i32
    return %c0_i32, %c0_i32_0, %c0_i32_1 : i32, i32, i32
  }
  func.func @transform_7(%arg0: i32) -> (i32, i32, i32) {
    %c0_i32 = arith.constant 0 : i32
    %c0_i32_0 = arith.constant 0 : i32
    %c0_i32_1 = arith.constant 0 : i32
    %c0_i32_2 = arith.constant 0 : i32
    return %c0_i32, %c0_i32_0, %c0_i32_1 : i32, i32, i32
  }
  func.func @transform_8(%arg0: i32) -> (i32, i32, i32) {
    %c0_i32 = arith.constant 0 : i32
    %c0_i32_0 = arith.constant 0 : i32
    %c0_i32_1 = arith.constant 0 : i32
    %c0_i32_2 = arith.constant 0 : i32
    return %c0_i32, %c0_i32_0, %c0_i32_1 : i32, i32, i32
  }
  func.func @transform_9(%arg0: i32) -> (i32, i32, i32) {
    %c0_i32 = arith.constant 0 : i32
    %c0_i32_0 = arith.constant 0 : i32
    %c0_i32_1 = arith.constant 0 : i32
    %c0_i32_2 = arith.constant 0 : i32
    return %c0_i32, %c0_i32_0, %c0_i32_1 : i32, i32, i32
  }
  func.func @transform_10(%arg0: i32) -> (i32, i32, i32) {
    %c0_i32 = arith.constant 0 : i32
    %c0_i32_0 = arith.constant 0 : i32
    %c0_i32_1 = arith.constant 0 : i32
    %c0_i32_2 = arith.constant 0 : i32
    return %c0_i32, %c0_i32_0, %c0_i32_1 : i32, i32, i32
  }
  func.func @transform_11(%arg0: i32) -> (i32, i32, i32) {
    %c0_i32 = arith.constant 0 : i32
    %c0_i32_0 = arith.constant 0 : i32
    %c0_i32_1 = arith.constant 0 : i32
    %c0_i32_2 = arith.constant 0 : i32
    return %c0_i32, %c0_i32_0, %c0_i32_1 : i32, i32, i32
  }
  func.func @transform_12(%arg0: i32) -> (i32, i32, i32) {
    %c0_i32 = arith.constant 0 : i32
    %c0_i32_0 = arith.constant 0 : i32
    %c0_i32_1 = arith.constant 0 : i32
    %c0_i32_2 = arith.constant 0 : i32
    return %c0_i32, %c0_i32_0, %c0_i32_1 : i32, i32, i32
  }
  func.func @transform_13(%arg0: i32) -> (i32, i32, i32) {
    %c0_i32 = arith.constant 0 : i32
    %c0_i32_0 = arith.constant 0 : i32
    %c0_i32_1 = arith.constant 0 : i32
    %c0_i32_2 = arith.constant 0 : i32
    return %c0_i32, %c0_i32_0, %c0_i32_1 : i32, i32, i32
  }
  func.func @transform_14(%arg0: i32) -> (i32, i32, i32) {
    %c0_i32 = arith.constant 0 : i32
    %c0_i32_0 = arith.constant 0 : i32
    %c0_i32_1 = arith.constant 0 : i32
    %c0_i32_2 = arith.constant 0 : i32
    return %c0_i32, %c0_i32_0, %c0_i32_1 : i32, i32, i32
  }
  func.func @transform_15(%arg0: i32) -> (i32, i32) {
    %c0_i32 = arith.constant 0 : i32
    %c0_i32_0 = arith.constant 0 : i32
    %c0_i32_1 = arith.constant 0 : i32
    return %c0_i32, %c0_i32_0 : i32, i32
  }
  func.func @transform_16(%arg0: i32) -> (i32, i32) {
    %c0_i32 = arith.constant 0 : i32
    %c0_i32_0 = arith.constant 0 : i32
    %c0_i32_1 = arith.constant 0 : i32
    return %c0_i32, %c0_i32_0 : i32, i32
  }
  func.func @transform_17(%arg0: i32) -> (i32, i32) {
    %c0_i32 = arith.constant 0 : i32
    %c0_i32_0 = arith.constant 0 : i32
    %c0_i32_1 = arith.constant 0 : i32
    return %c0_i32, %c0_i32_0 : i32, i32
  }
  func.func @transform_18(%arg0: i32) -> (i32, i32) {
    %c0_i32 = arith.constant 0 : i32
    %c0_i32_0 = arith.constant 0 : i32
    %c0_i32_1 = arith.constant 0 : i32
    return %c0_i32, %c0_i32_0 : i32, i32
  }
  func.func @transform_19(%arg0: i32) -> (i32, i32, i32) {
    %c0_i32 = arith.constant 0 : i32
    %c0_i32_0 = arith.constant 0 : i32
    %c0_i32_1 = arith.constant 0 : i32
    return %arg0, %c0_i32, %c0_i32_0 : i32, i32, i32
  }
  func.func @transform_20(%arg0: i32) -> (i32, i32, i32, i32) {
    %c0_i32 = arith.constant 0 : i32
    %c0_i32_0 = arith.constant 0 : i32
    %c0_i32_1 = arith.constant 0 : i32
    %c0_i32_2 = arith.constant 0 : i32
    return %arg0, %c0_i32, %c0_i32_0, %c0_i32_1 : i32, i32, i32, i32
  }
  func.func @transform_21(%arg0: i32) -> (i32, i32, i32) {
    %c0_i32 = arith.constant 0 : i32
    %c0_i32_0 = arith.constant 0 : i32
    %c0_i32_1 = arith.constant 0 : i32
    return %arg0, %c0_i32, %c0_i32_0 : i32, i32, i32
  }
}

</mosaic_0001>

<bundles_post_ra>
// kernel: squeeze.1
= control target key start
LH: loop header
LB: loop body
LE: loop exit
PB: predicated region body
PF: predicated region fallthrough
CT: control target
= control target key end

     0   :  { %vm8_vm0 = vcmask 15360   ;;  %s52_s0 = inlined_call_operand.vmem [shape: f32[2,4], index: 0, kind: input, shape index: {}]   ;;  %s53_s1 = inlined_call_operand.vmem [shape: f32[2,2,2], index: 1, kind: output, shape index: {}]  }
   0x1   :  { %v5_v0 = vld [vmem:[%s52_s0] sm:$0x3]  ;;  %s32_s0 = smov 126  }
   0x2   :  { %6 = vst [vmem:[#allocation1] sm:$0x3] %v5_v0 }
   0x9   :  { %v10_v1 = vld [vmem:[#allocation1] sm:$0x3]  }
   0xa   :  { %v7_v2 = vld [vmem:[#allocation1] sm:$0x3]   ;;  %11 = vrot.lane.b32.xlu0 %v10_v1, %s32_s0 }
   0xb   :  { %9 = vst.msk [vmem:[#allocation0] ss:$8 sm:$0x3] %vm8_vm0, %v7_v2  }
  0x7c   :  { %v12_v3 = vpop.permute.xlu0 %11  }
  0x7d   :  { %15 = vst.msk [vmem:[#allocation0 + $0x1] ss:$8 sm:$0x3] %vm8_vm0, %v12_v3  }
  0x84   :  { %v20_v4 = vld [vmem:[#allocation0] sm:$0x3]  ;;  %v25_v5 = vld [vmem:[#allocation0 + $0x8] sm:$0x3] }
  0x85   :  { %23 = vst [vmem:[%s53_s1] sm:$0x3] %v20_v4  ;;  %30 = vst [vmem:[%s53_s1 + $0x2] sm:$0x3] %v25_v5 }

// kernel: mainnet_forward.2
= control target key start
LH: loop header
LB: loop body
LE: loop exit
PB: predicated region body
PF: predicated region fallthrough
CT: control target
= control target key end

     0   :  { %s5259_s0 = inlined_call_operand.vmem [shape: f32[2,5,768], index: 0, kind: input, shape index: {}]   ;;  %s5260_s1 = inlined_call_operand.vmem [shape: f32[5,32], index: 1, kind: input, shape index: {}]   ;;  %s5261_s2 = inlined_call_operand.vmem [shape: f32[768,32], index: 2, kind: input, shape index: {}]   ;;  %s5262_s3 = inlined_call_operand.vmem [shape: f32[2,1,32], index: 3, kind: input, shape index: {}]   ;;  %s5263_s4 = inlined_call_operand.vmem [shape: f32[2,1,32], index: 4, kind: input, shape index: {}]   ;;  %s5264_s5 = inlined_call_operand.vmem [shape: f32[2,32,96], index: 5, kind: input, shape index: {}]   ;;  %s5265_s6 = inlined_call_operand.vmem [shape: f32[2,1,96], index: 6, kind: input, shape index: {}]   ;;  %s5266_s7 = inlined_call_operand.vmem [shape: f32[2,32,32], index: 7, kind: input, shape index: {}]   ;;  %s5267_s8 = inlined_call_operand.vmem [shape: f32[2,1,32], index: 8, kind: input, shape index: {}]   ;;  %s5268_s9 = inlined_call_operand.vmem [shape: f32[2,1,32], index: 9, kind: input, shape index: {}]   ;;  %s5269_s10 = inlined_call_operand.vmem [shape: f32[2,1,32], index: 10, kind: input, shape index: {}]   ;;  %s5270_s11 = inlined_call_operand.vmem [shape: f32[2,32,64], index: 11, kind: input, shape index: {}]   ;;  %s5271_s12 = inlined_call_operand.vmem [shape: f32[2,1,64], index: 12, kind: input, shape index: {}]   ;;  %s5272_s13 = inlined_call_operand.vmem [shape: f32[2,64,32], index: 13, kind: input, shape index: {}]   ;;  %s5273_s14 = inlined_call_operand.vmem [shape: f32[2,1,32], index: 14, kind: input, shape index: {}]   ;;  %s5274_s15 = inlined_call_operand.vmem [shape: f32[1,32], index: 15, kind: input, shape index: {}]   ;;  %s5275_s16 = inlined_call_operand.vmem [shape: f32[1,32], index: 16, kind: input, shape index: {}]   ;;  %s5276_s17 = inlined_call_operand.vmem [shape: f32[32,10], index: 17, kind: input, shape index: {}]   ;;  %s5277_s18 = inlined_call_operand.vmem [shape: f32[1,10], index: 18, kind: input, shape index: {}]   ;;  %s5278_s19 = inlined_call_operand.hbm [shape: f32[2,1,10], index: 19, kind: output, shape index: {0}]   ;;  %s5279_s20 = inlined_call_operand.vmem [shape: f32[2,8,5,5], index: 20, kind: output, shape index: {1}]   ;;  %s5280_s21 = inlined_call_operand.vmem [shape: f32[2,5,5], index: 21, kind: output, shape index: {2}]  }
   0x1   :  { %5308 = sst [smem:[#allocation14_spill]] %s5259_s0 }
   0x2   :  { %5309 = sst [smem:[#allocation15_spill]] %s5260_s1 }
   0x3   :  { %5310 = sst [smem:[#allocation16_spill]] %s5261_s2 }
   0x4   :  { %5311 = sst [smem:[#allocation17_spill]] %s5262_s3 }
   0x5   :  { %5312 = sst [smem:[#allocation18_spill]] %s5263_s4 }
   0x6   :  { %5313 = sst [smem:[#allocation19_spill]] %s5264_s5 }
   0x7   :  { %5314 = sst [smem:[#allocation20_spill]] %s5265_s6 }
   0x8   :  { %5315 = sst [smem:[#allocation21_spill]] %s5266_s7 }
   0x9   :  { %5316 = sst [smem:[#allocation22_spill]] %s5277_s18 }
   0xa   :  { %5317 = sst [smem:[#allocation23_spill]] %s5278_s19 }
   0xb   :  { %27 = vsyncpa [#allocation5], 0 }
   0xc   :  { %29 = vsyncpa [#allocation5 + $0x1], 0  ;;  %s4375_s2 = smov 0   ;;  %s4377_s25 = smov 0  }
   0xd   :  { %s4379_s26 = smov 0   ;;  %s4381_s27 = smov 0  }
   0xe LB: > { %5318 = sst [smem:[#allocation7_spill]] %s4234_s2  ;;  %s4396_s3 = sadd.s32 4294967295, %s4246_s27   ;;  %s4246_s27 = sphi %s4381_s27, %s5356_s27   ;;  %s4242_s26 = sphi %s4379_s26, %s5358_s26   ;;  %s4238_s25 = sphi %s4377_s25, %s5360_s25   ;;  %s4234_s2 = sphi %s4375_s2, %s5359_s2  }
   0xf   : > { %5319 = sst [smem:[#allocation8_spill]] %s4242_s26  ;;  %s3579_s28 = sadd.s32 4294967294, %s4246_s27  }
  0x10   : > { %5320 = sst [smem:[#allocation9_spill]] %s4246_s27  ;;  %s4400_s29 = sadd.s32 1, %s4246_s27  }
  0x11   : > { %5321 = sst [smem:[#allocation10_spill]] %s4400_s29  ;;  %s446_s0 = sadd.s32 1, %s4242_s26 }
  0x12   : > { %s443_s4 = ssub.s32 %s4246_s27, %s4400_s29  ;;  %p456_p0 = scmp.ne.s32.totalorder %s4242_s26, %s4238_s25 }
  0x13   : > { %p444_p1 = scmp.eq.s32.totalorder %s443_s4, 0  ;;  %p457_p2 = scmp.eq.s32.totalorder %s4396_s3, 1 }
  0x14   : > { %p462_p3 = scmp.ne.s32.totalorder %s4238_s25, %s4234_s2  ;;  %p463_p4 = scmp.eq.s32.totalorder %s3579_s28, 1 }
  0x15   : > { %s4411_s30 = scalar_select %p444_p1, %s4242_s26, %s446_s0  }
  0x16   : > { %p4413_p5 = por %p457_p2, %p456_p0  ;;  %p4417_p6 = por %p463_p4, %p462_p3 }
  0x17   : > { %5322 = sst [smem:[#allocation11_spill]] %s4411_s30  ;;  %p3582_p7 = scmp.ge.s32.totalorder %s4246_s27, 1 }
  0x18   : > { %s5323_s5 = scalar_select %p4413_p5, 1, 0 }
  0x19   : > { %s5325_s22 = scalar_select %p4417_p6, 1, 0 }
  0x1a   : > { %5324 = sst [smem:[#allocation12_spill]] %s5323_s5  ;;  %p595_p8 = scmp.lt.s32.totalorder %s4246_s27, 3 }
  0x1b   : > { %5326 = sst [smem:[#allocation13_spill]] %s5325_s22 }
  0x1c   : > { %p596_p9 = pnand %p3582_p7, %p595_p8 }
  0x1d   : > { %s5327_s24 = sld [smem:[#allocation16_spill]] (!%p596_p9)  ;;  %p663_p10 = scmp.lt.s32.totalorder (!%p596_p9), %s4396_s3, 1 }
  0x1e   : > { %599 = sbr.rel (%p596_p9) target bundleno = 6614 (0x19d6), region = 96  ;;  %s5328_s18 = sld [smem:[#allocation14_spill]] (!%p596_p9) }
  0x1f   : > { %s5329_s19 = sld [smem:[#allocation15_spill]] (!%p596_p9)  ;;  %s5304_s30 = smov (!%p596_p9), 96  }
  0x20   : > { %s5330_s27 = sld [smem:[#allocation19_spill]] (!%p596_p9)  ;;  %s4252_s28 = smov (!%p596_p9), 88  }
  0x21   : > { %s5335_s6 = sld [smem:[#allocation20_spill]] (!%p596_p9)  ;;  %s5303_s26 = smov (!%p596_p9), 120  }
  0x22   : > { %s5294_s4 = smov (!%p596_p9), 56   ;;  %s5299_s2 = smov (!%p596_p9), 104  }
  0x23   : > { %v714_v0 = vld [vmem:[%s5327_s24 + $0xf8] sm:$0xff]  ;;  %v713_v2 = vld [vmem:[%s5327_s24 + $0xf0] sm:$0xff]  ;;  %v712_v6 = vld [vmem:[%s5327_s24 + $0xe8] sm:$0xff]  ;;  %s4544_s1 = scalar_select %p663_p10, %s4396_s3, 1  ;;  %vm999_vm0 = vcmask 258048   ;;  %vm4249_vm1 = vmmov 0  }
  0x24   : > { %v698_v1 = vld [vmem:[%s5327_s24 + $0x78] sm:$0xff]  ;;  %3688 = vmatprep.subr.mxu0 %v714_v0  ;;  %v697_v4 = vld [vmem:[%s5327_s24 + $0x70] sm:$0xff]  ;;  %v696_v8 = vld [vmem:[%s5327_s24 + $0x68] sm:$0xff]  ;;  %vm1039_vm2 = vcmask 261120   ;;  %vm1113_vm3 = vcmask 782336   ;;  %vm1119_vm4 = vcmask 64512  }
  0x25   : > { %v746_v3 = vld [vmem:[%s5327_s24 + $0x1f8] sm:$0xff]  ;;  %3689 = vmatpush3.msra.mxu0 %v698_v1  ;;  %v745_v7 = vld [vmem:[%s5327_s24 + $0x1f0] sm:$0xff]  ;;  %v744_v10 = vld [vmem:[%s5327_s24 + $0x1e8] sm:$0xff]  ;;  %s4080_s22 = smul.u32 48, %s4544_s1  ;;  %vm1215_vm5 = vcmask 1044480   ;;  %vm1195_vm6 = vcmask 36864  }
  0x26   : > { %v730_v5 = vld [vmem:[%s5327_s24 + $0x178] sm:$0xff]  ;;  %3723 = vmatprep.subr.mxu1 %v746_v3  ;;  %3690 = vmatprep.subr.mxu0 %v713_v2  ;;  %v729_v9 = vld [vmem:[%s5327_s24 + $0x170] sm:$0xff]  ;;  %v711_v11 = vld [vmem:[%s5327_s24 + $0xe0] sm:$0xff]  ;;  %s5331_s0 = smov %s5330_s27  ;;  %s3687_s29 = sshll.u32 %s4544_s1, 6  ;;  %vm1211_vm7 = vcmask 39936   ;;  %vm1288_vm8 = vcmask 61440  }
  0x27   : > { %3724 = vmatpush3.msra.mxu1 %v730_v5  ;;  %3691 = vmatpush3.msra.mxu0 %v697_v4  ;;  %v728_v12 = vld [vmem:[%s5327_s24 + $0x168] sm:$0xff]  ;;  %v695_v13 = vld [vmem:[%s5327_s24 + $0x60] sm:$0xff]  ;;  %v710_v15 = vld [vmem:[%s5327_s24 + $0xd8] sm:$0xff]  ;;  %s4598_s5 = scalar_lea.vmem %s5328_s18, %s4080_s22  ;;  %s5295_s22 = smov 64   ;;  %vm1466_vm9 = vcmask 127040   ;;  %vm1644_vm10 = vcmask 192640  }
  0x28   : > { %3725 = vmatprep.subr.mxu1 %v745_v7  ;;  %3692 = vmatprep.subr.mxu0 %v712_v6  ;;  %v743_v14 = vld [vmem:[%s5327_s24 + $0x1e0] sm:$0xff]  ;;  %v694_v17 = vld [vmem:[%s5327_s24 + $0x58] sm:$0xff]  ;;  %v709_v19 = vld [vmem:[%s5327_s24 + $0xd0] sm:$0xff]  ;;  %s5302_s18 = smov 80   ;;  %s5336_s7 = sld [smem:[#allocation21_spill]]  ;;  %vm1822_vm11 = vcmask 258240  }
  0x29   : > { %3726 = vmatpush3.msra.mxu1 %v729_v9  ;;  %3693 = vmatpush3.msra.mxu0 %v696_v8  ;;  %v727_v16 = vld [vmem:[%s5327_s24 + $0x160] sm:$0xff]  ;;  %v742_v18 = vld [vmem:[%s5327_s24 + $0x1d8] sm:$0xff]  ;;  %v693_v21 = vld [vmem:[%s5327_s24 + $0x50] sm:$0xff]  ;;  %vm2047_vm12 = vcmask 523264   ;;  %vm3444_vm14 = vcmask 73728  }
  0x2a   : > { %3727 = vmatprep.subr.mxu1 %v744_v10  ;;  %3694 = vmatprep.subr.mxu0 %v711_v11  ;;  %v726_v20 = vld [vmem:[%s5327_s24 + $0x158] sm:$0xff]  ;;  %v741_v22 = vld [vmem:[%s5327_s24 + $0x1d0] sm:$0xff]  ;;  %v708_v23 = vld [vmem:[%s5327_s24 + $0xc8] sm:$0xff] }
  0x2b   : > { %3728 = vmatpush3.msra.mxu1 %v728_v12  ;;  %3695 = vmatpush3.msra.mxu0 %v695_v13  ;;  %v725_v24 = vld [vmem:[%s5327_s24 + $0x150] sm:$0xff]  ;;  %v692_v25 = vld [vmem:[%s5327_s24 + $0x48] sm:$0xff]  ;;  %v707_v27 = vld [vmem:[%s5327_s24 + $0xc0] sm:$0xff] }
  0x2c   : > { %3729 = vmatprep.subr.mxu1 %v743_v14  ;;  %3696 = vmatprep.subr.mxu0 %v710_v15  ;;  %v740_v26 = vld [vmem:[%s5327_s24 + $0x1c8] sm:$0xff]  ;;  %v691_v29 = vld [vmem:[%s5327_s24 + $0x40] sm:$0xff]  ;;  %v706_v31 = vld [vmem:[%s5327_s24 + $0xb8] sm:$0xff] }
  0x2d   : > { %3730 = vmatpush3.msra.mxu1 %v727_v16  ;;  %3697 = vmatpush3.msra.mxu0 %v694_v17  ;;  %v724_v28 = vld [vmem:[%s5327_s24 + $0x148] sm:$0xff]  ;;  %v739_v30 = vld [vmem:[%s5327_s24 + $0x1c0] sm:$0xff]  ;;  %v690_v33 = vld [vmem:[%s5327_s24 + $0x38] sm:$0xff] }
  0x2e   : > { %3731 = vmatprep.subr.mxu1 %v742_v18  ;;  %3698 = vmatprep.subr.mxu0 %v709_v19  ;;  %v723_v32 = vld [vmem:[%s5327_s24 + $0x140] sm:$0xff]  ;;  %v738_v34 = vld [vmem:[%s5327_s24 + $0x1b8] sm:$0xff]  ;;  %v705_v35 = vld [vmem:[%s5327_s24 + $0xb0] sm:$0xff] }
  0x2f   : > { %3732 = vmatpush3.msra.mxu1 %v726_v20  ;;  %3699 = vmatpush3.msra.mxu0 %v693_v21  ;;  %v722_v36 = vld [vmem:[%s5327_s24 + $0x138] sm:$0xff]  ;;  %v689_v37 = vld [vmem:[%s5327_s24 + $0x30] sm:$0xff]  ;;  %v704_v39 = vld [vmem:[%s5327_s24 + $0xa8] sm:$0xff] }
  0x30   : > { %3733 = vmatprep.subr.mxu1 %v741_v22  ;;  %3700 = vmatprep.subr.mxu0 %v708_v23  ;;  %v737_v38 = vld [vmem:[%s5327_s24 + $0x1b0] sm:$0xff]  ;;  %v688_v41 = vld [vmem:[%s5327_s24 + $0x28] sm:$0xff]  ;;  %v703_v43 = vld [vmem:[%s5327_s24 + $0xa0] sm:$0xff] }
  0x31   : > { %3734 = vmatpush3.msra.mxu1 %v725_v24  ;;  %3701 = vmatpush3.msra.mxu0 %v692_v25  ;;  %v721_v40 = vld [vmem:[%s5327_s24 + $0x130] sm:$0xff]  ;;  %v736_v42 = vld [vmem:[%s5327_s24 + $0x1a8] sm:$0xff]  ;;  %v687_v45 = vld [vmem:[%s5327_s24 + $0x20] sm:$0xff] }
  0x32   : > { %3735 = vmatprep.subr.mxu1 %v740_v26  ;;  %3702 = vmatprep.subr.mxu0 %v707_v27  ;;  %v720_v44 = vld [vmem:[%s5327_s24 + $0x128] sm:$0xff]  ;;  %v735_v46 = vld [vmem:[%s5327_s24 + $0x1a0] sm:$0xff]  ;;  %v702_v47 = vld [vmem:[%s5327_s24 + $0x98] sm:$0xff] }
  0x33   : > { %3736 = vmatpush3.msra.mxu1 %v724_v28  ;;  %3703 = vmatpush3.msra.mxu0 %v691_v29  ;;  %v719_v48 = vld [vmem:[%s5327_s24 + $0x120] sm:$0xff]  ;;  %v686_v49 = vld [vmem:[%s5327_s24 + $0x18] sm:$0xff]  ;;  %v701_v51 = vld [vmem:[%s5327_s24 + $0x90] sm:$0xff] }
  0x34   : > { %3737 = vmatprep.subr.mxu1 %v739_v30  ;;  %3704 = vmatprep.subr.mxu0 %v706_v31  ;;  %v734_v50 = vld [vmem:[%s5327_s24 + $0x198] sm:$0xff]  ;;  %v685_v53 = vld [vmem:[%s5327_s24 + $0x10] sm:$0xff]  ;;  %v700_v55 = vld [vmem:[%s5327_s24 + $0x88] sm:$0xff] }
  0x35   : > { %3738 = vmatpush3.msra.mxu1 %v723_v32  ;;  %3705 = vmatpush3.msra.mxu0 %v690_v33  ;;  %v718_v52 = vld [vmem:[%s5327_s24 + $0x118] sm:$0xff]  ;;  %v733_v54 = vld [vmem:[%s5327_s24 + $0x190] sm:$0xff]  ;;  %v684_v57 = vld [vmem:[%s5327_s24 + $0x8] sm:$0xff] }
  0x36   : > { %3739 = vmatprep.subr.mxu1 %v738_v34  ;;  %3706 = vmatprep.subr.mxu0 %v705_v35  ;;  %v717_v56 = vld [vmem:[%s5327_s24 + $0x110] sm:$0xff]  ;;  %v732_v58 = vld [vmem:[%s5327_s24 + $0x188] sm:$0xff]  ;;  %v699_v59 = vld [vmem:[%s5327_s24 + $0x80] sm:$0xff] }
  0x37   : > { %3740 = vmatpush3.msra.mxu1 %v722_v36  ;;  %3707 = vmatpush3.msra.mxu0 %v689_v37  ;;  %v678_v60 = vld [vmem:[%s4598_s5 + $0x8] sm:$0x1f]  ;;  %v683_v61 = vld [vmem:[%s5327_s24] sm:$0xff]  ;;  %v778_v1 = vld [vmem:[%s5327_s24 + $0x2f8] sm:$0xff] }
  0x38   : > { %3741 = vmatprep.subr.mxu1 %v737_v38  ;;  %3708 = vmatprep.subr.mxu0 %v704_v39  ;;  %v716_v62 = vld [vmem:[%s5327_s24 + $0x108] sm:$0xff]  ;;  %v677_v63 = vld [vmem:[%s4598_s5] sm:$0x1f]  ;;  %v680_v3 = vld [vmem:[%s4598_s5 + $0x18] sm:$0x1f] }
  0x39   : > { %3742 = vmatpush3.msra.mxu1 %v721_v40  ;;  %3709 = vmatpush3.msra.mxu0 %v688_v41  ;;  %v731_v0 = vld [vmem:[%s5327_s24 + $0x180] sm:$0xff]  ;;  %v762_v4 = vld [vmem:[%s5327_s24 + $0x278] sm:$0xff]  ;;  %v679_v5 = vld [vmem:[%s4598_s5 + $0x10] sm:$0x1f] }
  0x3a   : > { %3743 = vmatprep.subr.mxu1 %v736_v42  ;;  %3710 = vmatprep.subr.mxu0 %v703_v43  ;;  %v715_v2 = vld [vmem:[%s5327_s24 + $0x100] sm:$0xff]  ;;  %v777_v6 = vld [vmem:[%s5327_s24 + $0x2f0] sm:$0xff]  ;;  %v682_v8 = vld [vmem:[%s4598_s5 + $0x28] sm:$0x1f] }
  0x3b   : > { %3744 = vmatpush3.msra.mxu1 %v720_v44  ;;  %3711 = vmatpush3.msra.mxu0 %v687_v45  ;;  %v761_v7 = vld [vmem:[%s5327_s24 + $0x270] sm:$0xff]  ;;  %v776_v9 = vld [vmem:[%s5327_s24 + $0x2e8] sm:$0xff]  ;;  %v775_v11 = vld [vmem:[%s5327_s24 + $0x2e0] sm:$0xff] }
  0x3c   : > { %3745 = vmatprep.subr.mxu1 %v735_v46  ;;  %3712 = vmatprep.subr.mxu0 %v702_v47  ;;  %v760_v10 = vld [vmem:[%s5327_s24 + $0x268] sm:$0xff]  ;;  %v759_v12 = vld [vmem:[%s5327_s24 + $0x260] sm:$0xff]  ;;  %v774_v13 = vld [vmem:[%s5327_s24 + $0x2d8] sm:$0xff] }
  0x3d   : > { %3746 = vmatpush3.msra.mxu1 %v719_v48  ;;  %3713 = vmatpush3.msra.mxu0 %v686_v49  ;;  %v758_v14 = vld [vmem:[%s5327_s24 + $0x258] sm:$0xff]  ;;  %v773_v15 = vld [vmem:[%s5327_s24 + $0x2d0] sm:$0xff]  ;;  %v772_v17 = vld [vmem:[%s5327_s24 + $0x2c8] sm:$0xff] }
  0x3e   : > { %3747 = vmatprep.subr.mxu1 %v734_v50  ;;  %3714 = vmatprep.subr.mxu0 %v701_v51  ;;  %v757_v16 = vld [vmem:[%s5327_s24 + $0x250] sm:$0xff]  ;;  %v756_v18 = vld [vmem:[%s5327_s24 + $0x248] sm:$0xff]  ;;  %v771_v19 = vld [vmem:[%s5327_s24 + $0x2c0] sm:$0xff] }
  0x3f   : > { %3748 = vmatpush3.msra.mxu1 %v718_v52  ;;  %3715 = vmatpush3.msra.mxu0 %v685_v53  ;;  %v755_v20 = vld [vmem:[%s5327_s24 + $0x240] sm:$0xff]  ;;  %v770_v21 = vld [vmem:[%s5327_s24 + $0x2b8] sm:$0xff]  ;;  %v769_v23 = vld [vmem:[%s5327_s24 + $0x2b0] sm:$0xff] }
  0x40   : > { %3749 = vmatprep.subr.mxu1 %v733_v54  ;;  %3716 = vmatprep.subr.mxu0 %v700_v55  ;;  %v754_v22 = vld [vmem:[%s5327_s24 + $0x238] sm:$0xff]  ;;  %v753_v24 = vld [vmem:[%s5327_s24 + $0x230] sm:$0xff]  ;;  %v768_v25 = vld [vmem:[%s5327_s24 + $0x2a8] sm:$0xff] }
  0x41   : > { %3750 = vmatpush3.msra.mxu1 %v717_v56  ;;  %3717 = vmatpush3.msra.mxu0 %v684_v57  ;;  %v752_v26 = vld [vmem:[%s5327_s24 + $0x228] sm:$0xff]  ;;  %v767_v27 = vld [vmem:[%s5327_s24 + $0x2a0] sm:$0xff]  ;;  %v766_v29 = vld [vmem:[%s5327_s24 + $0x298] sm:$0xff]  ;;  %v4248_v57 = vmov 0.0  }
  0x42   : > { %3751 = vmatprep.subr.mxu1 %v732_v58  ;;  %3718 = vmatprep.subr.mxu0 %v699_v59  ;;  %v751_v28 = vld [vmem:[%s5327_s24 + $0x220] sm:$0xff]  ;;  %v750_v30 = vld [vmem:[%s5327_s24 + $0x218] sm:$0xff]  ;;  %v765_v31 = vld [vmem:[%s5327_s24 + $0x290] sm:$0xff] }
  0x43   : > { %844 = vmatprep.mubr.f32.mxu0 %v678_v60  ;;  %3719 = vmatpush3.msra.mxu0 %v683_v61  ;;  %v749_v32 = vld [vmem:[%s5327_s24 + $0x210] sm:$0xff]  ;;  %v764_v33 = vld [vmem:[%s5327_s24 + $0x288] sm:$0xff]  ;;  %v763_v35 = vld [vmem:[%s5327_s24 + $0x280] sm:$0xff] }
  0x44   : > { %3752 = vmatpush3.msra.mxu1 %v716_v62  ;;  %845 = vmatmul.mubr.f32.vlgmr.msra.gmra.mxu0 %v677_v63  ;;  %v748_v34 = vld [vmem:[%s5327_s24 + $0x208] sm:$0xff]  ;;  %v747_v36 = vld [vmem:[%s5327_s24 + $0x200] sm:$0xff]  ;;  %v1031_v58 = vld [vmem:[%s5330_s27 + $0x18] sm:$0xff]  ;;  %s5333_s27 = sld [smem:[#allocation18_spill]] }
  0x45   : > { %3753 = vmatprep.subr.mxu1 %v731_v0  ;;  %3758 = vmatprep.subr.mxu0 %v778_v1  ;;  %v681_v37 = vld [vmem:[%s4598_s5 + $0x20] sm:$0x1f]  ;;  %v1030_v59 = vld [vmem:[%s5331_s0 + $0x10] sm:$0xff]  ;;  %v1029_v60 = vld [vmem:[%s5331_s0 + $0x8] sm:$0xff]  ;;  %s5300_s5 = smov 72  }
  0x46   : > { %3754 = vmatpush3.msra.mxu1 %v715_v2  ;;  %914 = vmatprep.mubr.f32.mxu1 %v680_v3  ;;  %v779_v42 = vld [vmem:[%s5329_s19] sm:$0x1f]  ;;  %s5332_s19 = sld [smem:[#allocation17_spill]] }
  0x47   : > { %3759 = vmatpush3.msra.mxu0 %v762_v4  ;;  %915 = vmatmul.mubr.f32.vlgmr.msra.gmra.mxu1 %v679_v5  ;;  %v1028_v61 = vld [vmem:[%s5331_s0] sm:$0xff] }
  0x48   : > { %3760 = vmatprep.subr.mxu0 %v777_v6  ;;  %984 = vmatprep.mubr.f32.mxu0 %v682_v8 }
  0x49   : > { %3761 = vmatpush3.msra.mxu0 %v761_v7  ;;  %3880 = vmatprep.subr.mxu1 %v4248_v57  ;;  %v3590_v7 = vld [vmem:[%s5335_s6] ss:$0 sm:$0xff] }
  0x4a   : > { %3762 = vmatprep.subr.mxu0 %v776_v9  ;;  %3881 = vmatpush3.msra.mxu1 %v1031_v58  ;;  %s5334_s23 = smov %s5333_s27  ;;  %v3589_v4 = vld [vmem:[%s5333_s27] ss:$0 sm:$0xff]  ;;  %s4790_s27 = scalar_lea.vmem %s5279_s20, %s3687_s29 }
  0x4b   : > { %3763 = vmatpush3.msra.mxu0 %v760_v10  ;;  %3882 = vmatprep.subr.mxu1 %v4248_v57  ;;  %s5301_s29 = smov 112  }
  0x4c   : > { %3764 = vmatprep.subr.mxu0 %v775_v11  ;;  %3883 = vmatpush3.msra.mxu1 %v1030_v59  ;;  %v3588_v2 = vld [vmem:[%s5332_s19] ss:$0 sm:$0xff] }
  0x4d   : > { %3765 = vmatpush3.msra.mxu0 %v759_v12  ;;  %3888 = vmatprep.mubr.msk.f32.mxu1 %vm4249_vm1, %v4248_v57 }
  0x4e   : > { %3766 = vmatprep.subr.mxu0 %v774_v13  ;;  %3884 = vmatprep.subr.mxu1 %v4248_v57 }
  0x4f   : > { %3767 = vmatpush3.msra.mxu0 %v758_v14  ;;  %3885 = vmatpush3.msra.mxu1 %v1029_v60 }
  0x50   : > { %3768 = vmatprep.subr.mxu0 %v773_v15  ;;  %3886 = vmatprep.subr.mxu1 %v4248_v57 }
  0x51   : > { %3769 = vmatpush3.msra.mxu0 %v757_v16  ;;  %3887 = vmatpush3.msra.mxu1 %v1028_v61 }
  0x52   : > { %3770 = vmatprep.subr.mxu0 %v772_v17  ;;  %3891 = vmatprep.subr.mxu1 %v4248_v57 }
  0x53   : > { %3771 = vmatpush3.msra.mxu0 %v756_v18 }
  0x54   : > { %3772 = vmatprep.subr.mxu0 %v771_v19 }
  0x55   : > { %3773 = vmatpush3.msra.mxu0 %v755_v20 }
  0x56   : > { %3774 = vmatprep.subr.mxu0 %v770_v21 }
  0x57   : > { %3775 = vmatpush3.msra.mxu0 %v754_v22 }
  0x58   : > { %3776 = vmatprep.subr.mxu0 %v769_v23 }
  0x59   : > { %3777 = vmatpush3.msra.mxu0 %v753_v24 }
  0x5a   : > { %3778 = vmatprep.subr.mxu0 %v768_v25 }
  0x5b   : > { %3779 = vmatpush3.msra.mxu0 %v752_v26 }
  0x5c   : > { %3780 = vmatprep.subr.mxu0 %v767_v27 }
  0x5d   : > { %3781 = vmatpush3.msra.mxu0 %v751_v28 }
  0x5e   : > { %3782 = vmatprep.subr.mxu0 %v766_v29 }
  0x5f   : > { %3783 = vmatpush3.msra.mxu0 %v750_v30 }
  0x60   : > { %3784 = vmatprep.subr.mxu0 %v765_v31 }
  0x61   : > { %3785 = vmatpush3.msra.mxu0 %v749_v32 }
  0x62   : > { %3786 = vmatprep.subr.mxu0 %v764_v33 }
  0x63   : > { %3787 = vmatpush3.msra.mxu0 %v748_v34 }
  0x64   : > { %3788 = vmatprep.subr.mxu0 %v763_v35 }
  0x65   : > { %3789 = vmatpush3.msra.mxu0 %v747_v36 }
  0x66   : > { %985 = vmatmul.mubr.f32.vlgmr.msra.gmra.mxu0 %v681_v37  ;;  %3921 = vmatprep.subr.mxu0 %v4248_v57 }
  0x67   : > { %3923 = vmatprep.mubr.msk.f32.mxu0 %vm4249_vm1, %v4248_v57 }
 0x104   : > { %v3720_v38 = vpop.f32.mrf.mxu0 }
 0x106   : > { %v3721_v39 = vpop.f32.mrf.mxu0 }
 0x107   : > { %v3755_v40 = vpop.f32.mrf.mxu1  ;;  %v3722_v41 = vadd.f32 %v3721_v39, %v3720_v38 }
 0x109   : > { %v3756_v43 = vpop.f32.mrf.mxu1  ;;  %v847_v44 = vadd.f32 %v3722_v41, %v779_v42 }
 0x10a   : > { %v3757_v45 = vadd.f32 %v3756_v43, %v3755_v40 }
 0x10c   : > { %v917_v48 = vadd.f32 %v3757_v45, %v847_v44 }
 0x126   : > { %v3790_v46 = vpop.f32.mrf.mxu0 }
 0x128   : > { %v3791_v47 = vpop.f32.mrf.mxu0 }
 0x129   : > { %v3792_v49 = vadd.f32 %v3791_v47, %v3790_v46 }
 0x12b   : > { %v4732_v50 = vadd.f32 %v3792_v49, %v917_v48 }
 0x12d   : > { %v1000_v51 = vsel %vm999_vm0, %v4732_v50, 0.0 }
 0x12e   : > { %1001 = vadd.xlane.f32.xlu0 %v1000_v51 }
 0x1b7   : > { %v1002_v52 = vpop.xlane.xlu0 %1001 }
 0x1b8   : > { %v1004_v53 = vmul.f32 0.03125, %v1002_v52 }
 0x1ba   : > { %v1005_v54 = vsub.f32 %v4732_v50, %v1004_v53 }
 0x1bc   : > { %v1006_v55 = vmul.f32 %v1005_v54, %v1005_v54 }
 0x1be   : > { %v1007_v56 = vsel %vm999_vm0, %v1006_v55, 0.0 }
 0x1bf   : > { %1008 = vadd.xlane.f32.xlu0 %v1007_v56 }
 0x248   : > { %v1009_v62 = vpop.xlane.xlu0 %1008 }
 0x249   : > { %v1010_v63 = vmul.f32 0.03125, %v1009_v62 }
 0x24b   : > { %v1011_v0 = vadd.f32 1e-06, %v1010_v63 }
 0x24d   : > { %4136 = vrsqrt.f32 %v1011_v0 }
 0x25a   : > { %v4137_v1 = vpop.eup %4136 }
 0x25b   : > { %v1013_v3 = vmul.f32 %v4137_v1, %v1005_v54 }
 0x25d   : > { %v1020_v5 = vmul.f32 %v3588_v2, %v1013_v3 }
 0x25f   : > { %v1027_v6 = vadd.f32 %v3589_v4, %v1020_v5 }
 0x261   : > { %3889 = vmatmul.mubr.msk.f32.vlgmr.msra.gmra.mxu1 %vm1039_vm2, %v1027_v6 }
 0x262   : > { %3893 = vmatprep.mubr.msk.f32.mxu1 %vm4249_vm1, %v4248_v57 }
 0x321   : > { %v1109_v8 = vpop.f32.mrf.mxu1 }
 0x322   : > { %v1110_v9 = vadd.f32 %v3590_v7, %v1109_v8 }
 0x323   : > { %v3890_v10 = vpop.f32.mrf.mxu1 }
 0x324   : > { %1114 = vst.msk [vmem:[#allocation2] sm:$0x1f] %vm1113_vm3, %v1110_v9 }
 0x32b   : > { %v1115_v11 = vld [vmem:[#allocation2] sm:$0x1f] }
 0x32c   : > { %1209 = vrot.lane.b32.xlu0 %v1115_v11, %s5295_s22  ;;  %1117 = vrot.lane.b32.xlu1 %v1115_v11, %s5304_s30  ;;  %v1290_v23 = vld [vmem:[#allocation2] sm:$0x1f]  ;;  %s5298_s22 = smov 48   ;;  %s5337_s30 = smov 96  }
 0x32d   : > { %v4809_v35 = vld [vmem:[#allocation2] sm:$0x1f] }
 0x32e   : > { %v1646_v36 = vld [vmem:[#allocation2] sm:$0x1f] }
 0x39e   : > { %v1118_v12 = vpop.permute.xlu1 %1117  ;;  %v1210_v13 = vpop.permute.xlu0 %1209 }
 0x39f   : > { %3892 = vmatpush3.xpose.msk.msra.mxu1 %vm1119_vm4, %v1118_v12 }
 0x3a0   : > { %3896 = vmatprep.subr.mxu1 %v4248_v57 }
 0x3a2   : > { %3894 = vmatmul.mubr.msk.f32.vlgmr.msra.gmra.mxu1 %vm1119_vm4, %v1115_v11 }
 0x3a3   : > { %3897 = vmatpush3.msk.msra.mxu1 %vm1215_vm5, %v1210_v13  ;;  %3898 = vmatprep.mubr.msk.f32.mxu1 %vm4249_vm1, %v4248_v57 }
 0x3a4   : > { %3901 = vmatprep.subr.mxu1 %v4248_v57 }
 0x462   : > { %v1190_v14 = vpop.f32.mrf.mxu1 }
 0x463   : > { %v1194_v15 = vmul.f32 0.35355338, %v1190_v14 }
 0x464   : > { %v3895_v16 = vpop.f32.mrf.mxu1 }
 0x465   : > { %v1196_v17 = vsel %vm1195_vm6, %v1194_v15, -inf }
 0x466   : > { %1197 = vmax.xlane.f32.xlu1 %v1196_v17 }
 0x4ef   : > { %v1198_v18 = vpop.xlane.xlu1 %1197 }
 0x4f0   : > { %v1199_v19 = vsub.f32 %v1194_v15, %v1198_v18 }
 0x4f2   : > { %v1200_v20 = vmul.f32 1.442695, %v1199_v19 }
 0x4f4   : > { %4138 = vpow2.f32 %v1200_v20  ;;  %v1828_v20 = vld [vmem:[%s5336_s7 + $0x18] sm:$0xff] }
 0x501   : > { %v4139_v21 = vpop.eup %4138 }
 0x502   : > { %v1202_v22 = vsel %vm1195_vm6, %v4139_v21, 0.0 }
 0x503   : > { %1203 = vadd.xlane.f32.xlu0 %v1202_v22  ;;  %v1826_v22 = vld [vmem:[%s5336_s7 + $0x8] sm:$0xff] }
 0x519   : > { %1294 = vrot.lane.b32.xlu0 %v1290_v23, %s4252_s28 }
 0x51d   : > { %1292 = vrot.lane.b32.xlu0 %v1290_v23, %s5303_s26  ;;  %s5338_s26 = smov 120  }
 0x58c   : > { %v1204_v24 = vpop.xlane.xlu0 %1203 }
 0x58d   : > { %4140 = vrcp.f32 %v1204_v24 }
 0x590   : > { %v1295_v26 = vpop.permute.xlu0 %1294 }
 0x594   : > { %v1293_v28 = vpop.permute.xlu0 %1292 }
 0x59a   : > { %v4141_v25 = vpop.eup %4140 }
 0x59b   : > { %v4792_v27 = vmul.f32 %v4141_v25, %v4139_v21  ;;  %v1827_v21 = vld [vmem:[%s5336_s7 + $0x10] sm:$0xff] }
 0x59d   : > { %1207 = vst.msk [vmem:[%s4790_s27] sm:$0x1f] %vm1195_vm6, %v4792_v27  ;;  %3899 = vmatmul.mubr.msk.f32.vlgmr.msra.gmra.mxu1 %vm1211_vm7, %v4792_v27 }
 0x59e   : > { %3902 = vmatpush3.xpose.msk.msra.mxu1 %vm1119_vm4, %v1295_v26  ;;  %3903 = vmatprep.mubr.msk.f32.mxu1 %vm4249_vm1, %v4248_v57 }
 0x59f   : > { %3906 = vmatprep.subr.mxu1 %v4248_v57 }
 0x5a1   : > { %3904 = vmatmul.mubr.msk.f32.vlgmr.msra.gmra.mxu1 %vm1119_vm4, %v1293_v28 }
 0x5a2   : > { %3908 = vmatprep.mubr.msk.f32.mxu1 %vm4249_vm1, %v4248_v57 }
 0x65d   : > { %v1284_v29 = vpop.f32.mrf.mxu1 }
 0x65e   : > { %1289 = vst.msk [vmem:[#allocation3] sm:$0x1f] %vm1288_vm8, %v1284_v29 }
 0x65f   : > { %v3900_v30 = vpop.f32.mrf.mxu1 }
 0x661   : > { %v1366_v31 = vpop.f32.mrf.mxu1 }
 0x662   : > { %v1370_v32 = vmul.f32 0.35355338, %v1366_v31  ;;  %v3611_v31 = vld [vmem:[%s5267_s8] ss:$0 sm:$0xff] }
 0x663   : > { %v3905_v33 = vpop.f32.mrf.mxu1 }
 0x664   : > { %v1371_v34 = vsel %vm1195_vm6, %v1370_v32, -inf }
 0x665   : > { %1372 = vmax.xlane.f32.xlu1 %v1371_v34 }
 0x676   : > { %1385 = vrot.lane.b32.xlu1 %v1290_v23, %s5294_s4  ;;  %s5296_s4 = smov 40   ;;  %v1825_v23 = vld [vmem:[%s5336_s7] sm:$0xff] }
 0x67a   : > { %1472 = vrot.lane.b32.xlu1 %v4809_v35, %s5302_s18  ;;  %s5339_s18 = smov 80  }
 0x67e   : > { %1470 = vrot.lane.b32.xlu1 %v4809_v35, %s5301_s29  ;;  %s5340_s29 = smov 112  }
 0x682   : > { %1650 = vrot.lane.b32.xlu1 %v1646_v36, %s5300_s5  ;;  %s5341_s5 = smov 72  }
 0x6ee   : > { %v1373_v37 = vpop.xlane.xlu1 %1372 }
 0x6ef   : > { %v1374_v38 = vsub.f32 %v1370_v32, %v1373_v37 }
 0x6f1   : > { %v1375_v39 = vmul.f32 1.442695, %v1374_v38 }
 0x6f2   : > { %v1386_v40 = vpop.permute.xlu1 %1385 }
 0x6f3   : > { %4142 = vpow2.f32 %v1375_v39  ;;  %3907 = vmatpush3.msk.msra.mxu1 %vm1215_vm5, %v1386_v40 }
 0x6f4   : > { %3911 = vmatprep.subr.mxu1 %v4248_v57 }
 0x6f6   : > { %v1473_v41 = vpop.permute.xlu1 %1472 }
 0x6fa   : > { %v1471_v42 = vpop.permute.xlu1 %1470 }
 0x6fe   : > { %v1651_v43 = vpop.permute.xlu1 %1650 }
 0x6ff   : > { %3922 = vmatpush3.xpose.msk.msra.mxu0 %vm1119_vm4, %v1651_v43  ;;  %v1940_v43 = vld [vmem:[%s5270_s11 + $0x8] sm:$0xff] }
 0x700   : > { %v4143_v44 = vpop.eup %4142  ;;  %3931 = vmatprep.subr.mxu0 %v4248_v57 }
 0x701   : > { %v1377_v45 = vsel %vm1195_vm6, %v4143_v44, 0.0 }
 0x702   : > { %1378 = vadd.xlane.f32.xlu0 %v1377_v45 }
 0x718   : > { %1648 = vrot.lane.b32.xlu0 %v1646_v36, %s5299_s2  ;;  %s5342_s2 = smov 104  }
 0x78b   : > { %v1379_v46 = vpop.xlane.xlu0 %1378 }
 0x78c   : > { %4144 = vrcp.f32 %v1379_v46 }
 0x78f   : > { %v1649_v47 = vpop.permute.xlu0 %1648 }
 0x790   : > { %3924 = vmatmul.mubr.msk.f32.vlgmr.msra.gmra.mxu0 %vm1119_vm4, %v1649_v47 }
 0x791   : > { %3939 = vmatprep.mubr.msk.f32.mxu0 %vm4249_vm1, %v4248_v57  ;;  %3932 = vmatpush3.msra.mxu0 %v1828_v20 }
 0x792   : > { %3933 = vmatprep.subr.mxu0 %v4248_v57 }
 0x793   : > { %3934 = vmatpush3.msra.mxu0 %v1827_v21 }
 0x794   : > { %3935 = vmatprep.subr.mxu0 %v4248_v57 }
 0x795   : > { %3936 = vmatpush3.msra.mxu0 %v1826_v22 }
 0x796   : > { %3937 = vmatprep.subr.mxu0 %v4248_v57 }
 0x797   : > { %3938 = vmatpush3.msra.mxu0 %v1825_v23 }
 0x798   : > { %3953 = vmatprep.subr.mxu0 %v4248_v57 }
 0x799   : > { %v4145_v48 = vpop.eup %4144 }
 0x79a   : > { %v1381_v49 = vmul.f32 %v4145_v48, %v4143_v44  ;;  %v1939_v44 = vld [vmem:[%s5270_s11] sm:$0xff] }
 0x79c   : > { %3598 = vst.msk [vmem:[%s4790_s27 + $0x8] sm:$0x1f] %vm1195_vm6, %v1381_v49  ;;  %3909 = vmatmul.mubr.msk.f32.vlgmr.msra.gmra.mxu1 %vm1211_vm7, %v1381_v49  ;;  %v1384_v16 = vadd.f32 %v1381_v49, %v4792_v27  ;;  %v3613_v49 = vld [vmem:[%s5268_s9] ss:$0 sm:$0xff] }
 0x79d   : > { %3912 = vmatpush3.xpose.msk.msra.mxu1 %vm1119_vm4, %v1473_v41  ;;  %3913 = vmatprep.mubr.msk.f32.mxu1 %vm4249_vm1, %v4248_v57 }
 0x79e   : > { %3916 = vmatprep.subr.mxu1 %v4248_v57 }
 0x7a0   : > { %3914 = vmatmul.mubr.msk.f32.vlgmr.msra.gmra.mxu1 %vm1119_vm4, %v1471_v42  ;;  %v1942_v42 = vld [vmem:[%s5270_s11 + $0x18] sm:$0xff] }
 0x7a1   : > { %3918 = vmatprep.mubr.msk.f32.mxu1 %vm4249_vm1, %v4248_v57 }
 0x850   : > { %v1722_v51 = vpop.f32.mrf.mxu0 }
 0x851   : > { %v1726_v52 = vmul.f32 0.35355338, %v1722_v51 }
 0x852   : > { %v3925_v53 = vpop.f32.mrf.mxu0 }
 0x853   : > { %v1727_v54 = vsel %vm1195_vm6, %v1726_v52, -inf }
 0x854   : > { %1728 = vmax.xlane.f32.xlu0 %v1727_v54 }
 0x85c   : > { %v1458_v55 = vpop.f32.mrf.mxu1 }
 0x85e   : > { %v3910_v56 = vpop.f32.mrf.mxu1 }
 0x85f   : > { %v2038_v56 = vld [vmem:[%s5272_s13 + $0x30] sm:$0xff] }
 0x860   : > { %v1544_v58 = vpop.f32.mrf.mxu1 }
 0x861   : > { %v1548_v59 = vmul.f32 0.35355338, %v1544_v58  ;;  %v2037_v58 = vld [vmem:[%s5272_s13 + $0x28] sm:$0xff] }
 0x862   : > { %v3915_v60 = vpop.f32.mrf.mxu1 }
 0x863   : > { %v1549_v61 = vsel %vm1195_vm6, %v1548_v59, -inf  ;;  %v2035_v60 = vld [vmem:[%s5272_s13 + $0x18] sm:$0xff] }
 0x864   : > { %1550 = vmax.xlane.f32.xlu1 %v1549_v61  ;;  %v2034_v61 = vld [vmem:[%s5272_s13 + $0x10] sm:$0xff] }
 0x86a   : > { %1741 = vrot.lane.b32.xlu0 %v1646_v36, %s5296_s4  ;;  %s5297_s4 = smov 8  }
 0x8dd   : > { %v1729_v62 = vpop.xlane.xlu0 %1728 }
 0x8de   : > { %v1730_v63 = vsub.f32 %v1726_v52, %v1729_v62  ;;  %v3614_v52 = vld [vmem:[%s5269_s10] ss:$0 sm:$0xff]  ;;  %v2033_v62 = vld [vmem:[%s5272_s13 + $0x8] sm:$0xff] }
 0x8e0   : > { %v1731_v0 = vmul.f32 1.442695, %v1730_v63  ;;  %v2032_v63 = vld [vmem:[%s5272_s13] sm:$0xff] }
 0x8e1   : > { %v1742_v17 = vpop.permute.xlu0 %1741 }
 0x8e2   : > { %4146 = vpow2.f32 %v1731_v0  ;;  %v3615_v0 = vld [vmem:[%s5271_s12] ss:$0 sm:$0xff] }
 0x8ed   : > { %v1551_v1 = vpop.xlane.xlu1 %1550 }
 0x8ee   : > { %v1552_v2 = vsub.f32 %v1548_v59, %v1551_v1  ;;  %v2036_v59 = vld [vmem:[%s5272_s13 + $0x20] sm:$0xff] }
 0x8ef   : > { %v4147_v3 = vpop.eup %4146 }
 0x8f0   : > { %v1553_v4 = vmul.f32 1.442695, %v1552_v2  ;;  %v1733_v5 = vsel %vm1195_vm6, %v4147_v3, 0.0 }
 0x8f1   : > { %1734 = vadd.xlane.f32.xlu1 %v1733_v5 }
 0x8f2   : > { %4148 = vpow2.f32 %v1553_v4 }
 0x8ff   : > { %v4149_v6 = vpop.eup %4148 }
 0x900   : > { %v1555_v7 = vsel %vm1195_vm6, %v4149_v6, 0.0 }
 0x901   : > { %1556 = vadd.xlane.f32.xlu1 %v1555_v7 }
 0x912   : > { %1563 = vrot.lane.b32.xlu1 %v4809_v35, %s5298_s22  ;;  %s5306_s22 = smov 16  }
 0x916   : > { %1463 = vrot.lane.b32.xlu1 %v1458_v55, %s5297_s4  ;;  %s5305_s4 = smov 24   ;;  %v2039_v55 = vld [vmem:[%s5272_s13 + $0x38] sm:$0xff] }
 0x97a   : > { %v1735_v8 = vpop.xlane.xlu1 %1734 }
 0x97b   : > { %4150 = vrcp.f32 %v1735_v8 }
 0x988   : > { %v4151_v9 = vpop.eup %4150 }
 0x989   : > { %v1737_v10 = vmul.f32 %v4151_v9, %v4147_v3 }
 0x98a   : > { %v1557_v11 = vpop.xlane.xlu1 %1556 }
 0x98b   : > { %4152 = vrcp.f32 %v1557_v11  ;;  %3608 = vst.msk [vmem:[%s4790_s27 + $0x18] sm:$0x1f] %vm1195_vm6, %v1737_v10 }
 0x98e   : > { %v1564_v12 = vpop.permute.xlu1 %1563 }
 0x98f   : > { %3917 = vmatpush3.msk.msra.mxu1 %vm1215_vm5, %v1564_v12 }
 0x990   : > { %3926 = vmatprep.subr.mxu1 %v4248_v57 }
 0x992   : > { %v1464_v13 = vpop.permute.xlu1 %1463 }
 0x993   : > { %1467 = vst.msk [vmem:[#allocation3] sm:$0x1f] %vm1466_vm9, %v1464_v13  ;;  %v3617_v13 = vld [vmem:[%s5273_s14] ss:$0 sm:$0xff] }
 0x998   : > { %v4153_v14 = vpop.eup %4152 }
 0x999   : > { %v1559_v15 = vmul.f32 %v4153_v14, %v4149_v6 }
 0x99b   : > { %3603 = vst.msk [vmem:[%s4790_s27 + $0x10] sm:$0x1f] %vm1195_vm6, %v1559_v15  ;;  %3919 = vmatmul.mubr.msk.f32.vlgmr.msra.gmra.mxu1 %vm1211_vm7, %v1559_v15  ;;  %v1562_v18 = vadd.f32 %v1559_v15, %v1384_v16 }
 0x99c   : > { %3927 = vmatpush3.msk.msra.mxu1 %vm1215_vm5, %v1742_v17  ;;  %3928 = vmatprep.mubr.msk.f32.mxu1 %vm4249_vm1, %v4248_v57 }
 0x99d   : > { %3942 = vmatprep.subr.mxu1 %v4248_v57  ;;  %v4856_v19 = vadd.f32 %v1737_v10, %v1562_v18 }
 0x99f   : > { %3929 = vmatmul.mubr.msk.f32.vlgmr.msra.gmra.mxu1 %vm1211_vm7, %v1737_v10 }
 0x9a0   : > { %3950 = vmatprep.mubr.msk.f32.mxu1 %vm4249_vm1, %v4248_v57  ;;  %3943 = vmatpush3.msra.mxu1 %v1942_v42 }
 0x9a1   : > { %3944 = vmatprep.subr.mxu1 %v4248_v57 }
 0xa5b   : > { %v1636_v24 = vpop.f32.mrf.mxu1 }
 0xa5c   : > { %1641 = vrot.lane.b32.xlu1 %v1636_v24, %s5306_s22  ;;  %s5344_s22 = smov 48  }
 0xa5d   : > { %v3920_v25 = vpop.f32.mrf.mxu1 }
 0xa5e   : > { %v3626_v25 = vld [vmem:[%s5331_s0 + $0x38] sm:$0xff] }
 0xa5f   : > { %v1814_v26 = vpop.f32.mrf.mxu1 }
 0xa60   : > { %1819 = vrot.lane.b32.xlu1 %v1814_v26, %s5305_s4  ;;  %v3625_v26 = vld [vmem:[%s5331_s0 + $0x30] sm:$0xff]  ;;  %s5345_s4 = smov 40  }
 0xa61   : > { %v3930_v27 = vpop.f32.mrf.mxu1 }
 0xa62   : > { %v3624_v27 = vld [vmem:[%s5331_s0 + $0x28] sm:$0xff] }
 0xace   : > { %v1642_v28 = vpop.permute.xlu1 %1641 }
 0xacf   : > { %1645 = vst.msk [vmem:[#allocation3] sm:$0x1f] %vm1644_vm10, %v1642_v28  ;;  %v3623_v28 = vld [vmem:[%s5331_s0 + $0x20] sm:$0xff] }
 0xad2   : > { %v1820_v29 = vpop.permute.xlu1 %1819 }
 0xad3   : > { %1823 = vst.msk [vmem:[#allocation3] sm:$0x1f] %vm1822_vm11, %v1820_v29 }
 0xada   : > { %v1824_v30 = vld [vmem:[#allocation3] sm:$0x1f] }
 0xadb   : > { %3940 = vmatmul.mubr.msk.f32.vlgmr.msra.gmra.mxu0 %vm1039_vm2, %v1824_v30 }
 0xadc   : > { %3969 = vmatprep.mubr.msk.f32.mxu0 %vm4249_vm1, %v4248_v57  ;;  %3954 = vmatpush3.msra.mxu0 %v2039_v55 }
 0xadd   : > { %3955 = vmatprep.subr.mxu0 %v4248_v57 }
 0xade   : > { %3956 = vmatpush3.msra.mxu0 %v2038_v56 }
 0xadf   : > { %3957 = vmatprep.subr.mxu0 %v4248_v57 }
 0xae0   : > { %3958 = vmatpush3.msra.mxu0 %v2037_v58 }
 0xae1   : > { %3959 = vmatprep.subr.mxu0 %v4248_v57 }
 0xae2   : > { %3960 = vmatpush3.msra.mxu0 %v2036_v59 }
 0xae3   : > { %3961 = vmatprep.subr.mxu0 %v4248_v57 }
 0xae4   : > { %3962 = vmatpush3.msra.mxu0 %v2035_v60 }
 0xae5   : > { %3963 = vmatprep.subr.mxu0 %v4248_v57 }
 0xae6   : > { %3964 = vmatpush3.msra.mxu0 %v2034_v61 }
 0xae7   : > { %3965 = vmatprep.subr.mxu0 %v4248_v57 }
 0xae8   : > { %3966 = vmatpush3.msra.mxu0 %v2033_v62 }
 0xae9   : > { %3967 = vmatprep.subr.mxu0 %v4248_v57 }
 0xaea   : > { %3968 = vmatpush3.msra.mxu0 %v2032_v63 }
 0xaeb   : > { %3993 = vmatprep.subr.mxu0 %v4248_v57 }
 0xb9b   : > { %v1905_v32 = vpop.f32.mrf.mxu0 }
 0xb9c   : > { %v1906_v33 = vadd.f32 %v3611_v31, %v1905_v32 }
 0xb9d   : > { %v3941_v34 = vpop.f32.mrf.mxu0 }
 0xb9e   : > { %v4888_v35 = vadd.f32 %v1906_v33, %v4732_v50  ;;  %v1941_v50 = vld [vmem:[%s5270_s11 + $0x10] sm:$0xff]  ;;  %v3621_v33 = vld [vmem:[%s5332_s19 + $0x1] ss:$0 sm:$0xff] }
 0xb9f   : > { %3945 = vmatpush3.msra.mxu1 %v1941_v50 }
 0xba0   : > { %v1912_v36 = vsel %vm999_vm0, %v4888_v35, 0.0  ;;  %3946 = vmatprep.subr.mxu1 %v4248_v57 }
 0xba1   : > { %1913 = vadd.xlane.f32.xlu1 %v1912_v36  ;;  %3947 = vmatpush3.msra.mxu1 %v1940_v43 }
 0xba2   : > { %3948 = vmatprep.subr.mxu1 %v4248_v57 }
 0xba3   : > { %3949 = vmatpush3.msra.mxu1 %v1939_v44 }
 0xba4   : > { %3972 = vmatprep.subr.mxu1 %v4248_v57 }
 0xc2a   : > { %v1914_v37 = vpop.xlane.xlu1 %1913 }
 0xc2b   : > { %v1915_v38 = vmul.f32 0.03125, %v1914_v37 }
 0xc2d   : > { %v1916_v39 = vsub.f32 %v4888_v35, %v1915_v38  ;;  %v3628_v38 = vld [vmem:[%s5335_s6 + $0x1] ss:$0 sm:$0xff] }
 0xc2f   : > { %v1917_v40 = vmul.f32 %v1916_v39, %v1916_v39 }
 0xc31   : > { %v1918_v41 = vsel %vm999_vm0, %v1917_v40, 0.0 }
 0xc32   : > { %1919 = vadd.xlane.f32.xlu0 %v1918_v41 }
 0xcbb   : > { %v1920_v45 = vpop.xlane.xlu0 %1919 }
 0xcbc   : > { %v1921_v46 = vmul.f32 0.03125, %v1920_v45 }
 0xcbe   : > { %v1922_v47 = vadd.f32 1e-06, %v1921_v46 }
 0xcc0   : > { %4154 = vrsqrt.f32 %v1922_v47 }
 0xccd   : > { %v4155_v48 = vpop.eup %4154 }
 0xcce   : > { %v1924_v51 = vmul.f32 %v4155_v48, %v1916_v39 }
 0xcd0   : > { %v1931_v53 = vmul.f32 %v3613_v49, %v1924_v51 }
 0xcd2   : > { %v1938_v54 = vadd.f32 %v3614_v52, %v1931_v53 }
 0xcd4   : > { %3951 = vmatmul.mubr.msk.f32.vlgmr.msra.gmra.mxu1 %vm1039_vm2, %v1938_v54 }
 0xcd5   : > { %3980 = vmatprep.mubr.msk.f32.mxu1 %vm4249_vm1, %v4248_v57  ;;  %3973 = vmatpush3.msra.mxu1 %v3626_v25 }
 0xcd6   : > { %3974 = vmatprep.subr.mxu1 %v4248_v57 }
 0xcd7   : > { %3975 = vmatpush3.msra.mxu1 %v3625_v26 }
 0xcd8   : > { %3976 = vmatprep.subr.mxu1 %v4248_v57 }
 0xcd9   : > { %3977 = vmatpush3.msra.mxu1 %v3624_v27 }
 0xcda   : > { %3978 = vmatprep.subr.mxu1 %v4248_v57 }
 0xcdb   : > { %3979 = vmatpush3.msra.mxu1 %v3623_v28 }
 0xcdc   : > { %3983 = vmatprep.subr.mxu1 %v4248_v57 }
 0xd94   : > { %v2019_v1 = vpop.f32.mrf.mxu1 }
 0xd95   : > { %v2020_v2 = vadd.f32 %v3615_v0, %v2019_v1 }
 0xd96   : > { %v3952_v3 = vpop.f32.mrf.mxu1 }
 0xd97   : > { %v2023_v4 = vmul.f32 %v2020_v2, %v2020_v2 }
 0xd99   : > { %v2024_v5 = vmul.f32 %v2023_v4, %v2020_v2 }
 0xd9b   : > { %v2025_v6 = vmul.f32 0.044715, %v2024_v5 }
 0xd9d   : > { %v2026_v7 = vadd.f32 %v2025_v6, %v2020_v2 }
 0xd9f   : > { %v2027_v8 = vmul.f32 0.7978846, %v2026_v7 }
 0xda1   : > { %4156 = vtanh.f32 %v2027_v8 }
 0xdae   : > { %v4157_v9 = vpop.eup %4156 }
 0xdaf   : > { %v2029_v10 = vadd.f32 1.0, %v4157_v9 }
 0xdb1   : > { %v2030_v11 = vmul.f32 0.5, %v2029_v10 }
 0xdb3   : > { %v2031_v12 = vmul.f32 %v2030_v11, %v2020_v2 }
 0xdb5   : > { %3970 = vmatmul.mubr.msk.f32.vlgmr.msra.gmra.mxu0 %vm2047_vm12, %v2031_v12 }
 0xdb6   : > { %3995 = vmatprep.mubr.msk.f32.mxu0 %vm4249_vm1, %v4248_v57 }
 0xe75   : > { %v2117_v14 = vpop.f32.mrf.mxu0 }
 0xe76   : > { %v2118_v15 = vadd.f32 %v3617_v13, %v2117_v14 }
 0xe77   : > { %v3971_v16 = vpop.f32.mrf.mxu0 }
 0xe78   : > { %v4961_v17 = vadd.f32 %v2118_v15, %v4888_v35  ;;  %v3622_v35 = vld [vmem:[%s5334_s23 + $0x1] ss:$0 sm:$0xff] }
 0xe7a   : > { %v2133_v18 = vsel %vm999_vm0, %v4961_v17, 0.0 }
 0xe7b   : > { %2134 = vadd.xlane.f32.xlu0 %v2133_v18 }
 0xf04   : > { %v2135_v20 = vpop.xlane.xlu0 %2134 }
 0xf05   : > { %v2136_v21 = vmul.f32 0.03125, %v2135_v20 }
 0xf07   : > { %v2137_v22 = vsub.f32 %v4961_v17, %v2136_v21 }
 0xf09   : > { %v2138_v23 = vmul.f32 %v2137_v22, %v2137_v22 }
 0xf0b   : > { %v2139_v24 = vsel %vm999_vm0, %v2138_v23, 0.0 }
 0xf0c   : > { %2140 = vadd.xlane.f32.xlu1 %v2139_v24 }
 0xf95   : > { %v2141_v29 = vpop.xlane.xlu1 %2140 }
 0xf96   : > { %v2142_v30 = vmul.f32 0.03125, %v2141_v29 }
 0xf98   : > { %v2143_v31 = vadd.f32 1e-06, %v2142_v30 }
 0xf9a   : > { %4158 = vrsqrt.f32 %v2143_v31 }
 0xfa7   : > { %v4159_v32 = vpop.eup %4158 }
 0xfa8   : > { %v2145_v34 = vmul.f32 %v4159_v32, %v2137_v22 }
 0xfaa   : > { %v2152_v36 = vmul.f32 %v3621_v33, %v2145_v34 }
 0xfac   : > { %v2159_v37 = vadd.f32 %v3622_v35, %v2152_v36 }
 0xfae   : > { %3981 = vmatmul.mubr.msk.f32.vlgmr.msra.gmra.mxu1 %vm1039_vm2, %v2159_v37 }
 0xfaf   : > { %3985 = vmatprep.mubr.msk.f32.mxu1 %vm4249_vm1, %v4248_v57 }
0x106e   : > { %v2242_v39 = vpop.f32.mrf.mxu1 }
0x106f   : > { %v2243_v40 = vadd.f32 %v3628_v38, %v2242_v39 }
0x1070   : > { %v3982_v41 = vpop.f32.mrf.mxu1 }
0x1071   : > { %2246 = vst.msk [vmem:[#allocation2] sm:$0x1f] %vm1113_vm3, %v2243_v40 }
0x1078   : > { %v4996_v42 = vld [vmem:[#allocation2] sm:$0x1f] }
0x1079   : > { %v2247_v50 = vld [vmem:[#allocation2] sm:$0x1f]  ;;  %2422 = vrot.lane.b32.xlu1 %v4996_v42, %s4252_s28  ;;  %s5343_s28 = smov 64  }
0x107a   : > { %2249 = vrot.lane.b32.xlu0 %v2247_v50, %s5337_s30  ;;  %v5001_v43 = vld [vmem:[#allocation2] sm:$0x1f]  ;;  %s5346_s30 = smov 56  }
0x107b   : > { %v5007_v44 = vld [vmem:[#allocation2] sm:$0x1f] }
0x107d   : > { %2420 = vrot.lane.b32.xlu1 %v4996_v42, %s5338_s26  ;;  %s5349_s26 = smov 24  }
0x107e   : > { %2599 = vrot.lane.b32.xlu0 %v5001_v43, %s5339_s18 }
0x1081   : > { %2597 = vrot.lane.b32.xlu1 %v5001_v43, %s5340_s29 }
0x1082   : > { %2776 = vrot.lane.b32.xlu0 %v5007_v44, %s5341_s5  ;;  %s3586_s5 = sshll.u32 %s4544_s1, 3 }
0x1085   : > { %2774 = vrot.lane.b32.xlu1 %v5007_v44, %s5342_s2 }
0x10eb   : > { %v2423_v45 = vpop.permute.xlu1 %2422 }
0x10ec   : > { %v2250_v46 = vpop.permute.xlu0 %2249  ;;  %3994 = vmatpush3.xpose.msk.msra.mxu0 %vm1119_vm4, %v2423_v45 }
0x10ed   : > { %3984 = vmatpush3.xpose.msk.msra.mxu1 %vm1119_vm4, %v2250_v46  ;;  %4003 = vmatprep.subr.mxu0 %v4248_v57 }
0x10ee   : > { %3988 = vmatprep.subr.mxu1 %v4248_v57 }
0x10ef   : > { %v2421_v47 = vpop.permute.xlu1 %2420 }
0x10f0   : > { %3986 = vmatmul.mubr.msk.f32.vlgmr.msra.gmra.mxu1 %vm1119_vm4, %v2247_v50  ;;  %v2600_v48 = vpop.permute.xlu0 %2599  ;;  %3996 = vmatmul.mubr.msk.f32.vlgmr.msra.gmra.mxu0 %vm1119_vm4, %v2421_v47  ;;  %v3653_v47 = vld [vmem:[%s5336_s7 + $0x38] sm:$0xff] }
0x10f1   : > { %3990 = vmatprep.mubr.msk.f32.mxu1 %vm4249_vm1, %v4248_v57  ;;  %4004 = vmatpush3.xpose.msk.msra.mxu0 %vm1119_vm4, %v2600_v48  ;;  %v3652_v48 = vld [vmem:[%s5336_s7 + $0x30] sm:$0xff] }
0x10f2   : > { %4005 = vmatprep.mubr.msk.f32.mxu0 %vm4249_vm1, %v4248_v57  ;;  %4013 = vmatprep.subr.mxu0 %v4248_v57 }
0x10f3   : > { %v2598_v49 = vpop.permute.xlu1 %2597 }
0x10f4   : > { %v2777_v51 = vpop.permute.xlu0 %2776  ;;  %4006 = vmatmul.mubr.msk.f32.vlgmr.msra.gmra.mxu0 %vm1119_vm4, %v2598_v49 }
0x10f5   : > { %4014 = vmatpush3.xpose.msk.msra.mxu0 %vm1119_vm4, %v2777_v51  ;;  %4015 = vmatprep.mubr.msk.f32.mxu0 %vm4249_vm1, %v4248_v57  ;;  %v3651_v51 = vld [vmem:[%s5336_s7 + $0x28] sm:$0xff] }
0x10f6   : > { %4023 = vmatprep.subr.mxu0 %v4248_v57 }
0x10f7   : > { %v2775_v52 = vpop.permute.xlu1 %2774 }
0x10f8   : > { %4016 = vmatmul.mubr.msk.f32.vlgmr.msra.gmra.mxu0 %vm1119_vm4, %v2775_v52 }
0x10f9   : > { %4031 = vmatprep.mubr.msk.f32.mxu0 %vm4249_vm1, %v4248_v57  ;;  %4024 = vmatpush3.msra.mxu0 %v3653_v47  ;;  %v3666_v47 = vld [vmem:[%s5271_s12 + $0x1] ss:$0 sm:$0xff] }
0x10fa   : > { %4025 = vmatprep.subr.mxu0 %v4248_v57 }
0x10fb   : > { %4026 = vmatpush3.msra.mxu0 %v3652_v48 }
0x10fc   : > { %4027 = vmatprep.subr.mxu0 %v4248_v57 }
0x10fd   : > { %4028 = vmatpush3.msra.mxu0 %v3651_v51 }
0x10fe   : > { %4029 = vmatprep.subr.mxu0 %v4248_v57 }
0x11b0   : > { %v2321_v53 = vpop.f32.mrf.mxu1  ;;  %v2494_v55 = vpop.f32.mrf.mxu0 }
0x11b1   : > { %v2325_v54 = vmul.f32 0.35355338, %v2321_v53  ;;  %v2498_v56 = vmul.f32 0.35355338, %v2494_v55  ;;  %v3650_v53 = vld [vmem:[%s5336_s7 + $0x20] sm:$0xff] }
0x11b2   : > { %v3987_v58 = vpop.f32.mrf.mxu1  ;;  %v3997_v59 = vpop.f32.mrf.mxu0  ;;  %4030 = vmatpush3.msra.mxu0 %v3650_v53 }
0x11b3   : > { %v2326_v60 = vsel %vm1195_vm6, %v2325_v54, -inf  ;;  %v2499_v61 = vsel %vm1195_vm6, %v2498_v56, -inf  ;;  %4045 = vmatprep.subr.mxu0 %v4248_v57 }
0x11b4   : > { %2327 = vmax.xlane.f32.xlu0 %v2326_v60  ;;  %2500 = vmax.xlane.f32.xlu1 %v2499_v61  ;;  %v2671_v62 = vpop.f32.mrf.mxu0 }
0x11b5   : > { %v2675_v63 = vmul.f32 0.35355338, %v2671_v62 }
0x11b6   : > { %v4007_v0 = vpop.f32.mrf.mxu0 }
0x11b7   : > { %v2676_v1 = vsel %vm1195_vm6, %v2675_v63, -inf  ;;  %v990_v0 = vlaneseq }
0x11b8   : > { %v2848_v2 = vpop.f32.mrf.mxu0  ;;  %2677 = vmax.xlane.f32.xlu0 %v2676_v1 }
0x11b9   : > { %v2852_v3 = vmul.f32 0.35355338, %v2848_v2  ;;  %v991_v1 = vshrl.u32 %v990_v0, 7  ;;  %v993_v2 = vand.u32 127, %v990_v0  ;;  %v3677_v0 = vld [vmem:[%s5273_s14 + $0x1] ss:$0 sm:$0xff] }
0x11ba   : > { %v4017_v4 = vpop.f32.mrf.mxu0 }
0x11bb   : > { %v2853_v5 = vsel %vm1195_vm6, %v2852_v3, -inf  ;;  %vm994_vm13 = vcmp.eq.s32.totalorder %v991_v1, %v993_v2 }
0x11bc   : > { %2854 = vmax.xlane.f32.xlu0 %v2853_v5 }
0x11c5   : > { %2340 = vrot.lane.b32.xlu1 %v2247_v50, %s5343_s28  ;;  %s676_s28 = scalar_lea.vmem %s5280_s21, %s3586_s5  ;;  %s5351_s5 = sld [smem:[#allocation22_spill]] }
0x123d   : > { %v2328_v6 = vpop.xlane.xlu0 %2327  ;;  %v2501_v8 = vpop.xlane.xlu1 %2500 }
0x123e   : > { %v2329_v7 = vsub.f32 %v2325_v54, %v2328_v6  ;;  %v2502_v9 = vsub.f32 %v2498_v56, %v2501_v8  ;;  %v2122_v6 = vmul.f32 0.25, %v4856_v19  ;;  %v3587_v8 = vsel %vm994_vm13, 1.0, %v4248_v57 }
0x1240   : > { %v2330_v10 = vmul.f32 1.442695, %v2329_v7  ;;  %v2503_v11 = vmul.f32 1.442695, %v2502_v9 }
0x1241   : > { %v2341_v12 = vpop.permute.xlu1 %2340  ;;  %v2678_v13 = vpop.xlane.xlu0 %2677 }
0x1242   : > { %4160 = vpow2.f32 %v2330_v10  ;;  %v2679_v14 = vsub.f32 %v2675_v63, %v2678_v13  ;;  %3989 = vmatpush3.msk.msra.mxu1 %vm1215_vm5, %v2341_v12 }
0x1243   : > { %4162 = vpow2.f32 %v2503_v11  ;;  %3998 = vmatprep.subr.mxu1 %v4248_v57  ;;  %v2123_v11 = vadd.f32 %v3587_v8, %v2122_v6 }
0x1244   : > { %v2680_v15 = vmul.f32 1.442695, %v2679_v14 }
0x1245   : > { %v2855_v16 = vpop.xlane.xlu0 %2854  ;;  %v2124_v13 = vsel %vm1195_vm6, %v2123_v11, 0.0 }
0x1246   : > { %4164 = vpow2.f32 %v2680_v15  ;;  %v2856_v18 = vsub.f32 %v2852_v3, %v2855_v16  ;;  %v3655_v3 = vld [vmem:[%s5267_s8 + $0x1] ss:$0 sm:$0xff] }
0x1248   : > { %v2857_v20 = vmul.f32 1.442695, %v2856_v18 }
0x124a   : > { %4166 = vpow2.f32 %v2857_v20 }
0x124f   : > { %v4161_v21 = vpop.eup %4160 }
0x1250   : > { %v4163_v22 = vpop.eup %4162  ;;  %v2332_v23 = vsel %vm1195_vm6, %v4161_v21, 0.0 }
0x1251   : > { %2333 = vadd.xlane.f32.xlu1 %v2332_v23  ;;  %v2505_v24 = vsel %vm1195_vm6, %v4163_v22, 0.0  ;;  %v3662_v23 = vld [vmem:[%s5270_s11 + $0x28] sm:$0xff] }
0x1252   : > { %2506 = vadd.xlane.f32.xlu0 %v2505_v24  ;;  %v3661_v24 = vld [vmem:[%s5270_s11 + $0x20] sm:$0xff] }
0x1253   : > { %v4165_v25 = vpop.eup %4164 }
0x1254   : > { %v2682_v26 = vsel %vm1195_vm6, %v4165_v25, 0.0 }
0x1255   : > { %2683 = vadd.xlane.f32.xlu1 %v2682_v26 }
0x1257   : > { %v4167_v27 = vpop.eup %4166 }
0x1258   : > { %v2859_v28 = vsel %vm1195_vm6, %v4167_v27, 0.0 }
0x1259   : > { %2860 = vadd.xlane.f32.xlu0 %v2859_v28 }
0x1266   : > { %2690 = vrot.lane.b32.xlu1 %v5001_v43, %s5344_s22  ;;  %s5352_s22 = sld [smem:[#allocation23_spill]] }
0x126a   : > { %2867 = vrot.lane.b32.xlu1 %v5007_v44, %s5345_s4  ;;  %s5347_s4 = smov 8  }
0x126f   : > { %2513 = vrot.lane.b32.xlu0 %v4996_v42, %s5346_s30  ;;  %s5348_s30 = smov 16  }
0x12da   : > { %v2334_v29 = vpop.xlane.xlu1 %2333 }
0x12db   : > { %4168 = vrcp.f32 %v2334_v29  ;;  %v2507_v30 = vpop.xlane.xlu0 %2506 }
0x12dc   : > { %4170 = vrcp.f32 %v2507_v30 }
0x12de   : > { %v2684_v31 = vpop.xlane.xlu1 %2683 }
0x12df   : > { %4172 = vrcp.f32 %v2684_v31  ;;  %v3659_v31 = vld [vmem:[%s5268_s9 + $0x1] ss:$0 sm:$0xff] }
0x12e2   : > { %v2861_v32 = vpop.xlane.xlu0 %2860  ;;  %v2691_v40 = vpop.permute.xlu1 %2690 }
0x12e3   : > { %4174 = vrcp.f32 %v2861_v32 }
0x12e6   : > { %v2514_v37 = vpop.permute.xlu0 %2513  ;;  %v2868_v44 = vpop.permute.xlu1 %2867 }
0x12e8   : > { %v4169_v33 = vpop.eup %4168 }
0x12e9   : > { %v4171_v34 = vpop.eup %4170  ;;  %v2336_v35 = vmul.f32 %v4169_v33, %v4161_v21  ;;  %v3664_v21 = vld [vmem:[%s5270_s11 + $0x38] sm:$0xff]  ;;  %v3660_v33 = vld [vmem:[%s5269_s10 + $0x1] ss:$0 sm:$0xff] }
0x12ea   : > { %v2509_v36 = vmul.f32 %v4171_v34, %v4163_v22  ;;  %v3663_v22 = vld [vmem:[%s5270_s11 + $0x30] sm:$0xff] }
0x12eb   : > { %3632 = vst.msk [vmem:[%s4790_s27 + $0x20] sm:$0x1f] %vm1195_vm6, %v2336_v35  ;;  %3991 = vmatmul.mubr.msk.f32.vlgmr.msra.gmra.mxu1 %vm1211_vm7, %v2336_v35 }
0x12ec   : > { %3999 = vmatpush3.msk.msra.mxu1 %vm1215_vm5, %v2514_v37  ;;  %4000 = vmatprep.mubr.msk.f32.mxu1 %vm4249_vm1, %v4248_v57  ;;  %3637 = vst.msk [vmem:[%s4790_s27 + $0x28] sm:$0x1f] %vm1195_vm6, %v2509_v36  ;;  %v2512_v38 = vadd.f32 %v2509_v36, %v2336_v35  ;;  %v4173_v39 = vpop.eup %4172 }
0x12ed   : > { %4008 = vmatprep.subr.mxu1 %v4248_v57  ;;  %v2686_v41 = vmul.f32 %v4173_v39, %v4165_v25 }
0x12ef   : > { %4001 = vmatmul.mubr.msk.f32.vlgmr.msra.gmra.mxu1 %vm1211_vm7, %v2509_v36  ;;  %3642 = vst.msk [vmem:[%s4790_s27 + $0x30] sm:$0x1f] %vm1195_vm6, %v2686_v41  ;;  %v2689_v42 = vadd.f32 %v2686_v41, %v2512_v38 }
0x12f0   : > { %4009 = vmatpush3.msk.msra.mxu1 %vm1215_vm5, %v2691_v40  ;;  %4010 = vmatprep.mubr.msk.f32.mxu1 %vm4249_vm1, %v4248_v57  ;;  %v4175_v50 = vpop.eup %4174  ;;  %v3675_v40 = vld [vmem:[%s5272_s13 + $0x78] sm:$0xff] }
0x12f1   : > { %4018 = vmatprep.subr.mxu1 %v4248_v57  ;;  %v2863_v43 = vmul.f32 %v4175_v50, %v4167_v27  ;;  %v3672_v50 = vld [vmem:[%s5272_s13 + $0x60] sm:$0xff] }
0x12f3   : > { %4011 = vmatmul.mubr.msk.f32.vlgmr.msra.gmra.mxu1 %vm1211_vm7, %v2686_v41  ;;  %3647 = vst.msk [vmem:[%s4790_s27 + $0x38] sm:$0x1f] %vm1195_vm6, %v2863_v43  ;;  %v2866_v45 = vadd.f32 %v2863_v43, %v2689_v42  ;;  %v3674_v41 = vld [vmem:[%s5272_s13 + $0x70] sm:$0xff]  ;;  %v3673_v42 = vld [vmem:[%s5272_s13 + $0x68] sm:$0xff]  ;;  %s3684_s27 = sshll.u32 %s4396_s3, 4  ;;  %s4264_s3 = smov [#allocation4]  }
0x12f4   : > { %4019 = vmatpush3.msk.msra.mxu1 %vm1215_vm5, %v2868_v44  ;;  %4020 = vmatprep.mubr.msk.f32.mxu1 %vm4249_vm1, %v4248_v57  ;;  %v3670_v44 = vld [vmem:[%s5272_s13 + $0x50] sm:$0xff]  ;;  %s4190_s18 = sshll.u32 %s4264_s3, 4  ;;  %s4191_s18 = int_to_ptr.vmem [resolvable:$false] %s4190_s18 }
0x12f5   : > { %4034 = vmatprep.subr.mxu1 %v4248_v57  ;;  %v3254_v12 = vmul.f32 0.25, %v2866_v45  ;;  %v3669_v45 = vld [vmem:[%s5272_s13 + $0x48] sm:$0xff]  ;;  %s4192_s29 = scalar_lea.vmem %s4191_s18, 32 }
0x12f7   : > { %4021 = vmatmul.mubr.msk.f32.vlgmr.msra.gmra.mxu1 %vm1211_vm7, %v2863_v43  ;;  %v3255_v14 = vadd.f32 %v3587_v8, %v3254_v12  ;;  %v3671_v43 = vld [vmem:[%s5272_s13 + $0x58] sm:$0xff] }
0x12f8   : > { %4042 = vmatprep.mubr.msk.f32.mxu1 %vm4249_vm1, %v4248_v57  ;;  %4035 = vmatpush3.msra.mxu1 %v3664_v21  ;;  %v3369_v12 = vld [vmem:[%s5276_s17 + $0x18] sm:$0xff]  ;;  %v3682_v21 = vld [vmem:[%s5275_s16] ss:$0 sm:$0xff] }
0x12f9   : > { %v3256_v15 = vsel %vm1195_vm6, %v3255_v14, 0.0  ;;  %4036 = vmatprep.subr.mxu1 %v4248_v57 }
0x12fa   : > { %4037 = vmatpush3.msra.mxu1 %v3663_v22 }
0x12fb   : > { %4038 = vmatprep.subr.mxu1 %v4248_v57 }
0x12fc   : > { %4039 = vmatpush3.msra.mxu1 %v3662_v23 }
0x12fd   : > { %4040 = vmatprep.subr.mxu1 %v4248_v57 }
0x12fe   : > { %4041 = vmatpush3.msra.mxu1 %v3661_v24 }
0x12ff   : > { %4064 = vmatprep.subr.mxu1 %v4248_v57 }
0x13ab   : > { %v2413_v46 = vpop.f32.mrf.mxu1 }
0x13ac   : > { %2417 = vst.msk [vmem:[#allocation3] sm:$0x1f] %vm1288_vm8, %v2413_v46  ;;  %v3668_v46 = vld [vmem:[%s5272_s13 + $0x40] sm:$0xff] }
0x13ad   : > { %v3992_v49 = vpop.f32.mrf.mxu1 }
0x13af   : > { %v2586_v52 = vpop.f32.mrf.mxu1 }
0x13b0   : > { %2591 = vrot.lane.b32.xlu0 %v2586_v52, %s5347_s4  ;;  %s5224_s4 = scalar_lea.hbm %s5352_s22, %s3684_s27 }
0x13b1   : > { %v4002_v54 = vpop.f32.mrf.mxu1 }
0x13b3   : > { %v2763_v55 = vpop.f32.mrf.mxu1 }
0x13b4   : > { %2768 = vrot.lane.b32.xlu1 %v2763_v55, %s5348_s30 }
0x13b5   : > { %v4012_v56 = vpop.f32.mrf.mxu1 }
0x13b7   : > { %v2940_v58 = vpop.f32.mrf.mxu1 }
0x13b8   : > { %2945 = vrot.lane.b32.xlu0 %v2940_v58, %s5349_s26  ;;  %s648_s26 = sand.u32 1, %s4238_s25  }
0x13b9   : > { %v4022_v59 = vpop.f32.mrf.mxu1  ;;  %s649_s2 = scalar_lea.vmem [#allocation4], %s648_s26  ;;  %s3448_s6 = scalar_lea.sflag [#allocation5], %s648_s26 }
0x13ba   : > { %s3469_s0 = sshll.u32 %s649_s2, 4  ;;  %s3470_s0 = int_to_ptr.vmem [resolvable:$true] %s3469_s0 }
0x13bb   : > { %s4186_s7 = scalar_lea.vmem %s3470_s0, 16  ;;  %p4193_p0 = scmp.lt.s32.totalorder %s3470_s0, %s4191_s18 }
0x13bc   : > { %p4187_p11 = scmp.ne.s32.totalorder %s3470_s0, %s4186_s7  ;;  %p4194_p1 = scmp.lt.s32.totalorder %s4192_s29, %s4186_s7 }
0x13be   : > { %p4188_p12 = pnand %p4187_p11, %p4413_p5  ;;  %p4195_p2 = por %p4194_p1, %p4193_p0 }
0x13c0   : > { %p4189_p13 = pneg %p4188_p12 }
0x13c2   : > { %p4196_p3 = pnand %p4195_p2, %p4189_p13 }
0x1422   : > { %v2592_v60 = vpop.permute.xlu0 %2591 }
0x1423   : > { %2594 = vst.msk [vmem:[#allocation3] sm:$0x1f] %vm1466_vm9, %v2592_v60 }
0x1426   : > { %v2769_v61 = vpop.permute.xlu1 %2768 }
0x1427   : > { %2771 = vst.msk [vmem:[#allocation3] sm:$0x1f] %vm1644_vm10, %v2769_v61 }
0x142a   : > { %v2946_v62 = vpop.permute.xlu0 %2945 }
0x142b   : > { %2948 = vst.msk [vmem:[#allocation3] sm:$0x1f] %vm1822_vm11, %v2946_v62 }
0x1432   : > { %v2949_v63 = vld [vmem:[#allocation3] sm:$0x1f] }
0x1433   : > { %4032 = vmatmul.mubr.msk.f32.vlgmr.msra.gmra.mxu0 %vm1039_vm2, %v2949_v63 }
0x1434   : > { %4061 = vmatprep.mubr.msk.f32.mxu0 %vm4249_vm1, %v4248_v57  ;;  %4046 = vmatpush3.msra.mxu0 %v3675_v40 }
0x1435   : > { %4047 = vmatprep.subr.mxu0 %v4248_v57 }
0x1436   : > { %4048 = vmatpush3.msra.mxu0 %v3674_v41 }
0x1437   : > { %4049 = vmatprep.subr.mxu0 %v4248_v57 }
0x1438   : > { %4050 = vmatpush3.msra.mxu0 %v3673_v42 }
0x1439   : > { %4051 = vmatprep.subr.mxu0 %v4248_v57 }
0x143a   : > { %4052 = vmatpush3.msra.mxu0 %v3672_v50 }
0x143b   : > { %4053 = vmatprep.subr.mxu0 %v4248_v57 }
0x143c   : > { %4054 = vmatpush3.msra.mxu0 %v3671_v43 }
0x143d   : > { %4055 = vmatprep.subr.mxu0 %v4248_v57 }
0x143e   : > { %4056 = vmatpush3.msra.mxu0 %v3670_v44 }
0x143f   : > { %4057 = vmatprep.subr.mxu0 %v4248_v57 }
0x1440   : > { %4058 = vmatpush3.msra.mxu0 %v3669_v45 }
0x1441   : > { %4059 = vmatprep.subr.mxu0 %v4248_v57 }
0x1442   : > { %4060 = vmatpush3.msra.mxu0 %v3668_v46 }
0x14f3   : > { %v3032_v4 = vpop.f32.mrf.mxu0 }
0x14f4   : > { %v3033_v5 = vadd.f32 %v3655_v3, %v3032_v4 }
0x14f5   : > { %v4033_v7 = vpop.f32.mrf.mxu0 }
0x14f6   : > { %v5110_v9 = vadd.f32 %v3033_v5, %v4961_v17 }
0x14f8   : > { %v3041_v10 = vsel %vm999_vm0, %v5110_v9, 0.0 }
0x14f9   : > { %3042 = vadd.xlane.f32.xlu1 %v3041_v10 }
0x14fd   : > { %2125 = vadd.xlane.f32.xlu1 %v2124_v13  ;;  %v3368_v13 = vld [vmem:[%s5276_s17 + $0x10] sm:$0xff] }
0x1501   : > { %3257 = vadd.xlane.f32.xlu1 %v3256_v15 }
0x1582   : > { %v3043_v19 = vpop.xlane.xlu1 %3042 }
0x1583   : > { %v3044_v16 = vmul.f32 0.03125, %v3043_v19 }
0x1585   : > { %v3045_v18 = vsub.f32 %v5110_v9, %v3044_v16 }
0x1586   : > { %v2126_v27 = vpop.xlane.xlu1 %2125 }
0x1587   : > { %v3046_v20 = vmul.f32 %v3045_v18, %v3045_v18 }
0x1589   : > { %v3047_v17 = vsel %vm999_vm0, %v3046_v20, 0.0  ;;  %v3681_v20 = vld [vmem:[%s5274_s15] ss:$0 sm:$0xff] }
0x158a   : > { %3048 = vadd.xlane.f32.xlu0 %v3047_v17  ;;  %v3258_v29 = vpop.xlane.xlu1 %3257 }
0x1613   : > { %v3049_v25 = vpop.xlane.xlu0 %3048 }
0x1614   : > { %v3050_v26 = vmul.f32 0.03125, %v3049_v25 }
0x1616   : > { %v3051_v28 = vadd.f32 1e-06, %v3050_v26 }
0x1618   : > { %4176 = vrsqrt.f32 %v3051_v28 }
0x1619   : > { %4178 = vrcp.f32 %v2126_v27 }
0x161a   : > { %4180 = vrcp.f32 %v3258_v29 }
0x1625   : > { %v4177_v30 = vpop.eup %4176 }
0x1626   : > { %v3053_v32 = vmul.f32 %v4177_v30, %v3045_v18  ;;  %v4179_v34 = vpop.eup %4178 }
0x1627   : > { %v4181_v37 = vpop.eup %4180  ;;  %v2128_v38 = vmul.f32 %v4179_v34, %v2123_v11 }
0x1628   : > { %v3060_v35 = vmul.f32 %v3659_v31, %v3053_v32  ;;  %v3260_v39 = vmul.f32 %v4181_v37, %v3255_v14  ;;  %v3366_v14 = vld [vmem:[%s5276_s17] sm:$0xff] }
0x162a   : > { %v3067_v36 = vadd.f32 %v3660_v33, %v3060_v35 }
0x162c   : > { %4043 = vmatmul.mubr.msk.f32.vlgmr.msra.gmra.mxu1 %vm1039_vm2, %v3067_v36 }
0x162d   : > { %4065 = vmatpush3.msk.msra.mxu1 %vm1215_vm5, %v2128_v38  ;;  %4066 = vmatprep.mubr.msk.f32.mxu1 %vm4249_vm1, %v4248_v57 }
0x162e   : > { %4069 = vmatprep.subr.mxu1 %v4248_v57 }
0x1630   : > { %4067 = vmatmul.mubr.msk.f32.vlgmr.msra.gmra.mxu1 %vm1211_vm7, %v3260_v39 }
0x1631   : > { %4077 = vmatprep.mubr.msk.f32.mxu1 %vm4249_vm1, %v4248_v57  ;;  %4070 = vmatpush3.msra.mxu1 %v3369_v12 }
0x1632   : > { %4071 = vmatprep.subr.mxu1 %v4248_v57 }
0x1633   : > { %4072 = vmatpush3.msra.mxu1 %v3368_v13 }
0x1634   : > { %4073 = vmatprep.subr.mxu1 %v4248_v57 }
0x16ec   : > { %v3150_v48 = vpop.f32.mrf.mxu1 }
0x16ed   : > { %v3151_v49 = vadd.f32 %v3666_v47, %v3150_v48 }
0x16ee   : > { %v4044_v51 = vpop.f32.mrf.mxu1 }
0x16ef   : > { %v3154_v52 = vmul.f32 %v3151_v49, %v3151_v49 }
0x16f0   : > { %v3333_v53 = vpop.f32.mrf.mxu1 }
0x16f1   : > { %v3155_v54 = vmul.f32 %v3154_v52, %v3151_v49  ;;  %3446 = vst.msk [vmem:[%s676_s28] sm:$0x1f] %vm1195_vm6, %v3333_v53 }
0x16f2   : > { %v4068_v55 = vpop.f32.mrf.mxu1 }
0x16f3   : > { %v3156_v56 = vmul.f32 0.044715, %v3155_v54 }
0x16f5   : > { %v3157_v58 = vadd.f32 %v3156_v56, %v3151_v49 }
0x16f7   : > { %v3158_v59 = vmul.f32 0.7978846, %v3157_v58 }
0x16f9   : > { %4182 = vtanh.f32 %v3158_v59 }
0x1706   : > { %v4183_v60 = vpop.eup %4182 }
0x1707   : > { %v3160_v61 = vadd.f32 1.0, %v4183_v60 }
0x1709   : > { %v3161_v62 = vmul.f32 0.5, %v3160_v61 }
0x170b   : > { %v3162_v63 = vmul.f32 %v3161_v62, %v3151_v49 }
0x170d   : > { %4062 = vmatmul.mubr.msk.f32.vlgmr.msra.gmra.mxu0 %vm2047_vm12, %v3162_v63 }
0x17cd   : > { %v3249_v1 = vpop.f32.mrf.mxu0 }
0x17ce   : > { %v3250_v2 = vadd.f32 %v3677_v0, %v3249_v1 }
0x17cf   : > { %v4063_v3 = vpop.f32.mrf.mxu0 }
0x17d0   : > { %v3253_v4 = vadd.f32 %v3250_v2, %v5110_v9  ;;  %v3367_v9 = vld [vmem:[%s5276_s17 + $0x8] sm:$0xff] }
0x17d1   : > { %4074 = vmatpush3.msra.mxu1 %v3367_v9 }
0x17d2   : > { %v3339_v5 = vsel %vm999_vm0, %v3253_v4, 0.0  ;;  %4075 = vmatprep.subr.mxu1 %v4248_v57  ;;  %v3370_v57 = vld [vmem:[%s5351_s5] sm:$0x1] }
0x17d3   : > { %3340 = vadd.xlane.f32.xlu0 %v3339_v5  ;;  %4076 = vmatpush3.msra.mxu1 %v3366_v14 }
0x185c   : > { %v3341_v6 = vpop.xlane.xlu0 %3340 }
0x185d   : > { %v3342_v7 = vmul.f32 0.03125, %v3341_v6 }
0x185f   : > { %v3343_v8 = vsub.f32 %v3253_v4, %v3342_v7 }
0x1861   : > { %v3344_v10 = vmul.f32 %v3343_v8, %v3343_v8 }
0x1863   : > { %v3345_v11 = vsel %vm999_vm0, %v3344_v10, 0.0 }
0x1864   : > { %3346 = vadd.xlane.f32.xlu0 %v3345_v11 }
0x18ed   : > { %v3347_v15 = vpop.xlane.xlu0 %3346 }
0x18ee   : > { %v3348_v19 = vmul.f32 0.03125, %v3347_v15 }
0x18f0   : > { %v3349_v16 = vadd.f32 1e-06, %v3348_v19 }
0x18f2   : > { %4184 = vrsqrt.f32 %v3349_v16 }
0x18ff   : > { %v4185_v18 = vpop.eup %4184 }
0x1900   : > { %v3351_v17 = vmul.f32 %v4185_v18, %v3343_v8 }
0x1902   : > { %v3358_v22 = vmul.f32 %v3681_v20, %v3351_v17 }
0x1904   : > { %v3365_v23 = vadd.f32 %v3682_v21, %v3358_v22 }
0x1906   : > { %4078 = vmatmul.mubr.msk.f32.vlgmr.msra.gmra.mxu1 %vm1039_vm2, %v3365_v23 }
0x19c6   : > { %v3440_v24 = vpop.f32.mrf.mxu1 }
0x19c7   : > { %v3441_v25 = vadd.f32 %v3440_v24, %v3370_v57 }
0x19c8   : > { %v4079_v26 = vpop.f32.mrf.mxu1 }
0x19c9   : > { %3445 = vst.msk [vmem:[%s649_s2] sm:$0x1] %vm3444_vm14, %v3441_v25 }
0x19ca   : > { %4199 = shalt.err (!%p4196_p3)
}
0x19cb   : > { %s4200_s5 = scalar_lea.hbm %s5224_s4, 16  ;;  %s4204_s2 = scalar_lea.hbm %s5352_s22, 32 }
0x19cc   : > { %p4201_p4 = scmp.ne.s32.totalorder %s5224_s4, %s4200_s5  ;;  %p4205_p9 = scmp.lt.s32.totalorder %s5224_s4, %s5352_s22 }
0x19cd   : > { %p4206_p10 = scmp.lt.s32.totalorder %s4204_s2, %s4200_s5 }
0x19ce   : > { %p4202_p7 = pnand %p4201_p4, %p4413_p5 }
0x19cf   : > { %p4207_p11 = por %p4206_p10, %p4205_p9 }
0x19d0   : > { %p4203_p8 = pneg %p4202_p7 }
0x19d2   : > { %p4208_p12 = pnand %p4207_p11, %p4203_p8 }
0x19d4   : > { %4211 = shalt.err (!%p4208_p12)
}
0x19d5   : > { %4081 = dma.vmem_to_hbm [thread:$0]  (%p4413_p5), %s3470_s0, 16, %s5224_s4, %s3448_s6  }
0x19d6 PF: > { %s5353_s7 = sld [smem:[#allocation9_spill]] }
0x19d7   : > { %s5354_s3 = sld [smem:[#allocation7_spill]] }
0x19dc   : > { %p4087_p13 = scmp.ge.s32.totalorder %s5353_s7, 2 }
0x19dd   : > { %s3487_s29 = sand.u32 1, %s5354_s3  }
0x19de   : > { %p4084_p0 = pnand %p4087_p13, %p4417_p6  ;;  %s3488_s26 = scalar_lea.sflag [#allocation5], %s3487_s29 }
0x19e0   : > { %p4085_p1 = pneg %p4084_p0 }
0x19e2   : > { %4229 = dma.done.wait (%p4085_p1), %s3488_s26, 16  }
0x19e3   : > { %4231 = vsyncadd (%p4085_p1), %s3488_s26, 4294967280  ;;  %s5356_s27 = sld [smem:[#allocation10_spill]]  ;;  %s5359_s2 = smov %s4238_s25 }
0x19e4   : > { %s5357_s5 = sld [smem:[#allocation8_spill]] }
0x19e5   : > { %s5358_s26 = sld [smem:[#allocation11_spill]] }
0x19e9   : > { %p32_p2 = scmp.ge.s32.totalorder %s5356_s27, 4  }
0x19ea   : > { %s5360_s25 = smov %s5357_s5 }
0x19eb   :  { %34 = sbr.rel (!%p32_p2) target bundleno = 14 (0xe), region = 174 }
0x19f0   :  { %3507 = vsyncpa [#allocation5], 1 }
0x19f1   :  { %3509 = vsyncpa [#allocation5 + $0x1], 1 }

// kernel: mainnet_forward.3
= control target key start
LH: loop header
LB: loop body
LE: loop exit
PB: predicated region body
PF: predicated region fallthrough
CT: control target
= control target key end

     0   :  { %s5423_s0 = inlined_call_operand.vmem [shape: f32[2,5,768], index: 0, kind: input, shape index: {}]   ;;  %s5424_s1 = inlined_call_operand.vmem [shape: f32[5,32], index: 1, kind: input, shape index: {}]   ;;  %s5425_s2 = inlined_call_operand.vmem [shape: f32[768,32], index: 2, kind: input, shape index: {}]   ;;  %s5426_s3 = inlined_call_operand.vmem [shape: f32[2,1,32], index: 3, kind: input, shape index: {}]   ;;  %s5427_s4 = inlined_call_operand.vmem [shape: f32[2,1,32], index: 4, kind: input, shape index: {}]   ;;  %s5428_s5 = inlined_call_operand.vmem [shape: f32[2,32,96], index: 5, kind: input, shape index: {}]   ;;  %s5429_s6 = inlined_call_operand.vmem [shape: f32[2,1,96], index: 6, kind: input, shape index: {}]   ;;  %s5430_s7 = inlined_call_operand.vmem [shape: f32[2,32,32], index: 7, kind: input, shape index: {}]   ;;  %s5431_s8 = inlined_call_operand.vmem [shape: f32[2,1,32], index: 8, kind: input, shape index: {}]   ;;  %s5432_s9 = inlined_call_operand.vmem [shape: f32[2,1,32], index: 9, kind: input, shape index: {}]   ;;  %s5433_s10 = inlined_call_operand.vmem [shape: f32[2,1,32], index: 10, kind: input, shape index: {}]   ;;  %s5434_s11 = inlined_call_operand.vmem [shape: f32[2,32,64], index: 11, kind: input, shape index: {}]   ;;  %s5435_s12 = inlined_call_operand.vmem [shape: f32[2,1,64], index: 12, kind: input, shape index: {}]   ;;  %s5436_s13 = inlined_call_operand.vmem [shape: f32[2,64,32], index: 13, kind: input, shape index: {}]   ;;  %s5437_s14 = inlined_call_operand.vmem [shape: f32[2,1,32], index: 14, kind: input, shape index: {}]   ;;  %s5438_s15 = inlined_call_operand.vmem [shape: f32[1,32], index: 15, kind: input, shape index: {}]   ;;  %s5439_s16 = inlined_call_operand.vmem [shape: f32[1,32], index: 16, kind: input, shape index: {}]   ;;  %s5440_s17 = inlined_call_operand.vmem [shape: f32[32,10], index: 17, kind: input, shape index: {}]   ;;  %s5441_s18 = inlined_call_operand.vmem [shape: f32[1,10], index: 18, kind: input, shape index: {}]   ;;  %s5442_s19 = inlined_call_operand.hbm [shape: f32[2,1,10], index: 19, kind: output, shape index: {0}]   ;;  %s5443_s20 = inlined_call_operand.hbm [shape: f32[2,8,5,5], index: 20, kind: output, shape index: {1}]   ;;  %s5444_s21 = inlined_call_operand.hbm [shape: f32[2,5,5], index: 21, kind: output, shape index: {2}]  }
   0x1   :  { %5474 = sst [smem:[#allocation17_spill]] %s5423_s0 }
   0x2   :  { %5475 = sst [smem:[#allocation18_spill]] %s5424_s1 }
   0x3   :  { %5476 = sst [smem:[#allocation19_spill]] %s5425_s2 }
   0x4   :  { %5477 = sst [smem:[#allocation20_spill]] %s5426_s3 }
   0x5   :  { %5478 = sst [smem:[#allocation21_spill]] %s5427_s4 }
   0x6   :  { %5479 = sst [smem:[#allocation22_spill]] %s5428_s5 }
   0x7   :  { %5480 = sst [smem:[#allocation23_spill]] %s5429_s6 }
   0x8   :  { %5481 = sst [smem:[#allocation24_spill]] %s5430_s7 }
   0x9   :  { %5482 = sst [smem:[#allocation25_spill]] %s5431_s8 }
   0xa   :  { %5483 = sst [smem:[#allocation26_spill]] %s5432_s9 }
   0xb   :  { %5484 = sst [smem:[#allocation27_spill]] %s5433_s10 }
   0xc   :  { %5485 = sst [smem:[#allocation28_spill]] %s5441_s18 }
   0xd   :  { %5486 = sst [smem:[#allocation29_spill]] %s5442_s19 }
   0xe   :  { %27 = vsyncpa [#allocation5], 0 }
   0xf   :  { %29 = vsyncpa [#allocation5 + $0x1], 0 }
  0x10   :  { %30 = vsyncpa [#allocation7], 0 }
  0x11   :  { %32 = vsyncpa [#allocation7 + $0x1], 0  ;;  %s4480_s2 = smov 0   ;;  %s4482_s25 = smov 0  }
  0x12   :  { %s4484_s26 = smov 0   ;;  %s4486_s27 = smov 0  }
  0x13 LB: > { %5487 = sst [smem:[#allocation11_spill]] %s4336_s2  ;;  %s4501_s3 = sadd.s32 4294967295, %s4348_s27   ;;  %s4348_s27 = sphi %s4486_s27, %s5529_s27   ;;  %s4344_s26 = sphi %s4484_s26, %s5531_s26   ;;  %s4340_s25 = sphi %s4482_s25, %s5533_s25   ;;  %s4336_s2 = sphi %s4480_s2, %s5532_s2  }
  0x14   : > { %5488 = sst [smem:[#allocation12_spill]] %s4344_s26  ;;  %s5449_s28 = sadd.s32 4294967294, %s4348_s27  }
  0x15   : > { %5489 = sst [smem:[#allocation13_spill]] %s4348_s27  ;;  %s4505_s29 = sadd.s32 1, %s4348_s27  }
  0x16   : > { %5490 = sst [smem:[#allocation14_spill]] %s4505_s29  ;;  %s449_s0 = sadd.s32 1, %s4344_s26 }
  0x17   : > { %s446_s4 = ssub.s32 %s4348_s27, %s4505_s29  ;;  %p459_p0 = scmp.ne.s32.totalorder %s4344_s26, %s4340_s25 }
  0x18   : > { %p447_p1 = scmp.eq.s32.totalorder %s446_s4, 0  ;;  %p460_p2 = scmp.eq.s32.totalorder %s4501_s3, 1 }
  0x19   : > { %p465_p3 = scmp.ne.s32.totalorder %s4340_s25, %s4336_s2  ;;  %p466_p4 = scmp.eq.s32.totalorder %s5449_s28, 1 }
  0x1a   : > { %s4518_s30 = scalar_select %p447_p1, %s4344_s26, %s449_s0  }
  0x1b   : > { %p4520_p5 = por %p460_p2, %p459_p0  ;;  %p4524_p6 = por %p466_p4, %p465_p3 }
  0x1c   : > { %5491 = sst [smem:[#allocation15_spill]] %s4518_s30  ;;  %p3613_p7 = scmp.ge.s32.totalorder %s4348_s27, 1 }
  0x1d   : > { %s5493_s22 = scalar_select %p4524_p6, 1, 0 }
  0x1e   : > { %p598_p8 = scmp.lt.s32.totalorder %s4348_s27, 3 }
  0x1f   : > { %5494 = sst [smem:[#allocation16_spill]] %s5493_s22 }
  0x20   : > { %p599_p9 = pnand %p3613_p7, %p598_p8 }
  0x21   : > { %s5495_s24 = sld [smem:[#allocation19_spill]] (!%p599_p9)  ;;  %p667_p10 = scmp.lt.s32.totalorder (!%p599_p9), %s4501_s3, 1 }
  0x22   : > { %602 = sbr.rel (%p599_p9) target bundleno = 6618 (0x19da), region = 96  ;;  %s5496_s19 = sld [smem:[#allocation17_spill]] (!%p599_p9) }
  0x23   : > { %s5498_s27 = sld [smem:[#allocation22_spill]] (!%p599_p9)  ;;  %s5469_s30 = smov (!%p599_p9), 96  }
  0x24   : > { %s5503_s6 = sld [smem:[#allocation23_spill]] (!%p599_p9)  ;;  %s5470_s4 = smov (!%p599_p9), 88  }
  0x25   : > { %s5468_s26 = smov (!%p599_p9), 120   ;;  %s4894_s29 = sand.u32 (!%p599_p9), 1, %s4340_s25  }
  0x26   : > { %s5467_s1 = smov (!%p599_p9), 80   ;;  %s5504_s7 = sld [smem:[#allocation24_spill]] (!%p599_p9) }
  0x27   : > { %v709_v0 = vld [vmem:[%s5495_s24 + $0xf8] sm:$0xff]  ;;  %v708_v2 = vld [vmem:[%s5495_s24 + $0xf0] sm:$0xff]  ;;  %v707_v6 = vld [vmem:[%s5495_s24 + $0xe8] sm:$0xff]  ;;  %s4651_s28 = scalar_select %p667_p10, %s4501_s3, 1  ;;  %vm994_vm0 = vcmask 258048   ;;  %vm4351_vm1 = vmmov 0  }
  0x28   : > { %v693_v1 = vld [vmem:[%s5495_s24 + $0x78] sm:$0xff]  ;;  %3723 = vmatprep.subr.mxu0 %v709_v0  ;;  %v692_v4 = vld [vmem:[%s5495_s24 + $0x70] sm:$0xff]  ;;  %v691_v8 = vld [vmem:[%s5495_s24 + $0x68] sm:$0xff]  ;;  %vm1034_vm2 = vcmask 261120   ;;  %vm1108_vm3 = vcmask 782336   ;;  %vm1114_vm4 = vcmask 64512  }
  0x29   : > { %v741_v3 = vld [vmem:[%s5495_s24 + $0x1f8] sm:$0xff]  ;;  %3724 = vmatpush3.msra.mxu0 %v693_v1  ;;  %v740_v7 = vld [vmem:[%s5495_s24 + $0x1f0] sm:$0xff]  ;;  %v739_v10 = vld [vmem:[%s5495_s24 + $0x1e8] sm:$0xff]  ;;  %s4115_s22 = smul.u32 48, %s4651_s28  ;;  %s5497_s28 = sld [smem:[#allocation18_spill]]  ;;  %vm1210_vm5 = vcmask 1044480  }
  0x2a   : > { %v725_v5 = vld [vmem:[%s5495_s24 + $0x178] sm:$0xff]  ;;  %3758 = vmatprep.subr.mxu1 %v741_v3  ;;  %3725 = vmatprep.subr.mxu0 %v708_v2  ;;  %v724_v9 = vld [vmem:[%s5495_s24 + $0x170] sm:$0xff]  ;;  %v706_v11 = vld [vmem:[%s5495_s24 + $0xe0] sm:$0xff]  ;;  %s5499_s0 = smov %s5498_s27  ;;  %vm1190_vm6 = vcmask 36864   ;;  %vm1206_vm7 = vcmask 39936   ;;  %vm1283_vm8 = vcmask 61440  }
  0x2b   : > { %3759 = vmatpush3.msra.mxu1 %v725_v5  ;;  %3726 = vmatpush3.msra.mxu0 %v692_v4  ;;  %v723_v12 = vld [vmem:[%s5495_s24 + $0x168] sm:$0xff]  ;;  %v690_v13 = vld [vmem:[%s5495_s24 + $0x60] sm:$0xff]  ;;  %v705_v15 = vld [vmem:[%s5495_s24 + $0xd8] sm:$0xff]  ;;  %s4705_s18 = scalar_lea.vmem %s5496_s19, %s4115_s22  ;;  %s5459_s22 = smov 64   ;;  %vm1461_vm9 = vcmask 127040   ;;  %vm1639_vm10 = vcmask 192640  }
  0x2c   : > { %3760 = vmatprep.subr.mxu1 %v740_v7  ;;  %3727 = vmatprep.subr.mxu0 %v707_v6  ;;  %v738_v14 = vld [vmem:[%s5495_s24 + $0x1e0] sm:$0xff]  ;;  %v689_v17 = vld [vmem:[%s5495_s24 + $0x58] sm:$0xff]  ;;  %v704_v19 = vld [vmem:[%s5495_s24 + $0xd0] sm:$0xff]  ;;  %s5466_s19 = smov 112   ;;  %vm1817_vm11 = vcmask 258240   ;;  %s5505_s8 = sld [smem:[#allocation25_spill]] }
  0x2d   : > { %3761 = vmatpush3.msra.mxu1 %v724_v9  ;;  %3728 = vmatpush3.msra.mxu0 %v691_v8  ;;  %v722_v16 = vld [vmem:[%s5495_s24 + $0x160] sm:$0xff]  ;;  %v737_v18 = vld [vmem:[%s5495_s24 + $0x1d8] sm:$0xff]  ;;  %v688_v21 = vld [vmem:[%s5495_s24 + $0x50] sm:$0xff]  ;;  %s5506_s9 = sld [smem:[#allocation26_spill]]  ;;  %vm2042_vm12 = vcmask 523264  }
  0x2e   : > { %3762 = vmatprep.subr.mxu1 %v739_v10  ;;  %3729 = vmatprep.subr.mxu0 %v706_v11  ;;  %v721_v20 = vld [vmem:[%s5495_s24 + $0x158] sm:$0xff]  ;;  %v736_v22 = vld [vmem:[%s5495_s24 + $0x1d0] sm:$0xff]  ;;  %v703_v23 = vld [vmem:[%s5495_s24 + $0xc8] sm:$0xff]  ;;  %s5507_s10 = sld [smem:[#allocation27_spill]] }
  0x2f   : > { %3763 = vmatpush3.msra.mxu1 %v723_v12  ;;  %3730 = vmatpush3.msra.mxu0 %v690_v13  ;;  %v720_v24 = vld [vmem:[%s5495_s24 + $0x150] sm:$0xff]  ;;  %v687_v25 = vld [vmem:[%s5495_s24 + $0x48] sm:$0xff]  ;;  %v702_v27 = vld [vmem:[%s5495_s24 + $0xc0] sm:$0xff] }
  0x30   : > { %3764 = vmatprep.subr.mxu1 %v738_v14  ;;  %3731 = vmatprep.subr.mxu0 %v705_v15  ;;  %v735_v26 = vld [vmem:[%s5495_s24 + $0x1c8] sm:$0xff]  ;;  %v686_v29 = vld [vmem:[%s5495_s24 + $0x40] sm:$0xff]  ;;  %v701_v31 = vld [vmem:[%s5495_s24 + $0xb8] sm:$0xff] }
  0x31   : > { %3765 = vmatpush3.msra.mxu1 %v722_v16  ;;  %3732 = vmatpush3.msra.mxu0 %v689_v17  ;;  %v719_v28 = vld [vmem:[%s5495_s24 + $0x148] sm:$0xff]  ;;  %v734_v30 = vld [vmem:[%s5495_s24 + $0x1c0] sm:$0xff]  ;;  %v685_v33 = vld [vmem:[%s5495_s24 + $0x38] sm:$0xff] }
  0x32   : > { %3766 = vmatprep.subr.mxu1 %v737_v18  ;;  %3733 = vmatprep.subr.mxu0 %v704_v19  ;;  %v718_v32 = vld [vmem:[%s5495_s24 + $0x140] sm:$0xff]  ;;  %v733_v34 = vld [vmem:[%s5495_s24 + $0x1b8] sm:$0xff]  ;;  %v700_v35 = vld [vmem:[%s5495_s24 + $0xb0] sm:$0xff] }
  0x33   : > { %3767 = vmatpush3.msra.mxu1 %v721_v20  ;;  %3734 = vmatpush3.msra.mxu0 %v688_v21  ;;  %v717_v36 = vld [vmem:[%s5495_s24 + $0x138] sm:$0xff]  ;;  %v684_v37 = vld [vmem:[%s5495_s24 + $0x30] sm:$0xff]  ;;  %v699_v39 = vld [vmem:[%s5495_s24 + $0xa8] sm:$0xff] }
  0x34   : > { %3768 = vmatprep.subr.mxu1 %v736_v22  ;;  %3735 = vmatprep.subr.mxu0 %v703_v23  ;;  %v732_v38 = vld [vmem:[%s5495_s24 + $0x1b0] sm:$0xff]  ;;  %v683_v41 = vld [vmem:[%s5495_s24 + $0x28] sm:$0xff]  ;;  %v698_v43 = vld [vmem:[%s5495_s24 + $0xa0] sm:$0xff] }
  0x35   : > { %3769 = vmatpush3.msra.mxu1 %v720_v24  ;;  %3736 = vmatpush3.msra.mxu0 %v687_v25  ;;  %v716_v40 = vld [vmem:[%s5495_s24 + $0x130] sm:$0xff]  ;;  %v731_v42 = vld [vmem:[%s5495_s24 + $0x1a8] sm:$0xff]  ;;  %v682_v45 = vld [vmem:[%s5495_s24 + $0x20] sm:$0xff] }
  0x36   : > { %3770 = vmatprep.subr.mxu1 %v735_v26  ;;  %3737 = vmatprep.subr.mxu0 %v702_v27  ;;  %v715_v44 = vld [vmem:[%s5495_s24 + $0x128] sm:$0xff]  ;;  %v730_v46 = vld [vmem:[%s5495_s24 + $0x1a0] sm:$0xff]  ;;  %v697_v47 = vld [vmem:[%s5495_s24 + $0x98] sm:$0xff] }
  0x37   : > { %3771 = vmatpush3.msra.mxu1 %v719_v28  ;;  %3738 = vmatpush3.msra.mxu0 %v686_v29  ;;  %v714_v48 = vld [vmem:[%s5495_s24 + $0x120] sm:$0xff]  ;;  %v681_v49 = vld [vmem:[%s5495_s24 + $0x18] sm:$0xff]  ;;  %v696_v51 = vld [vmem:[%s5495_s24 + $0x90] sm:$0xff] }
  0x38   : > { %3772 = vmatprep.subr.mxu1 %v734_v30  ;;  %3739 = vmatprep.subr.mxu0 %v701_v31  ;;  %v729_v50 = vld [vmem:[%s5495_s24 + $0x198] sm:$0xff]  ;;  %v680_v53 = vld [vmem:[%s5495_s24 + $0x10] sm:$0xff]  ;;  %v695_v55 = vld [vmem:[%s5495_s24 + $0x88] sm:$0xff] }
  0x39   : > { %3773 = vmatpush3.msra.mxu1 %v718_v32  ;;  %3740 = vmatpush3.msra.mxu0 %v685_v33  ;;  %v713_v52 = vld [vmem:[%s5495_s24 + $0x118] sm:$0xff]  ;;  %v728_v54 = vld [vmem:[%s5495_s24 + $0x190] sm:$0xff]  ;;  %v679_v57 = vld [vmem:[%s5495_s24 + $0x8] sm:$0xff] }
  0x3a   : > { %3774 = vmatprep.subr.mxu1 %v733_v34  ;;  %3741 = vmatprep.subr.mxu0 %v700_v35  ;;  %v712_v56 = vld [vmem:[%s5495_s24 + $0x110] sm:$0xff]  ;;  %v727_v58 = vld [vmem:[%s5495_s24 + $0x188] sm:$0xff]  ;;  %v694_v59 = vld [vmem:[%s5495_s24 + $0x80] sm:$0xff] }
  0x3b   : > { %3775 = vmatpush3.msra.mxu1 %v717_v36  ;;  %3742 = vmatpush3.msra.mxu0 %v684_v37  ;;  %v673_v60 = vld [vmem:[%s4705_s18 + $0x8] sm:$0x1f]  ;;  %v678_v61 = vld [vmem:[%s5495_s24] sm:$0xff]  ;;  %v773_v1 = vld [vmem:[%s5495_s24 + $0x2f8] sm:$0xff] }
  0x3c   : > { %3776 = vmatprep.subr.mxu1 %v732_v38  ;;  %3743 = vmatprep.subr.mxu0 %v699_v39  ;;  %v711_v62 = vld [vmem:[%s5495_s24 + $0x108] sm:$0xff]  ;;  %v672_v63 = vld [vmem:[%s4705_s18] sm:$0x1f]  ;;  %v675_v3 = vld [vmem:[%s4705_s18 + $0x18] sm:$0x1f] }
  0x3d   : > { %3777 = vmatpush3.msra.mxu1 %v716_v40  ;;  %3744 = vmatpush3.msra.mxu0 %v683_v41  ;;  %v726_v0 = vld [vmem:[%s5495_s24 + $0x180] sm:$0xff]  ;;  %v757_v4 = vld [vmem:[%s5495_s24 + $0x278] sm:$0xff]  ;;  %v674_v5 = vld [vmem:[%s4705_s18 + $0x10] sm:$0x1f] }
  0x3e   : > { %3778 = vmatprep.subr.mxu1 %v731_v42  ;;  %3745 = vmatprep.subr.mxu0 %v698_v43  ;;  %v710_v2 = vld [vmem:[%s5495_s24 + $0x100] sm:$0xff]  ;;  %v772_v6 = vld [vmem:[%s5495_s24 + $0x2f0] sm:$0xff]  ;;  %v677_v8 = vld [vmem:[%s4705_s18 + $0x28] sm:$0x1f] }
  0x3f   : > { %3779 = vmatpush3.msra.mxu1 %v715_v44  ;;  %3746 = vmatpush3.msra.mxu0 %v682_v45  ;;  %v756_v7 = vld [vmem:[%s5495_s24 + $0x270] sm:$0xff]  ;;  %v771_v9 = vld [vmem:[%s5495_s24 + $0x2e8] sm:$0xff]  ;;  %v770_v11 = vld [vmem:[%s5495_s24 + $0x2e0] sm:$0xff] }
  0x40   : > { %3780 = vmatprep.subr.mxu1 %v730_v46  ;;  %3747 = vmatprep.subr.mxu0 %v697_v47  ;;  %v755_v10 = vld [vmem:[%s5495_s24 + $0x268] sm:$0xff]  ;;  %v754_v12 = vld [vmem:[%s5495_s24 + $0x260] sm:$0xff]  ;;  %v769_v13 = vld [vmem:[%s5495_s24 + $0x2d8] sm:$0xff] }
  0x41   : > { %3781 = vmatpush3.msra.mxu1 %v714_v48  ;;  %3748 = vmatpush3.msra.mxu0 %v681_v49  ;;  %v753_v14 = vld [vmem:[%s5495_s24 + $0x258] sm:$0xff]  ;;  %v768_v15 = vld [vmem:[%s5495_s24 + $0x2d0] sm:$0xff]  ;;  %v767_v17 = vld [vmem:[%s5495_s24 + $0x2c8] sm:$0xff] }
  0x42   : > { %3782 = vmatprep.subr.mxu1 %v729_v50  ;;  %3749 = vmatprep.subr.mxu0 %v696_v51  ;;  %v752_v16 = vld [vmem:[%s5495_s24 + $0x250] sm:$0xff]  ;;  %v751_v18 = vld [vmem:[%s5495_s24 + $0x248] sm:$0xff]  ;;  %v766_v19 = vld [vmem:[%s5495_s24 + $0x2c0] sm:$0xff] }
  0x43   : > { %3783 = vmatpush3.msra.mxu1 %v713_v52  ;;  %3750 = vmatpush3.msra.mxu0 %v680_v53  ;;  %v750_v20 = vld [vmem:[%s5495_s24 + $0x240] sm:$0xff]  ;;  %v765_v21 = vld [vmem:[%s5495_s24 + $0x2b8] sm:$0xff]  ;;  %v764_v23 = vld [vmem:[%s5495_s24 + $0x2b0] sm:$0xff] }
  0x44   : > { %3784 = vmatprep.subr.mxu1 %v728_v54  ;;  %3751 = vmatprep.subr.mxu0 %v695_v55  ;;  %v749_v22 = vld [vmem:[%s5495_s24 + $0x238] sm:$0xff]  ;;  %v748_v24 = vld [vmem:[%s5495_s24 + $0x230] sm:$0xff]  ;;  %v763_v25 = vld [vmem:[%s5495_s24 + $0x2a8] sm:$0xff] }
  0x45   : > { %3785 = vmatpush3.msra.mxu1 %v712_v56  ;;  %3752 = vmatpush3.msra.mxu0 %v679_v57  ;;  %v747_v26 = vld [vmem:[%s5495_s24 + $0x228] sm:$0xff]  ;;  %v762_v27 = vld [vmem:[%s5495_s24 + $0x2a0] sm:$0xff]  ;;  %v761_v29 = vld [vmem:[%s5495_s24 + $0x298] sm:$0xff]  ;;  %v4350_v57 = vmov 0.0  }
  0x46   : > { %3786 = vmatprep.subr.mxu1 %v727_v58  ;;  %3753 = vmatprep.subr.mxu0 %v694_v59  ;;  %v746_v28 = vld [vmem:[%s5495_s24 + $0x220] sm:$0xff]  ;;  %v745_v30 = vld [vmem:[%s5495_s24 + $0x218] sm:$0xff]  ;;  %v760_v31 = vld [vmem:[%s5495_s24 + $0x290] sm:$0xff] }
  0x47   : > { %839 = vmatprep.mubr.f32.mxu0 %v673_v60  ;;  %3754 = vmatpush3.msra.mxu0 %v678_v61  ;;  %v744_v32 = vld [vmem:[%s5495_s24 + $0x210] sm:$0xff]  ;;  %v759_v33 = vld [vmem:[%s5495_s24 + $0x288] sm:$0xff]  ;;  %v758_v35 = vld [vmem:[%s5495_s24 + $0x280] sm:$0xff] }
  0x48   : > { %3787 = vmatpush3.msra.mxu1 %v711_v62  ;;  %840 = vmatmul.mubr.f32.vlgmr.msra.gmra.mxu0 %v672_v63  ;;  %v743_v34 = vld [vmem:[%s5495_s24 + $0x208] sm:$0xff]  ;;  %v742_v36 = vld [vmem:[%s5495_s24 + $0x200] sm:$0xff]  ;;  %v1026_v58 = vld [vmem:[%s5498_s27 + $0x18] sm:$0xff]  ;;  %s5501_s27 = sld [smem:[#allocation21_spill]] }
  0x49   : > { %3788 = vmatprep.subr.mxu1 %v726_v0  ;;  %3793 = vmatprep.subr.mxu0 %v773_v1  ;;  %v676_v37 = vld [vmem:[%s4705_s18 + $0x20] sm:$0x1f]  ;;  %v1025_v59 = vld [vmem:[%s5499_s0 + $0x10] sm:$0xff]  ;;  %v1024_v60 = vld [vmem:[%s5499_s0 + $0x8] sm:$0xff]  ;;  %s3614_s18 = sshll.u32 %s4894_s29, 6 }
  0x4a   : > { %3789 = vmatpush3.msra.mxu1 %v710_v2  ;;  %909 = vmatprep.mubr.f32.mxu1 %v675_v3  ;;  %v774_v42 = vld [vmem:[%s5497_s28] sm:$0x1f]  ;;  %s5500_s28 = sld [smem:[#allocation20_spill]]  ;;  %s4901_s2 = scalar_lea.vmem [#allocation6], %s3614_s18 }
  0x4b   : > { %3794 = vmatpush3.msra.mxu0 %v757_v4  ;;  %910 = vmatmul.mubr.f32.vlgmr.msra.gmra.mxu1 %v674_v5  ;;  %v1023_v61 = vld [vmem:[%s5499_s0] sm:$0xff]  ;;  %s5465_s18 = smov 72  }
  0x4c   : > { %3795 = vmatprep.subr.mxu0 %v772_v6  ;;  %979 = vmatprep.mubr.f32.mxu0 %v677_v8 }
  0x4d   : > { %3796 = vmatpush3.msra.mxu0 %v756_v7  ;;  %3915 = vmatprep.subr.mxu1 %v4350_v57  ;;  %v3620_v7 = vld [vmem:[%s5503_s6] ss:$0 sm:$0xff] }
  0x4e   : > { %3797 = vmatprep.subr.mxu0 %v771_v9  ;;  %3916 = vmatpush3.msra.mxu1 %v1026_v58  ;;  %s5502_s23 = smov %s5501_s27  ;;  %v3619_v4 = vld [vmem:[%s5501_s27] ss:$0 sm:$0xff]  ;;  %s5458_s27 = smov 56  }
  0x4f   : > { %3798 = vmatpush3.msra.mxu0 %v755_v10  ;;  %3917 = vmatprep.subr.mxu1 %v4350_v57 }
  0x50   : > { %3799 = vmatprep.subr.mxu0 %v770_v11  ;;  %3918 = vmatpush3.msra.mxu1 %v1025_v59  ;;  %v3618_v2 = vld [vmem:[%s5500_s28] ss:$0 sm:$0xff] }
  0x51   : > { %3800 = vmatpush3.msra.mxu0 %v754_v12  ;;  %3923 = vmatprep.mubr.msk.f32.mxu1 %vm4351_vm1, %v4350_v57 }
  0x52   : > { %3801 = vmatprep.subr.mxu0 %v769_v13  ;;  %3919 = vmatprep.subr.mxu1 %v4350_v57 }
  0x53   : > { %3802 = vmatpush3.msra.mxu0 %v753_v14  ;;  %3920 = vmatpush3.msra.mxu1 %v1024_v60 }
  0x54   : > { %3803 = vmatprep.subr.mxu0 %v768_v15  ;;  %3921 = vmatprep.subr.mxu1 %v4350_v57 }
  0x55   : > { %3804 = vmatpush3.msra.mxu0 %v752_v16  ;;  %3922 = vmatpush3.msra.mxu1 %v1023_v61 }
  0x56   : > { %3805 = vmatprep.subr.mxu0 %v767_v17  ;;  %3926 = vmatprep.subr.mxu1 %v4350_v57 }
  0x57   : > { %3806 = vmatpush3.msra.mxu0 %v751_v18 }
  0x58   : > { %3807 = vmatprep.subr.mxu0 %v766_v19 }
  0x59   : > { %3808 = vmatpush3.msra.mxu0 %v750_v20 }
  0x5a   : > { %3809 = vmatprep.subr.mxu0 %v765_v21 }
  0x5b   : > { %3810 = vmatpush3.msra.mxu0 %v749_v22 }
  0x5c   : > { %3811 = vmatprep.subr.mxu0 %v764_v23 }
  0x5d   : > { %3812 = vmatpush3.msra.mxu0 %v748_v24 }
  0x5e   : > { %3813 = vmatprep.subr.mxu0 %v763_v25 }
  0x5f   : > { %3814 = vmatpush3.msra.mxu0 %v747_v26 }
  0x60   : > { %3815 = vmatprep.subr.mxu0 %v762_v27 }
  0x61   : > { %3816 = vmatpush3.msra.mxu0 %v746_v28 }
  0x62   : > { %3817 = vmatprep.subr.mxu0 %v761_v29 }
  0x63   : > { %3818 = vmatpush3.msra.mxu0 %v745_v30 }
  0x64   : > { %3819 = vmatprep.subr.mxu0 %v760_v31 }
  0x65   : > { %3820 = vmatpush3.msra.mxu0 %v744_v32 }
  0x66   : > { %3821 = vmatprep.subr.mxu0 %v759_v33 }
  0x67   : > { %3822 = vmatpush3.msra.mxu0 %v743_v34 }
  0x68   : > { %3823 = vmatprep.subr.mxu0 %v758_v35 }
  0x69   : > { %3824 = vmatpush3.msra.mxu0 %v742_v36 }
  0x6a   : > { %980 = vmatmul.mubr.f32.vlgmr.msra.gmra.mxu0 %v676_v37  ;;  %3956 = vmatprep.subr.mxu0 %v4350_v57 }
  0x6b   : > { %3958 = vmatprep.mubr.msk.f32.mxu0 %vm4351_vm1, %v4350_v57 }
 0x108   : > { %v3755_v38 = vpop.f32.mrf.mxu0 }
 0x10a   : > { %v3756_v39 = vpop.f32.mrf.mxu0 }
 0x10b   : > { %v3790_v40 = vpop.f32.mrf.mxu1  ;;  %v3757_v41 = vadd.f32 %v3756_v39, %v3755_v38 }
 0x10d   : > { %v3791_v43 = vpop.f32.mrf.mxu1  ;;  %v842_v44 = vadd.f32 %v3757_v41, %v774_v42 }
 0x10e   : > { %v3792_v45 = vadd.f32 %v3791_v43, %v3790_v40 }
 0x110   : > { %v912_v48 = vadd.f32 %v3792_v45, %v842_v44 }
 0x12a   : > { %v3825_v46 = vpop.f32.mrf.mxu0 }
 0x12c   : > { %v3826_v47 = vpop.f32.mrf.mxu0 }
 0x12d   : > { %v3827_v49 = vadd.f32 %v3826_v47, %v3825_v46 }
 0x12f   : > { %v4839_v50 = vadd.f32 %v3827_v49, %v912_v48 }
 0x131   : > { %v995_v51 = vsel %vm994_vm0, %v4839_v50, 0.0 }
 0x132   : > { %996 = vadd.xlane.f32.xlu0 %v995_v51 }
 0x1bb   : > { %v997_v52 = vpop.xlane.xlu0 %996 }
 0x1bc   : > { %v999_v53 = vmul.f32 0.03125, %v997_v52 }
 0x1be   : > { %v1000_v54 = vsub.f32 %v4839_v50, %v999_v53 }
 0x1c0   : > { %v1001_v55 = vmul.f32 %v1000_v54, %v1000_v54 }
 0x1c2   : > { %v1002_v56 = vsel %vm994_vm0, %v1001_v55, 0.0 }
 0x1c3   : > { %1003 = vadd.xlane.f32.xlu0 %v1002_v56 }
 0x24c   : > { %v1004_v62 = vpop.xlane.xlu0 %1003 }
 0x24d   : > { %v1005_v63 = vmul.f32 0.03125, %v1004_v62 }
 0x24f   : > { %v1006_v0 = vadd.f32 1e-06, %v1005_v63 }
 0x251   : > { %4182 = vrsqrt.f32 %v1006_v0 }
 0x25e   : > { %v4183_v1 = vpop.eup %4182 }
 0x25f   : > { %v1008_v3 = vmul.f32 %v4183_v1, %v1000_v54 }
 0x261   : > { %v1015_v5 = vmul.f32 %v3618_v2, %v1008_v3 }
 0x263   : > { %v1022_v6 = vadd.f32 %v3619_v4, %v1015_v5 }
 0x265   : > { %3924 = vmatmul.mubr.msk.f32.vlgmr.msra.gmra.mxu1 %vm1034_vm2, %v1022_v6 }
 0x266   : > { %3928 = vmatprep.mubr.msk.f32.mxu1 %vm4351_vm1, %v4350_v57 }
 0x325   : > { %v1104_v8 = vpop.f32.mrf.mxu1 }
 0x326   : > { %v1105_v9 = vadd.f32 %v3620_v7, %v1104_v8 }
 0x327   : > { %v3925_v10 = vpop.f32.mrf.mxu1 }
 0x328   : > { %1109 = vst.msk [vmem:[#allocation2] sm:$0x1f] %vm1108_vm3, %v1105_v9 }
 0x32f   : > { %v1110_v11 = vld [vmem:[#allocation2] sm:$0x1f] }
 0x330   : > { %1204 = vrot.lane.b32.xlu0 %v1110_v11, %s5459_s22  ;;  %1112 = vrot.lane.b32.xlu1 %v1110_v11, %s5469_s30  ;;  %v1285_v23 = vld [vmem:[#allocation2] sm:$0x1f]  ;;  %s5461_s22 = smov 40   ;;  %s5508_s30 = smov 88  }
 0x331   : > { %v4916_v35 = vld [vmem:[#allocation2] sm:$0x1f] }
 0x332   : > { %v1641_v36 = vld [vmem:[#allocation2] sm:$0x1f] }
 0x3a2   : > { %v1113_v12 = vpop.permute.xlu1 %1112  ;;  %v1205_v13 = vpop.permute.xlu0 %1204 }
 0x3a3   : > { %3927 = vmatpush3.xpose.msk.msra.mxu1 %vm1114_vm4, %v1113_v12 }
 0x3a4   : > { %3931 = vmatprep.subr.mxu1 %v4350_v57 }
 0x3a6   : > { %3929 = vmatmul.mubr.msk.f32.vlgmr.msra.gmra.mxu1 %vm1114_vm4, %v1110_v11 }
 0x3a7   : > { %3932 = vmatpush3.msk.msra.mxu1 %vm1210_vm5, %v1205_v13  ;;  %3933 = vmatprep.mubr.msk.f32.mxu1 %vm4351_vm1, %v4350_v57 }
 0x3a8   : > { %3936 = vmatprep.subr.mxu1 %v4350_v57 }
 0x466   : > { %v1185_v14 = vpop.f32.mrf.mxu1 }
 0x467   : > { %v1189_v15 = vmul.f32 0.35355338, %v1185_v14 }
 0x468   : > { %v3930_v16 = vpop.f32.mrf.mxu1 }
 0x469   : > { %v1191_v17 = vsel %vm1190_vm6, %v1189_v15, -inf }
 0x46a   : > { %1192 = vmax.xlane.f32.xlu1 %v1191_v17 }
 0x4f3   : > { %v1193_v18 = vpop.xlane.xlu1 %1192 }
 0x4f4   : > { %v1194_v19 = vsub.f32 %v1189_v15, %v1193_v18 }
 0x4f6   : > { %v1195_v20 = vmul.f32 1.442695, %v1194_v19 }
 0x4f8   : > { %4184 = vpow2.f32 %v1195_v20  ;;  %v1823_v20 = vld [vmem:[%s5504_s7 + $0x18] sm:$0xff] }
 0x505   : > { %v4185_v21 = vpop.eup %4184 }
 0x506   : > { %v1197_v22 = vsel %vm1190_vm6, %v4185_v21, 0.0 }
 0x507   : > { %1198 = vadd.xlane.f32.xlu0 %v1197_v22  ;;  %v1821_v22 = vld [vmem:[%s5504_s7 + $0x8] sm:$0xff] }
 0x51d   : > { %1289 = vrot.lane.b32.xlu0 %v1285_v23, %s5470_s4  ;;  %s5509_s4 = smov 96  }
 0x521   : > { %1287 = vrot.lane.b32.xlu0 %v1285_v23, %s5468_s26  ;;  %s5471_s26 = smov 24  }
 0x590   : > { %v1199_v24 = vpop.xlane.xlu0 %1198 }
 0x591   : > { %4186 = vrcp.f32 %v1199_v24 }
 0x594   : > { %v1290_v26 = vpop.permute.xlu0 %1289 }
 0x598   : > { %v1288_v28 = vpop.permute.xlu0 %1287 }
 0x59e   : > { %v4187_v25 = vpop.eup %4186 }
 0x59f   : > { %v4897_v27 = vmul.f32 %v4187_v25, %v4185_v21  ;;  %v1822_v21 = vld [vmem:[%s5504_s7 + $0x10] sm:$0xff] }
 0x5a1   : > { %3934 = vmatmul.mubr.msk.f32.vlgmr.msra.gmra.mxu1 %vm1206_vm7, %v4897_v27  ;;  %1202 = vst.msk [vmem:[%s4901_s2] sm:$0x1f] %vm1190_vm6, %v4897_v27 }
 0x5a2   : > { %3937 = vmatpush3.xpose.msk.msra.mxu1 %vm1114_vm4, %v1290_v26  ;;  %3938 = vmatprep.mubr.msk.f32.mxu1 %vm4351_vm1, %v4350_v57 }
 0x5a3   : > { %3941 = vmatprep.subr.mxu1 %v4350_v57 }
 0x5a5   : > { %3939 = vmatmul.mubr.msk.f32.vlgmr.msra.gmra.mxu1 %vm1114_vm4, %v1288_v28 }
 0x5a6   : > { %3943 = vmatprep.mubr.msk.f32.mxu1 %vm4351_vm1, %v4350_v57 }
 0x661   : > { %v1279_v29 = vpop.f32.mrf.mxu1 }
 0x662   : > { %1284 = vst.msk [vmem:[#allocation3] sm:$0x1f] %vm1283_vm8, %v1279_v29 }
 0x663   : > { %v3935_v30 = vpop.f32.mrf.mxu1 }
 0x665   : > { %v1361_v31 = vpop.f32.mrf.mxu1 }
 0x666   : > { %v1365_v32 = vmul.f32 0.35355338, %v1361_v31  ;;  %v3641_v31 = vld [vmem:[%s5505_s8] ss:$0 sm:$0xff] }
 0x667   : > { %v3940_v33 = vpop.f32.mrf.mxu1 }
 0x668   : > { %v1366_v34 = vsel %vm1190_vm6, %v1365_v32, -inf }
 0x669   : > { %1367 = vmax.xlane.f32.xlu1 %v1366_v34 }
 0x67a   : > { %1380 = vrot.lane.b32.xlu1 %v1285_v23, %s5458_s27  ;;  %s5460_s27 = smov 104   ;;  %v1820_v23 = vld [vmem:[%s5504_s7] sm:$0xff] }
 0x67e   : > { %1467 = vrot.lane.b32.xlu1 %v4916_v35, %s5467_s1  ;;  %s5511_s1 = smov 80  }
 0x682   : > { %1465 = vrot.lane.b32.xlu1 %v4916_v35, %s5466_s19  ;;  %s5512_s19 = smov 112  }
 0x686   : > { %1645 = vrot.lane.b32.xlu1 %v1641_v36, %s5465_s18  ;;  %s5513_s18 = smov 72  }
 0x6f2   : > { %v1368_v37 = vpop.xlane.xlu1 %1367 }
 0x6f3   : > { %v1369_v38 = vsub.f32 %v1365_v32, %v1368_v37 }
 0x6f5   : > { %v1370_v39 = vmul.f32 1.442695, %v1369_v38 }
 0x6f6   : > { %v1381_v40 = vpop.permute.xlu1 %1380 }
 0x6f7   : > { %4188 = vpow2.f32 %v1370_v39  ;;  %3942 = vmatpush3.msk.msra.mxu1 %vm1210_vm5, %v1381_v40 }
 0x6f8   : > { %3946 = vmatprep.subr.mxu1 %v4350_v57 }
 0x6fa   : > { %v1468_v41 = vpop.permute.xlu1 %1467 }
 0x6fe   : > { %v1466_v42 = vpop.permute.xlu1 %1465 }
 0x702   : > { %v1646_v43 = vpop.permute.xlu1 %1645 }
 0x703   : > { %3957 = vmatpush3.xpose.msk.msra.mxu0 %vm1114_vm4, %v1646_v43  ;;  %v1935_v43 = vld [vmem:[%s5434_s11 + $0x8] sm:$0xff] }
 0x704   : > { %v4189_v44 = vpop.eup %4188  ;;  %3966 = vmatprep.subr.mxu0 %v4350_v57 }
 0x705   : > { %v1372_v45 = vsel %vm1190_vm6, %v4189_v44, 0.0 }
 0x706   : > { %1373 = vadd.xlane.f32.xlu0 %v1372_v45 }
 0x71c   : > { %1643 = vrot.lane.b32.xlu0 %v1641_v36, %s5460_s27  ;;  %s5464_s27 = smov 48  }
 0x78f   : > { %v1374_v46 = vpop.xlane.xlu0 %1373 }
 0x790   : > { %4190 = vrcp.f32 %v1374_v46 }
 0x793   : > { %v1644_v47 = vpop.permute.xlu0 %1643 }
 0x794   : > { %3959 = vmatmul.mubr.msk.f32.vlgmr.msra.gmra.mxu0 %vm1114_vm4, %v1644_v47 }
 0x795   : > { %3974 = vmatprep.mubr.msk.f32.mxu0 %vm4351_vm1, %v4350_v57  ;;  %3967 = vmatpush3.msra.mxu0 %v1823_v20 }
 0x796   : > { %3968 = vmatprep.subr.mxu0 %v4350_v57 }
 0x797   : > { %3969 = vmatpush3.msra.mxu0 %v1822_v21 }
 0x798   : > { %3970 = vmatprep.subr.mxu0 %v4350_v57 }
 0x799   : > { %3971 = vmatpush3.msra.mxu0 %v1821_v22 }
 0x79a   : > { %3972 = vmatprep.subr.mxu0 %v4350_v57 }
 0x79b   : > { %3973 = vmatpush3.msra.mxu0 %v1820_v23 }
 0x79c   : > { %3988 = vmatprep.subr.mxu0 %v4350_v57 }
 0x79d   : > { %v4191_v48 = vpop.eup %4190 }
 0x79e   : > { %v1376_v49 = vmul.f32 %v4191_v48, %v4189_v44  ;;  %v1934_v44 = vld [vmem:[%s5434_s11] sm:$0xff] }
 0x7a0   : > { %3944 = vmatmul.mubr.msk.f32.vlgmr.msra.gmra.mxu1 %vm1206_vm7, %v1376_v49  ;;  %3628 = vst.msk [vmem:[%s4901_s2 + $0x8] sm:$0x1f] %vm1190_vm6, %v1376_v49  ;;  %v1379_v16 = vadd.f32 %v1376_v49, %v4897_v27  ;;  %v3643_v49 = vld [vmem:[%s5506_s9] ss:$0 sm:$0xff] }
 0x7a1   : > { %3947 = vmatpush3.xpose.msk.msra.mxu1 %vm1114_vm4, %v1468_v41  ;;  %3948 = vmatprep.mubr.msk.f32.mxu1 %vm4351_vm1, %v4350_v57 }
 0x7a2   : > { %3951 = vmatprep.subr.mxu1 %v4350_v57 }
 0x7a4   : > { %3949 = vmatmul.mubr.msk.f32.vlgmr.msra.gmra.mxu1 %vm1114_vm4, %v1466_v42  ;;  %v1937_v42 = vld [vmem:[%s5434_s11 + $0x18] sm:$0xff] }
 0x7a5   : > { %3953 = vmatprep.mubr.msk.f32.mxu1 %vm4351_vm1, %v4350_v57 }
 0x854   : > { %v1717_v51 = vpop.f32.mrf.mxu0 }
 0x855   : > { %v1721_v52 = vmul.f32 0.35355338, %v1717_v51 }
 0x856   : > { %v3960_v53 = vpop.f32.mrf.mxu0 }
 0x857   : > { %v1722_v54 = vsel %vm1190_vm6, %v1721_v52, -inf }
 0x858   : > { %1723 = vmax.xlane.f32.xlu0 %v1722_v54 }
 0x860   : > { %v1453_v55 = vpop.f32.mrf.mxu1 }
 0x862   : > { %v3945_v56 = vpop.f32.mrf.mxu1 }
 0x863   : > { %v2033_v56 = vld [vmem:[%s5436_s13 + $0x30] sm:$0xff] }
 0x864   : > { %v1539_v58 = vpop.f32.mrf.mxu1 }
 0x865   : > { %v1543_v59 = vmul.f32 0.35355338, %v1539_v58  ;;  %v2032_v58 = vld [vmem:[%s5436_s13 + $0x28] sm:$0xff] }
 0x866   : > { %v3950_v60 = vpop.f32.mrf.mxu1 }
 0x867   : > { %v1544_v61 = vsel %vm1190_vm6, %v1543_v59, -inf  ;;  %v2030_v60 = vld [vmem:[%s5436_s13 + $0x18] sm:$0xff] }
 0x868   : > { %1545 = vmax.xlane.f32.xlu1 %v1544_v61  ;;  %v2029_v61 = vld [vmem:[%s5436_s13 + $0x10] sm:$0xff] }
 0x86e   : > { %1736 = vrot.lane.b32.xlu0 %v1641_v36, %s5461_s22  ;;  %s5462_s22 = smov 8  }
 0x8e1   : > { %v1724_v62 = vpop.xlane.xlu0 %1723 }
 0x8e2   : > { %v1725_v63 = vsub.f32 %v1721_v52, %v1724_v62  ;;  %v3644_v52 = vld [vmem:[%s5507_s10] ss:$0 sm:$0xff]  ;;  %v2028_v62 = vld [vmem:[%s5436_s13 + $0x8] sm:$0xff] }
 0x8e4   : > { %v1726_v0 = vmul.f32 1.442695, %v1725_v63  ;;  %v2027_v63 = vld [vmem:[%s5436_s13] sm:$0xff] }
 0x8e5   : > { %v1737_v17 = vpop.permute.xlu0 %1736 }
 0x8e6   : > { %4192 = vpow2.f32 %v1726_v0  ;;  %v3645_v0 = vld [vmem:[%s5435_s12] ss:$0 sm:$0xff] }
 0x8f1   : > { %v1546_v1 = vpop.xlane.xlu1 %1545 }
 0x8f2   : > { %v1547_v2 = vsub.f32 %v1543_v59, %v1546_v1  ;;  %v2031_v59 = vld [vmem:[%s5436_s13 + $0x20] sm:$0xff] }
 0x8f3   : > { %v4193_v3 = vpop.eup %4192 }
 0x8f4   : > { %v1548_v4 = vmul.f32 1.442695, %v1547_v2  ;;  %v1728_v5 = vsel %vm1190_vm6, %v4193_v3, 0.0 }
 0x8f5   : > { %1729 = vadd.xlane.f32.xlu1 %v1728_v5 }
 0x8f6   : > { %4194 = vpow2.f32 %v1548_v4 }
 0x903   : > { %v4195_v6 = vpop.eup %4194 }
 0x904   : > { %v1550_v7 = vsel %vm1190_vm6, %v4195_v6, 0.0 }
 0x905   : > { %1551 = vadd.xlane.f32.xlu1 %v1550_v7 }
 0x916   : > { %1558 = vrot.lane.b32.xlu1 %v4916_v35, %s5464_s27  ;;  %s5510_s27 = smov 120  }
 0x91a   : > { %1458 = vrot.lane.b32.xlu1 %v1453_v55, %s5462_s22  ;;  %s5472_s22 = smov 16   ;;  %v2034_v55 = vld [vmem:[%s5436_s13 + $0x38] sm:$0xff] }
 0x97e   : > { %v1730_v8 = vpop.xlane.xlu1 %1729 }
 0x97f   : > { %4196 = vrcp.f32 %v1730_v8 }
 0x98c   : > { %v4197_v9 = vpop.eup %4196 }
 0x98d   : > { %v1732_v10 = vmul.f32 %v4197_v9, %v4193_v3 }
 0x98e   : > { %v1552_v11 = vpop.xlane.xlu1 %1551 }
 0x98f   : > { %4198 = vrcp.f32 %v1552_v11  ;;  %3638 = vst.msk [vmem:[%s4901_s2 + $0x18] sm:$0x1f] %vm1190_vm6, %v1732_v10 }
 0x992   : > { %v1559_v12 = vpop.permute.xlu1 %1558 }
 0x993   : > { %3952 = vmatpush3.msk.msra.mxu1 %vm1210_vm5, %v1559_v12 }
 0x994   : > { %3961 = vmatprep.subr.mxu1 %v4350_v57 }
 0x996   : > { %v1459_v13 = vpop.permute.xlu1 %1458 }
 0x997   : > { %1462 = vst.msk [vmem:[#allocation3] sm:$0x1f] %vm1461_vm9, %v1459_v13  ;;  %v3647_v13 = vld [vmem:[%s5437_s14] ss:$0 sm:$0xff] }
 0x99c   : > { %v4199_v14 = vpop.eup %4198 }
 0x99d   : > { %v1554_v15 = vmul.f32 %v4199_v14, %v4195_v6 }
 0x99f   : > { %3954 = vmatmul.mubr.msk.f32.vlgmr.msra.gmra.mxu1 %vm1206_vm7, %v1554_v15  ;;  %v1557_v18 = vadd.f32 %v1554_v15, %v1379_v16  ;;  %3633 = vst.msk [vmem:[%s4901_s2 + $0x10] sm:$0x1f] %vm1190_vm6, %v1554_v15 }
 0x9a0   : > { %3962 = vmatpush3.msk.msra.mxu1 %vm1210_vm5, %v1737_v17  ;;  %3963 = vmatprep.mubr.msk.f32.mxu1 %vm4351_vm1, %v4350_v57 }
 0x9a1   : > { %3977 = vmatprep.subr.mxu1 %v4350_v57  ;;  %v4963_v19 = vadd.f32 %v1732_v10, %v1557_v18 }
 0x9a3   : > { %3964 = vmatmul.mubr.msk.f32.vlgmr.msra.gmra.mxu1 %vm1206_vm7, %v1732_v10 }
 0x9a4   : > { %3985 = vmatprep.mubr.msk.f32.mxu1 %vm4351_vm1, %v4350_v57  ;;  %3978 = vmatpush3.msra.mxu1 %v1937_v42 }
 0x9a5   : > { %3979 = vmatprep.subr.mxu1 %v4350_v57 }
 0xa5f   : > { %v1631_v24 = vpop.f32.mrf.mxu1 }
 0xa60   : > { %1636 = vrot.lane.b32.xlu1 %v1631_v24, %s5472_s22  ;;  %s5514_s22 = smov 104  }
 0xa61   : > { %v3955_v25 = vpop.f32.mrf.mxu1 }
 0xa62   : > { %v3656_v25 = vld [vmem:[%s5499_s0 + $0x38] sm:$0xff] }
 0xa63   : > { %v1809_v26 = vpop.f32.mrf.mxu1 }
 0xa64   : > { %1814 = vrot.lane.b32.xlu1 %v1809_v26, %s5471_s26  ;;  %v3655_v26 = vld [vmem:[%s5499_s0 + $0x30] sm:$0xff]  ;;  %s5515_s26 = smov 64  }
 0xa65   : > { %v3965_v27 = vpop.f32.mrf.mxu1 }
 0xa66   : > { %v3654_v27 = vld [vmem:[%s5499_s0 + $0x28] sm:$0xff] }
 0xad2   : > { %v1637_v28 = vpop.permute.xlu1 %1636 }
 0xad3   : > { %1640 = vst.msk [vmem:[#allocation3] sm:$0x1f] %vm1639_vm10, %v1637_v28  ;;  %v3653_v28 = vld [vmem:[%s5499_s0 + $0x20] sm:$0xff] }
 0xad6   : > { %v1815_v29 = vpop.permute.xlu1 %1814 }
 0xad7   : > { %1818 = vst.msk [vmem:[#allocation3] sm:$0x1f] %vm1817_vm11, %v1815_v29 }
 0xade   : > { %v1819_v30 = vld [vmem:[#allocation3] sm:$0x1f] }
 0xadf   : > { %3975 = vmatmul.mubr.msk.f32.vlgmr.msra.gmra.mxu0 %vm1034_vm2, %v1819_v30 }
 0xae0   : > { %4004 = vmatprep.mubr.msk.f32.mxu0 %vm4351_vm1, %v4350_v57  ;;  %3989 = vmatpush3.msra.mxu0 %v2034_v55 }
 0xae1   : > { %3990 = vmatprep.subr.mxu0 %v4350_v57 }
 0xae2   : > { %3991 = vmatpush3.msra.mxu0 %v2033_v56 }
 0xae3   : > { %3992 = vmatprep.subr.mxu0 %v4350_v57 }
 0xae4   : > { %3993 = vmatpush3.msra.mxu0 %v2032_v58 }
 0xae5   : > { %3994 = vmatprep.subr.mxu0 %v4350_v57 }
 0xae6   : > { %3995 = vmatpush3.msra.mxu0 %v2031_v59 }
 0xae7   : > { %3996 = vmatprep.subr.mxu0 %v4350_v57 }
 0xae8   : > { %3997 = vmatpush3.msra.mxu0 %v2030_v60 }
 0xae9   : > { %3998 = vmatprep.subr.mxu0 %v4350_v57 }
 0xaea   : > { %3999 = vmatpush3.msra.mxu0 %v2029_v61 }
 0xaeb   : > { %4000 = vmatprep.subr.mxu0 %v4350_v57 }
 0xaec   : > { %4001 = vmatpush3.msra.mxu0 %v2028_v62 }
 0xaed   : > { %4002 = vmatprep.subr.mxu0 %v4350_v57 }
 0xaee   : > { %4003 = vmatpush3.msra.mxu0 %v2027_v63 }
 0xaef   : > { %4028 = vmatprep.subr.mxu0 %v4350_v57 }
 0xb9f   : > { %v1900_v32 = vpop.f32.mrf.mxu0 }
 0xba0   : > { %v1901_v33 = vadd.f32 %v3641_v31, %v1900_v32 }
 0xba1   : > { %v3976_v34 = vpop.f32.mrf.mxu0 }
 0xba2   : > { %v4995_v35 = vadd.f32 %v1901_v33, %v4839_v50  ;;  %v1936_v50 = vld [vmem:[%s5434_s11 + $0x10] sm:$0xff]  ;;  %v3651_v33 = vld [vmem:[%s5500_s28 + $0x1] ss:$0 sm:$0xff] }
 0xba3   : > { %3980 = vmatpush3.msra.mxu1 %v1936_v50 }
 0xba4   : > { %v1907_v36 = vsel %vm994_vm0, %v4995_v35, 0.0  ;;  %3981 = vmatprep.subr.mxu1 %v4350_v57 }
 0xba5   : > { %1908 = vadd.xlane.f32.xlu1 %v1907_v36  ;;  %3982 = vmatpush3.msra.mxu1 %v1935_v43 }
 0xba6   : > { %3983 = vmatprep.subr.mxu1 %v4350_v57 }
 0xba7   : > { %3984 = vmatpush3.msra.mxu1 %v1934_v44 }
 0xba8   : > { %4007 = vmatprep.subr.mxu1 %v4350_v57 }
 0xc2e   : > { %v1909_v37 = vpop.xlane.xlu1 %1908 }
 0xc2f   : > { %v1910_v38 = vmul.f32 0.03125, %v1909_v37 }
 0xc31   : > { %v1911_v39 = vsub.f32 %v4995_v35, %v1910_v38  ;;  %v3658_v38 = vld [vmem:[%s5503_s6 + $0x1] ss:$0 sm:$0xff] }
 0xc33   : > { %v1912_v40 = vmul.f32 %v1911_v39, %v1911_v39 }
 0xc35   : > { %v1913_v41 = vsel %vm994_vm0, %v1912_v40, 0.0 }
 0xc36   : > { %1914 = vadd.xlane.f32.xlu0 %v1913_v41 }
 0xcbf   : > { %v1915_v45 = vpop.xlane.xlu0 %1914 }
 0xcc0   : > { %v1916_v46 = vmul.f32 0.03125, %v1915_v45 }
 0xcc2   : > { %v1917_v47 = vadd.f32 1e-06, %v1916_v46 }
 0xcc4   : > { %4200 = vrsqrt.f32 %v1917_v47 }
 0xcd1   : > { %v4201_v48 = vpop.eup %4200 }
 0xcd2   : > { %v1919_v51 = vmul.f32 %v4201_v48, %v1911_v39 }
 0xcd4   : > { %v1926_v53 = vmul.f32 %v3643_v49, %v1919_v51 }
 0xcd6   : > { %v1933_v54 = vadd.f32 %v3644_v52, %v1926_v53 }
 0xcd8   : > { %3986 = vmatmul.mubr.msk.f32.vlgmr.msra.gmra.mxu1 %vm1034_vm2, %v1933_v54 }
 0xcd9   : > { %4015 = vmatprep.mubr.msk.f32.mxu1 %vm4351_vm1, %v4350_v57  ;;  %4008 = vmatpush3.msra.mxu1 %v3656_v25 }
 0xcda   : > { %4009 = vmatprep.subr.mxu1 %v4350_v57 }
 0xcdb   : > { %4010 = vmatpush3.msra.mxu1 %v3655_v26 }
 0xcdc   : > { %4011 = vmatprep.subr.mxu1 %v4350_v57 }
 0xcdd   : > { %4012 = vmatpush3.msra.mxu1 %v3654_v27 }
 0xcde   : > { %4013 = vmatprep.subr.mxu1 %v4350_v57 }
 0xcdf   : > { %4014 = vmatpush3.msra.mxu1 %v3653_v28 }
 0xce0   : > { %4018 = vmatprep.subr.mxu1 %v4350_v57 }
 0xd98   : > { %v2014_v1 = vpop.f32.mrf.mxu1 }
 0xd99   : > { %v2015_v2 = vadd.f32 %v3645_v0, %v2014_v1 }
 0xd9a   : > { %v3987_v3 = vpop.f32.mrf.mxu1 }
 0xd9b   : > { %v2018_v4 = vmul.f32 %v2015_v2, %v2015_v2 }
 0xd9d   : > { %v2019_v5 = vmul.f32 %v2018_v4, %v2015_v2 }
 0xd9f   : > { %v2020_v6 = vmul.f32 0.044715, %v2019_v5 }
 0xda1   : > { %v2021_v7 = vadd.f32 %v2020_v6, %v2015_v2 }
 0xda3   : > { %v2022_v8 = vmul.f32 0.7978846, %v2021_v7 }
 0xda5   : > { %4202 = vtanh.f32 %v2022_v8 }
 0xdb2   : > { %v4203_v9 = vpop.eup %4202 }
 0xdb3   : > { %v2024_v10 = vadd.f32 1.0, %v4203_v9 }
 0xdb5   : > { %v2025_v11 = vmul.f32 0.5, %v2024_v10 }
 0xdb7   : > { %v2026_v12 = vmul.f32 %v2025_v11, %v2015_v2 }
 0xdb9   : > { %4005 = vmatmul.mubr.msk.f32.vlgmr.msra.gmra.mxu0 %vm2042_vm12, %v2026_v12 }
 0xdba   : > { %4030 = vmatprep.mubr.msk.f32.mxu0 %vm4351_vm1, %v4350_v57 }
 0xe79   : > { %v2112_v14 = vpop.f32.mrf.mxu0 }
 0xe7a   : > { %v2113_v15 = vadd.f32 %v3647_v13, %v2112_v14 }
 0xe7b   : > { %v4006_v16 = vpop.f32.mrf.mxu0 }
 0xe7c   : > { %v5068_v17 = vadd.f32 %v2113_v15, %v4995_v35  ;;  %v3652_v35 = vld [vmem:[%s5502_s23 + $0x1] ss:$0 sm:$0xff] }
 0xe7e   : > { %v2128_v18 = vsel %vm994_vm0, %v5068_v17, 0.0 }
 0xe7f   : > { %2129 = vadd.xlane.f32.xlu0 %v2128_v18 }
 0xf08   : > { %v2130_v20 = vpop.xlane.xlu0 %2129 }
 0xf09   : > { %v2131_v21 = vmul.f32 0.03125, %v2130_v20 }
 0xf0b   : > { %v2132_v22 = vsub.f32 %v5068_v17, %v2131_v21 }
 0xf0d   : > { %v2133_v23 = vmul.f32 %v2132_v22, %v2132_v22 }
 0xf0f   : > { %v2134_v24 = vsel %vm994_vm0, %v2133_v23, 0.0 }
 0xf10   : > { %2135 = vadd.xlane.f32.xlu1 %v2134_v24 }
 0xf99   : > { %v2136_v29 = vpop.xlane.xlu1 %2135 }
 0xf9a   : > { %v2137_v30 = vmul.f32 0.03125, %v2136_v29 }
 0xf9c   : > { %v2138_v31 = vadd.f32 1e-06, %v2137_v30 }
 0xf9e   : > { %4204 = vrsqrt.f32 %v2138_v31 }
 0xfab   : > { %v4205_v32 = vpop.eup %4204 }
 0xfac   : > { %v2140_v34 = vmul.f32 %v4205_v32, %v2132_v22 }
 0xfae   : > { %v2147_v36 = vmul.f32 %v3651_v33, %v2140_v34 }
 0xfb0   : > { %v2154_v37 = vadd.f32 %v3652_v35, %v2147_v36 }
 0xfb2   : > { %4016 = vmatmul.mubr.msk.f32.vlgmr.msra.gmra.mxu1 %vm1034_vm2, %v2154_v37 }
 0xfb3   : > { %4020 = vmatprep.mubr.msk.f32.mxu1 %vm4351_vm1, %v4350_v57 }
0x1072   : > { %v2237_v39 = vpop.f32.mrf.mxu1 }
0x1073   : > { %v2238_v40 = vadd.f32 %v3658_v38, %v2237_v39 }
0x1074   : > { %v4017_v41 = vpop.f32.mrf.mxu1 }
0x1075   : > { %2241 = vst.msk [vmem:[#allocation2] sm:$0x1f] %vm1108_vm3, %v2238_v40 }
0x107c   : > { %v5103_v42 = vld [vmem:[#allocation2] sm:$0x1f] }
0x107d   : > { %v2242_v50 = vld [vmem:[#allocation2] sm:$0x1f]  ;;  %2417 = vrot.lane.b32.xlu1 %v5103_v42, %s5508_s30  ;;  %s5516_s30 = smov 48  }
0x107e   : > { %2244 = vrot.lane.b32.xlu0 %v2242_v50, %s5509_s4  ;;  %v5108_v43 = vld [vmem:[#allocation2] sm:$0x1f]  ;;  %s5517_s4 = smov 40  }
0x107f   : > { %v5114_v44 = vld [vmem:[#allocation2] sm:$0x1f] }
0x1081   : > { %2415 = vrot.lane.b32.xlu1 %v5103_v42, %s5510_s27  ;;  %s5518_s27 = smov 56  }
0x1082   : > { %2594 = vrot.lane.b32.xlu0 %v5108_v43, %s5511_s1  ;;  %s5519_s1 = smov 8  }
0x1085   : > { %2592 = vrot.lane.b32.xlu1 %v5108_v43, %s5512_s19  ;;  %s5520_s19 = smov 16  }
0x1086   : > { %2771 = vrot.lane.b32.xlu0 %v5114_v44, %s5513_s18  ;;  %s5521_s18 = smov 24  }
0x1089   : > { %2769 = vrot.lane.b32.xlu1 %v5114_v44, %s5514_s22  ;;  %s3615_s22 = sshll.u32 %s4894_s29, 3 }
0x10ef   : > { %v2418_v45 = vpop.permute.xlu1 %2417 }
0x10f0   : > { %v2245_v46 = vpop.permute.xlu0 %2244  ;;  %4029 = vmatpush3.xpose.msk.msra.mxu0 %vm1114_vm4, %v2418_v45 }
0x10f1   : > { %4019 = vmatpush3.xpose.msk.msra.mxu1 %vm1114_vm4, %v2245_v46  ;;  %4038 = vmatprep.subr.mxu0 %v4350_v57 }
0x10f2   : > { %4023 = vmatprep.subr.mxu1 %v4350_v57 }
0x10f3   : > { %v2416_v47 = vpop.permute.xlu1 %2415 }
0x10f4   : > { %4021 = vmatmul.mubr.msk.f32.vlgmr.msra.gmra.mxu1 %vm1114_vm4, %v2242_v50  ;;  %v2595_v48 = vpop.permute.xlu0 %2594  ;;  %4031 = vmatmul.mubr.msk.f32.vlgmr.msra.gmra.mxu0 %vm1114_vm4, %v2416_v47  ;;  %v3683_v47 = vld [vmem:[%s5504_s7 + $0x38] sm:$0xff] }
0x10f5   : > { %4025 = vmatprep.mubr.msk.f32.mxu1 %vm4351_vm1, %v4350_v57  ;;  %4039 = vmatpush3.xpose.msk.msra.mxu0 %vm1114_vm4, %v2595_v48  ;;  %v3682_v48 = vld [vmem:[%s5504_s7 + $0x30] sm:$0xff] }
0x10f6   : > { %4040 = vmatprep.mubr.msk.f32.mxu0 %vm4351_vm1, %v4350_v57  ;;  %4048 = vmatprep.subr.mxu0 %v4350_v57 }
0x10f7   : > { %v2593_v49 = vpop.permute.xlu1 %2592 }
0x10f8   : > { %v2772_v51 = vpop.permute.xlu0 %2771  ;;  %4041 = vmatmul.mubr.msk.f32.vlgmr.msra.gmra.mxu0 %vm1114_vm4, %v2593_v49 }
0x10f9   : > { %4049 = vmatpush3.xpose.msk.msra.mxu0 %vm1114_vm4, %v2772_v51  ;;  %4050 = vmatprep.mubr.msk.f32.mxu0 %vm4351_vm1, %v4350_v57  ;;  %v3681_v51 = vld [vmem:[%s5504_s7 + $0x28] sm:$0xff] }
0x10fa   : > { %4058 = vmatprep.subr.mxu0 %v4350_v57 }
0x10fb   : > { %v2770_v52 = vpop.permute.xlu1 %2769 }
0x10fc   : > { %4051 = vmatmul.mubr.msk.f32.vlgmr.msra.gmra.mxu0 %vm1114_vm4, %v2770_v52 }
0x10fd   : > { %4066 = vmatprep.mubr.msk.f32.mxu0 %vm4351_vm1, %v4350_v57  ;;  %4059 = vmatpush3.msra.mxu0 %v3683_v47  ;;  %v3696_v47 = vld [vmem:[%s5435_s12 + $0x1] ss:$0 sm:$0xff] }
0x10fe   : > { %4060 = vmatprep.subr.mxu0 %v4350_v57 }
0x10ff   : > { %4061 = vmatpush3.msra.mxu0 %v3682_v48 }
0x1100   : > { %4062 = vmatprep.subr.mxu0 %v4350_v57 }
0x1101   : > { %4063 = vmatpush3.msra.mxu0 %v3681_v51 }
0x1102   : > { %4064 = vmatprep.subr.mxu0 %v4350_v57 }
0x11b4   : > { %v2316_v53 = vpop.f32.mrf.mxu1  ;;  %v2489_v55 = vpop.f32.mrf.mxu0 }
0x11b5   : > { %v2320_v54 = vmul.f32 0.35355338, %v2316_v53  ;;  %v2493_v56 = vmul.f32 0.35355338, %v2489_v55  ;;  %v3680_v53 = vld [vmem:[%s5504_s7 + $0x20] sm:$0xff] }
0x11b6   : > { %v4022_v58 = vpop.f32.mrf.mxu1  ;;  %v4032_v59 = vpop.f32.mrf.mxu0  ;;  %4065 = vmatpush3.msra.mxu0 %v3680_v53 }
0x11b7   : > { %v2321_v60 = vsel %vm1190_vm6, %v2320_v54, -inf  ;;  %v2494_v61 = vsel %vm1190_vm6, %v2493_v56, -inf  ;;  %4080 = vmatprep.subr.mxu0 %v4350_v57 }
0x11b8   : > { %2322 = vmax.xlane.f32.xlu0 %v2321_v60  ;;  %2495 = vmax.xlane.f32.xlu1 %v2494_v61  ;;  %v2666_v62 = vpop.f32.mrf.mxu0 }
0x11b9   : > { %v2670_v63 = vmul.f32 0.35355338, %v2666_v62 }
0x11ba   : > { %v4042_v0 = vpop.f32.mrf.mxu0 }
0x11bb   : > { %v2671_v1 = vsel %vm1190_vm6, %v2670_v63, -inf  ;;  %v985_v0 = vlaneseq }
0x11bc   : > { %v2843_v2 = vpop.f32.mrf.mxu0  ;;  %2672 = vmax.xlane.f32.xlu0 %v2671_v1 }
0x11bd   : > { %v2847_v3 = vmul.f32 0.35355338, %v2843_v2  ;;  %v986_v1 = vshrl.u32 %v985_v0, 7  ;;  %v988_v2 = vand.u32 127, %v985_v0  ;;  %v3707_v0 = vld [vmem:[%s5437_s14 + $0x1] ss:$0 sm:$0xff] }
0x11be   : > { %v4052_v4 = vpop.f32.mrf.mxu0 }
0x11bf   : > { %v2848_v5 = vsel %vm1190_vm6, %v2847_v3, -inf  ;;  %vm989_vm13 = vcmp.eq.s32.totalorder %v986_v1, %v988_v2 }
0x11c0   : > { %2849 = vmax.xlane.f32.xlu0 %v2848_v5 }
0x11c9   : > { %2335 = vrot.lane.b32.xlu1 %v2242_v50, %s5515_s26  ;;  %s5290_s26 = scalar_lea.vmem [#allocation8], %s3615_s22  ;;  %s3446_s22 = sand.u32 1, %s4501_s3  }
0x11ca   : > { %s5334_s6 = scalar_lea.sflag [#allocation7], %s3446_s22 }
0x1241   : > { %v2323_v6 = vpop.xlane.xlu0 %2322  ;;  %v2496_v8 = vpop.xlane.xlu1 %2495 }
0x1242   : > { %v2324_v7 = vsub.f32 %v2320_v54, %v2323_v6  ;;  %v2497_v9 = vsub.f32 %v2493_v56, %v2496_v8  ;;  %v2117_v6 = vmul.f32 0.25, %v4963_v19  ;;  %v3617_v8 = vsel %vm989_vm13, 1.0, %v4350_v57 }
0x1244   : > { %v2325_v10 = vmul.f32 1.442695, %v2324_v7  ;;  %v2498_v11 = vmul.f32 1.442695, %v2497_v9 }
0x1245   : > { %v2336_v12 = vpop.permute.xlu1 %2335  ;;  %v2673_v13 = vpop.xlane.xlu0 %2672 }
0x1246   : > { %4206 = vpow2.f32 %v2325_v10  ;;  %v2674_v14 = vsub.f32 %v2670_v63, %v2673_v13  ;;  %4024 = vmatpush3.msk.msra.mxu1 %vm1210_vm5, %v2336_v12 }
0x1247   : > { %4208 = vpow2.f32 %v2498_v11  ;;  %4033 = vmatprep.subr.mxu1 %v4350_v57  ;;  %v2118_v11 = vadd.f32 %v3617_v8, %v2117_v6 }
0x1248   : > { %v2675_v15 = vmul.f32 1.442695, %v2674_v14 }
0x1249   : > { %v2850_v16 = vpop.xlane.xlu0 %2849  ;;  %v2119_v13 = vsel %vm1190_vm6, %v2118_v11, 0.0 }
0x124a   : > { %4210 = vpow2.f32 %v2675_v15  ;;  %v2851_v18 = vsub.f32 %v2847_v3, %v2850_v16  ;;  %v3685_v3 = vld [vmem:[%s5505_s8 + $0x1] ss:$0 sm:$0xff] }
0x124c   : > { %v2852_v20 = vmul.f32 1.442695, %v2851_v18 }
0x124e   : > { %4212 = vpow2.f32 %v2852_v20 }
0x1253   : > { %v4207_v21 = vpop.eup %4206 }
0x1254   : > { %v4209_v22 = vpop.eup %4208  ;;  %v2327_v23 = vsel %vm1190_vm6, %v4207_v21, 0.0 }
0x1255   : > { %2328 = vadd.xlane.f32.xlu1 %v2327_v23  ;;  %v2500_v24 = vsel %vm1190_vm6, %v4209_v22, 0.0  ;;  %v3692_v23 = vld [vmem:[%s5434_s11 + $0x28] sm:$0xff] }
0x1256   : > { %2501 = vadd.xlane.f32.xlu0 %v2500_v24  ;;  %v3691_v24 = vld [vmem:[%s5434_s11 + $0x20] sm:$0xff] }
0x1257   : > { %v4211_v25 = vpop.eup %4210 }
0x1258   : > { %v2677_v26 = vsel %vm1190_vm6, %v4211_v25, 0.0 }
0x1259   : > { %2678 = vadd.xlane.f32.xlu1 %v2677_v26 }
0x125b   : > { %v4213_v27 = vpop.eup %4212 }
0x125c   : > { %v2854_v28 = vsel %vm1190_vm6, %v4213_v27, 0.0 }
0x125d   : > { %2855 = vadd.xlane.f32.xlu0 %v2854_v28 }
0x126a   : > { %2685 = vrot.lane.b32.xlu1 %v5108_v43, %s5516_s30  ;;  %s3722_s30 = sshll.u32 %s4501_s3, 10 }
0x126e   : > { %2862 = vrot.lane.b32.xlu1 %v5114_v44, %s5517_s4 }
0x1273   : > { %2508 = vrot.lane.b32.xlu0 %v5103_v42, %s5518_s27  ;;  %s5331_s27 = scalar_lea.hbm %s5443_s20, %s3722_s30 }
0x12de   : > { %v2329_v29 = vpop.xlane.xlu1 %2328 }
0x12df   : > { %4214 = vrcp.f32 %v2329_v29  ;;  %v2502_v30 = vpop.xlane.xlu0 %2501 }
0x12e0   : > { %4216 = vrcp.f32 %v2502_v30 }
0x12e2   : > { %v2679_v31 = vpop.xlane.xlu1 %2678 }
0x12e3   : > { %4218 = vrcp.f32 %v2679_v31  ;;  %v3689_v31 = vld [vmem:[%s5506_s9 + $0x1] ss:$0 sm:$0xff] }
0x12e6   : > { %v2856_v32 = vpop.xlane.xlu0 %2855  ;;  %v2686_v40 = vpop.permute.xlu1 %2685 }
0x12e7   : > { %4220 = vrcp.f32 %v2856_v32 }
0x12ea   : > { %v2509_v37 = vpop.permute.xlu0 %2508  ;;  %v2863_v44 = vpop.permute.xlu1 %2862 }
0x12ec   : > { %v4215_v33 = vpop.eup %4214 }
0x12ed   : > { %v4217_v34 = vpop.eup %4216  ;;  %v2331_v35 = vmul.f32 %v4215_v33, %v4207_v21  ;;  %v3694_v21 = vld [vmem:[%s5434_s11 + $0x38] sm:$0xff]  ;;  %v3690_v33 = vld [vmem:[%s5507_s10 + $0x1] ss:$0 sm:$0xff] }
0x12ee   : > { %v2504_v36 = vmul.f32 %v4217_v34, %v4209_v22  ;;  %v3693_v22 = vld [vmem:[%s5434_s11 + $0x30] sm:$0xff] }
0x12ef   : > { %4026 = vmatmul.mubr.msk.f32.vlgmr.msra.gmra.mxu1 %vm1206_vm7, %v2331_v35  ;;  %3662 = vst.msk [vmem:[%s4901_s2 + $0x20] sm:$0x1f] %vm1190_vm6, %v2331_v35 }
0x12f0   : > { %4034 = vmatpush3.msk.msra.mxu1 %vm1210_vm5, %v2509_v37  ;;  %4035 = vmatprep.mubr.msk.f32.mxu1 %vm4351_vm1, %v4350_v57  ;;  %v2507_v38 = vadd.f32 %v2504_v36, %v2331_v35  ;;  %3667 = vst.msk [vmem:[%s4901_s2 + $0x28] sm:$0x1f] %vm1190_vm6, %v2504_v36  ;;  %v4219_v39 = vpop.eup %4218 }
0x12f1   : > { %4043 = vmatprep.subr.mxu1 %v4350_v57  ;;  %v2681_v41 = vmul.f32 %v4219_v39, %v4211_v25 }
0x12f3   : > { %4036 = vmatmul.mubr.msk.f32.vlgmr.msra.gmra.mxu1 %vm1206_vm7, %v2504_v36  ;;  %v2684_v42 = vadd.f32 %v2681_v41, %v2507_v38  ;;  %3672 = vst.msk [vmem:[%s4901_s2 + $0x30] sm:$0x1f] %vm1190_vm6, %v2681_v41 }
0x12f4   : > { %4044 = vmatpush3.msk.msra.mxu1 %vm1210_vm5, %v2686_v40  ;;  %4045 = vmatprep.mubr.msk.f32.mxu1 %vm4351_vm1, %v4350_v57  ;;  %v4221_v50 = vpop.eup %4220  ;;  %v3705_v40 = vld [vmem:[%s5436_s13 + $0x78] sm:$0xff] }
0x12f5   : > { %4053 = vmatprep.subr.mxu1 %v4350_v57  ;;  %v2858_v43 = vmul.f32 %v4221_v50, %v4213_v27  ;;  %v3702_v50 = vld [vmem:[%s5436_s13 + $0x60] sm:$0xff] }
0x12f7   : > { %4046 = vmatmul.mubr.msk.f32.vlgmr.msra.gmra.mxu1 %vm1206_vm7, %v2681_v41  ;;  %v2861_v45 = vadd.f32 %v2858_v43, %v2684_v42  ;;  %3677 = vst.msk [vmem:[%s4901_s2 + $0x38] sm:$0x1f] %vm1190_vm6, %v2858_v43  ;;  %v3704_v41 = vld [vmem:[%s5436_s13 + $0x70] sm:$0xff]  ;;  %v3703_v42 = vld [vmem:[%s5436_s13 + $0x68] sm:$0xff] }
0x12f8   : > { %4054 = vmatpush3.msk.msra.mxu1 %vm1210_vm5, %v2863_v44  ;;  %4055 = vmatprep.mubr.msk.f32.mxu1 %vm4351_vm1, %v4350_v57  ;;  %v3700_v44 = vld [vmem:[%s5436_s13 + $0x50] sm:$0xff] }
0x12f9   : > { %4069 = vmatprep.subr.mxu1 %v4350_v57  ;;  %v3249_v12 = vmul.f32 0.25, %v2861_v45  ;;  %v3699_v45 = vld [vmem:[%s5436_s13 + $0x48] sm:$0xff] }
0x12fb   : > { %4056 = vmatmul.mubr.msk.f32.vlgmr.msra.gmra.mxu1 %vm1206_vm7, %v2858_v43  ;;  %v3250_v14 = vadd.f32 %v3617_v8, %v3249_v12  ;;  %v3701_v43 = vld [vmem:[%s5436_s13 + $0x58] sm:$0xff] }
0x12fc   : > { %4077 = vmatprep.mubr.msk.f32.mxu1 %vm4351_vm1, %v4350_v57  ;;  %4070 = vmatpush3.msra.mxu1 %v3694_v21  ;;  %v3364_v12 = vld [vmem:[%s5440_s17 + $0x18] sm:$0xff]  ;;  %v3712_v21 = vld [vmem:[%s5439_s16] ss:$0 sm:$0xff] }
0x12fd   : > { %v3251_v15 = vsel %vm1190_vm6, %v3250_v14, 0.0  ;;  %4071 = vmatprep.subr.mxu1 %v4350_v57 }
0x12fe   : > { %4072 = vmatpush3.msra.mxu1 %v3693_v22 }
0x12ff   : > { %4073 = vmatprep.subr.mxu1 %v4350_v57 }
0x1300   : > { %4074 = vmatpush3.msra.mxu1 %v3692_v23 }
0x1301   : > { %4075 = vmatprep.subr.mxu1 %v4350_v57 }
0x1302   : > { %4076 = vmatpush3.msra.mxu1 %v3691_v24 }
0x1303   : > { %4099 = vmatprep.subr.mxu1 %v4350_v57 }
0x13af   : > { %v2408_v46 = vpop.f32.mrf.mxu1 }
0x13b0   : > { %2412 = vst.msk [vmem:[#allocation3] sm:$0x1f] %vm1283_vm8, %v2408_v46  ;;  %v3698_v46 = vld [vmem:[%s5436_s13 + $0x40] sm:$0xff] }
0x13b1   : > { %v4027_v49 = vpop.f32.mrf.mxu1 }
0x13b3   : > { %v2581_v52 = vpop.f32.mrf.mxu1 }
0x13b4   : > { %2586 = vrot.lane.b32.xlu0 %v2581_v52, %s5519_s1 }
0x13b5   : > { %v4037_v54 = vpop.f32.mrf.mxu1 }
0x13b7   : > { %v2758_v55 = vpop.f32.mrf.mxu1 }
0x13b8   : > { %2763 = vrot.lane.b32.xlu1 %v2758_v55, %s5520_s19 }
0x13b9   : > { %v4047_v56 = vpop.f32.mrf.mxu1 }
0x13bb   : > { %v2935_v58 = vpop.f32.mrf.mxu1 }
0x13bc   : > { %2940 = vrot.lane.b32.xlu0 %v2935_v58, %s5521_s18  ;;  %s3478_s18 = sshll.u32 %s4901_s2, 4  ;;  %s4366_s2 = smov [#allocation6]   ;;  %s5324_s18 = int_to_ptr.vmem [resolvable:$true] %s3478_s18 }
0x13bd   : > { %v4057_v59 = vpop.f32.mrf.mxu1  ;;  %s4232_s19 = scalar_lea.vmem %s5324_s18, 1024  ;;  %s4236_s8 = sshll.u32 %s4366_s2, 4  ;;  %s4237_s8 = int_to_ptr.vmem [resolvable:$false] %s4236_s8 }
0x13be   : > { %p4233_p11 = scmp.ne.s32.totalorder %s5324_s18, %s4232_s19  ;;  %s4238_s9 = scalar_lea.vmem %s4237_s8, 2048 }
0x13bf   : > { %p4239_p0 = scmp.lt.s32.totalorder %s5324_s18, %s4237_s8  ;;  %p4240_p1 = scmp.lt.s32.totalorder %s4238_s9, %s4232_s19 }
0x13c0   : > { %p4234_p12 = pnand %p4233_p11, %p4520_p5 }
0x13c1   : > { %p4241_p2 = por %p4240_p1, %p4239_p0 }
0x13c2   : > { %p4235_p13 = pneg %p4234_p12 }
0x13c4   : > { %p4242_p3 = pnand %p4241_p2, %p4235_p13 }
0x1426   : > { %v2587_v60 = vpop.permute.xlu0 %2586 }
0x1427   : > { %2589 = vst.msk [vmem:[#allocation3] sm:$0x1f] %vm1461_vm9, %v2587_v60 }
0x142a   : > { %v2764_v61 = vpop.permute.xlu1 %2763 }
0x142b   : > { %2766 = vst.msk [vmem:[#allocation3] sm:$0x1f] %vm1639_vm10, %v2764_v61 }
0x142e   : > { %v2941_v62 = vpop.permute.xlu0 %2940 }
0x142f   : > { %2943 = vst.msk [vmem:[#allocation3] sm:$0x1f] %vm1817_vm11, %v2941_v62 }
0x1436   : > { %v2944_v63 = vld [vmem:[#allocation3] sm:$0x1f] }
0x1437   : > { %4067 = vmatmul.mubr.msk.f32.vlgmr.msra.gmra.mxu0 %vm1034_vm2, %v2944_v63 }
0x1438   : > { %4096 = vmatprep.mubr.msk.f32.mxu0 %vm4351_vm1, %v4350_v57  ;;  %4081 = vmatpush3.msra.mxu0 %v3705_v40 }
0x1439   : > { %4082 = vmatprep.subr.mxu0 %v4350_v57 }
0x143a   : > { %4083 = vmatpush3.msra.mxu0 %v3704_v41 }
0x143b   : > { %4084 = vmatprep.subr.mxu0 %v4350_v57 }
0x143c   : > { %4085 = vmatpush3.msra.mxu0 %v3703_v42 }
0x143d   : > { %4086 = vmatprep.subr.mxu0 %v4350_v57 }
0x143e   : > { %4087 = vmatpush3.msra.mxu0 %v3702_v50 }
0x143f   : > { %4088 = vmatprep.subr.mxu0 %v4350_v57 }
0x1440   : > { %4089 = vmatpush3.msra.mxu0 %v3701_v43 }
0x1441   : > { %4090 = vmatprep.subr.mxu0 %v4350_v57 }
0x1442   : > { %4091 = vmatpush3.msra.mxu0 %v3700_v44 }
0x1443   : > { %4092 = vmatprep.subr.mxu0 %v4350_v57 }
0x1444   : > { %4093 = vmatpush3.msra.mxu0 %v3699_v45 }
0x1445   : > { %4094 = vmatprep.subr.mxu0 %v4350_v57 }
0x1446   : > { %4095 = vmatpush3.msra.mxu0 %v3698_v46 }
0x14f7   : > { %v3027_v4 = vpop.f32.mrf.mxu0 }
0x14f8   : > { %v3028_v5 = vadd.f32 %v3685_v3, %v3027_v4 }
0x14f9   : > { %v4068_v7 = vpop.f32.mrf.mxu0 }
0x14fa   : > { %v5217_v9 = vadd.f32 %v3028_v5, %v5068_v17 }
0x14fc   : > { %v3036_v10 = vsel %vm994_vm0, %v5217_v9, 0.0 }
0x14fd   : > { %3037 = vadd.xlane.f32.xlu1 %v3036_v10 }
0x1501   : > { %2120 = vadd.xlane.f32.xlu1 %v2119_v13  ;;  %v3363_v13 = vld [vmem:[%s5440_s17 + $0x10] sm:$0xff] }
0x1505   : > { %3252 = vadd.xlane.f32.xlu1 %v3251_v15 }
0x1586   : > { %v3038_v19 = vpop.xlane.xlu1 %3037 }
0x1587   : > { %v3039_v16 = vmul.f32 0.03125, %v3038_v19 }
0x1589   : > { %v3040_v18 = vsub.f32 %v5217_v9, %v3039_v16 }
0x158a   : > { %v2121_v27 = vpop.xlane.xlu1 %2120 }
0x158b   : > { %v3041_v20 = vmul.f32 %v3040_v18, %v3040_v18 }
0x158d   : > { %v3042_v17 = vsel %vm994_vm0, %v3041_v20, 0.0  ;;  %v3711_v20 = vld [vmem:[%s5438_s15] ss:$0 sm:$0xff] }
0x158e   : > { %3043 = vadd.xlane.f32.xlu0 %v3042_v17  ;;  %v3253_v29 = vpop.xlane.xlu1 %3252 }
0x1617   : > { %v3044_v25 = vpop.xlane.xlu0 %3043 }
0x1618   : > { %v3045_v26 = vmul.f32 0.03125, %v3044_v25 }
0x161a   : > { %v3046_v28 = vadd.f32 1e-06, %v3045_v26 }
0x161c   : > { %4222 = vrsqrt.f32 %v3046_v28 }
0x161d   : > { %4224 = vrcp.f32 %v2121_v27 }
0x161e   : > { %4226 = vrcp.f32 %v3253_v29 }
0x1629   : > { %v4223_v30 = vpop.eup %4222 }
0x162a   : > { %v3048_v32 = vmul.f32 %v4223_v30, %v3040_v18  ;;  %v4225_v34 = vpop.eup %4224 }
0x162b   : > { %v4227_v37 = vpop.eup %4226  ;;  %v2123_v38 = vmul.f32 %v4225_v34, %v2118_v11 }
0x162c   : > { %v3055_v35 = vmul.f32 %v3689_v31, %v3048_v32  ;;  %v3255_v39 = vmul.f32 %v4227_v37, %v3250_v14  ;;  %v3361_v14 = vld [vmem:[%s5440_s17] sm:$0xff] }
0x162e   : > { %v3062_v36 = vadd.f32 %v3690_v33, %v3055_v35 }
0x1630   : > { %4078 = vmatmul.mubr.msk.f32.vlgmr.msra.gmra.mxu1 %vm1034_vm2, %v3062_v36 }
0x1631   : > { %4100 = vmatpush3.msk.msra.mxu1 %vm1210_vm5, %v2123_v38  ;;  %4101 = vmatprep.mubr.msk.f32.mxu1 %vm4351_vm1, %v4350_v57 }
0x1632   : > { %4104 = vmatprep.subr.mxu1 %v4350_v57 }
0x1634   : > { %4102 = vmatmul.mubr.msk.f32.vlgmr.msra.gmra.mxu1 %vm1206_vm7, %v3255_v39 }
0x1635   : > { %4112 = vmatprep.mubr.msk.f32.mxu1 %vm4351_vm1, %v4350_v57  ;;  %4105 = vmatpush3.msra.mxu1 %v3364_v12 }
0x1636   : > { %4106 = vmatprep.subr.mxu1 %v4350_v57 }
0x1637   : > { %4107 = vmatpush3.msra.mxu1 %v3363_v13 }
0x1638   : > { %4108 = vmatprep.subr.mxu1 %v4350_v57 }
0x16f0   : > { %v3145_v48 = vpop.f32.mrf.mxu1 }
0x16f1   : > { %v3146_v49 = vadd.f32 %v3696_v47, %v3145_v48 }
0x16f2   : > { %v4079_v51 = vpop.f32.mrf.mxu1 }
0x16f3   : > { %v3149_v52 = vmul.f32 %v3146_v49, %v3146_v49 }
0x16f4   : > { %v3328_v53 = vpop.f32.mrf.mxu1 }
0x16f5   : > { %v3150_v54 = vmul.f32 %v3149_v52, %v3146_v49  ;;  %3441 = vst.msk [vmem:[%s5290_s26] sm:$0x1f] %vm1190_vm6, %v3328_v53 }
0x16f6   : > { %v4103_v55 = vpop.f32.mrf.mxu1 }
0x16f7   : > { %v3151_v56 = vmul.f32 0.044715, %v3150_v54 }
0x16f9   : > { %v3152_v58 = vadd.f32 %v3151_v56, %v3146_v49 }
0x16fb   : > { %v3153_v59 = vmul.f32 0.7978846, %v3152_v58 }
0x16fd   : > { %4228 = vtanh.f32 %v3153_v59 }
0x170a   : > { %v4229_v60 = vpop.eup %4228 }
0x170b   : > { %v3155_v61 = vadd.f32 1.0, %v4229_v60 }
0x170d   : > { %v3156_v62 = vmul.f32 0.5, %v3155_v61 }
0x170f   : > { %v3157_v63 = vmul.f32 %v3156_v62, %v3146_v49 }
0x1711   : > { %4097 = vmatmul.mubr.msk.f32.vlgmr.msra.gmra.mxu0 %vm2042_vm12, %v3157_v63 }
0x17d1   : > { %v3244_v1 = vpop.f32.mrf.mxu0 }
0x17d2   : > { %v3245_v2 = vadd.f32 %v3707_v0, %v3244_v1 }
0x17d3   : > { %v4098_v3 = vpop.f32.mrf.mxu0 }
0x17d4   : > { %v3248_v4 = vadd.f32 %v3245_v2, %v5217_v9  ;;  %v3362_v9 = vld [vmem:[%s5440_s17 + $0x8] sm:$0xff] }
0x17d5   : > { %4109 = vmatpush3.msra.mxu1 %v3362_v9 }
0x17d6   : > { %v3334_v5 = vsel %vm994_vm0, %v3248_v4, 0.0  ;;  %4110 = vmatprep.subr.mxu1 %v4350_v57 }
0x17d7   : > { %3335 = vadd.xlane.f32.xlu0 %v3334_v5  ;;  %4111 = vmatpush3.msra.mxu1 %v3361_v14 }
0x1860   : > { %v3336_v6 = vpop.xlane.xlu0 %3335 }
0x1861   : > { %v3337_v7 = vmul.f32 0.03125, %v3336_v6 }
0x1863   : > { %v3338_v8 = vsub.f32 %v3248_v4, %v3337_v7 }
0x1865   : > { %v3339_v10 = vmul.f32 %v3338_v8, %v3338_v8 }
0x1867   : > { %v3340_v11 = vsel %vm994_vm0, %v3339_v10, 0.0 }
0x1868   : > { %3341 = vadd.xlane.f32.xlu0 %v3340_v11 }
0x18f1   : > { %v3342_v15 = vpop.xlane.xlu0 %3341 }
0x18f2   : > { %v3343_v19 = vmul.f32 0.03125, %v3342_v15 }
0x18f4   : > { %v3344_v16 = vadd.f32 1e-06, %v3343_v19 }
0x18f6   : > { %4230 = vrsqrt.f32 %v3344_v16 }
0x1903   : > { %v4231_v18 = vpop.eup %4230 }
0x1904   : > { %v3346_v17 = vmul.f32 %v4231_v18, %v3338_v8 }
0x1906   : > { %v3353_v22 = vmul.f32 %v3711_v20, %v3346_v17 }
0x1908   : > { %v3360_v57 = vadd.f32 %v3712_v21, %v3353_v22 }
0x190a   : > { %4113 = vmatmul.mubr.msk.f32.vlgmr.msra.gmra.mxu1 %vm1034_vm2, %v3360_v57 }
0x190b   : > { %4245 = shalt.err (!%p4242_p3)
}
0x190c   : > { %s4246_s22 = scalar_lea.hbm %s5331_s27, 1024  ;;  %s4250_s0 = scalar_lea.hbm %s5443_s20, 2048 }
0x190d   : > { %p4247_p4 = scmp.ne.s32.totalorder %s5331_s27, %s4246_s22  ;;  %p4251_p9 = scmp.lt.s32.totalorder %s5331_s27, %s5443_s20 }
0x190e   : > { %p4252_p10 = scmp.lt.s32.totalorder %s4250_s0, %s4246_s22 }
0x190f   : > { %p4248_p7 = pnand %p4247_p4, %p4520_p5 }
0x1910   : > { %p4253_p11 = por %p4252_p10, %p4251_p9 }
0x1911   : > { %p4249_p8 = pneg %p4248_p7 }
0x1913   : > { %p4254_p12 = pnand %p4253_p11, %p4249_p8 }
0x1915   : > { %4257 = shalt.err (!%p4254_p12)
}
0x1916   : > { %s4367_s8 = smov 128   ;;  %s5522_s9 = sshll.u32 %s5290_s26, 4  ;;  %s3495_s9 = int_to_ptr.vmem [resolvable:$true] %s5522_s9 }
0x1917   : > { %4117 = dma.vmem_to_hbm [thread:$0]  (%p4520_p5), %s5324_s18, 1024, %s5331_s27, %s5334_s6, %s4367_s8, %s4367_s8, %s5519_s1  }
0x1918   : > { %s3719_s19 = sshll.u32 %s4501_s3, 7  ;;  %s4258_s4 = scalar_lea.vmem %s3495_s9, 128 }
0x1919   : > { %s3492_s22 = scalar_lea.hbm %s5444_s21, %s3719_s19  ;;  %p4259_p13 = scmp.ne.s32.totalorder %s3495_s9, %s4258_s4 }
0x191a   : > { %s4368_s0 = smov [#allocation8]  }
0x191b   : > { %p4260_p0 = pnand %p4259_p13, %p4520_p5  ;;  %s4262_s2 = sshll.u32 %s4368_s0, 4  ;;  %s4263_s2 = int_to_ptr.vmem [resolvable:$false] %s4262_s2 }
0x191c   : > { %s4264_s10 = scalar_lea.vmem %s4263_s2, 256  ;;  %p4265_p2 = scmp.lt.s32.totalorder %s3495_s9, %s4263_s2 }
0x191d   : > { %p4261_p1 = pneg %p4260_p0  ;;  %p4266_p3 = scmp.lt.s32.totalorder %s4264_s10, %s4258_s4 }
0x191f   : > { %p4267_p4 = por %p4266_p3, %p4265_p2 }
0x1921   : > { %p4268_p7 = pnand %p4267_p4, %p4261_p1 }
0x1923   : > { %4271 = shalt.err (!%p4268_p7)
}
0x1924   : > { %s4272_s1 = scalar_lea.hbm %s3492_s22, 128  ;;  %s4276_s27 = scalar_lea.hbm %s5444_s21, 256 }
0x1925   : > { %p4273_p8 = scmp.ne.s32.totalorder %s3492_s22, %s4272_s1  ;;  %p4277_p11 = scmp.lt.s32.totalorder %s3492_s22, %s5444_s21 }
0x1926   : > { %p4278_p12 = scmp.lt.s32.totalorder %s4276_s27, %s4272_s1 }
0x1927   : > { %p4274_p9 = pnand %p4273_p8, %p4520_p5 }
0x1928   : > { %p4279_p13 = por %p4278_p12, %p4277_p11 }
0x1929   : > { %p4275_p10 = pneg %p4274_p9 }
0x192b   : > { %p4280_p0 = pnand %p4279_p13, %p4275_p10 }
0x192d   : > { %4283 = shalt.err (!%p4280_p0)
}
0x192e   : > { %4118 = dma.vmem_to_hbm [thread:$0]  (%p4520_p5), %s3495_s9, 128, %s3492_s22, %s5334_s6   ;;  %vm3439_vm14 = vcmask 73728  }
0x192f   : > { %s5523_s30 = sld [smem:[#allocation28_spill]]  ;;  %s3716_s4 = sshll.u32 %s4501_s3, 4 }
0x1930   : > { %s652_s0 = scalar_lea.vmem [#allocation4], %s4894_s29  ;;  %s5524_s18 = sld [smem:[#allocation29_spill]] }
0x1931   : > { %s3465_s2 = sshll.u32 %s652_s0, 4  ;;  %s3443_s8 = scalar_lea.sflag [#allocation5], %s4894_s29  ;;  %s3466_s2 = int_to_ptr.vmem [resolvable:$true] %s3465_s2 }
0x1932   : > { %s4284_s6 = scalar_lea.vmem %s3466_s2, 16  ;;  %s4369_s3 = smov [#allocation4]  }
0x1933   : > { %p4285_p1 = scmp.ne.s32.totalorder %s3466_s2, %s4284_s6  ;;  %s4288_s9 = sshll.u32 %s4369_s3, 4  ;;  %s4289_s9 = int_to_ptr.vmem [resolvable:$false] %s4288_s9 }
0x1934   : > { %s4290_s22 = scalar_lea.vmem %s4289_s9, 32  ;;  %p4291_p4 = scmp.lt.s32.totalorder %s3466_s2, %s4289_s9 }
0x1935   : > { %v3365_v23 = vld [vmem:[%s5523_s30] sm:$0x1]  ;;  %p4286_p2 = pnand %p4285_p1, %p4520_p5  ;;  %p4292_p7 = scmp.lt.s32.totalorder %s4290_s22, %s4284_s6 }
0x1936   : > { %s5385_s27 = scalar_lea.hbm %s5524_s18, %s3716_s4 }
0x1937   : > { %p4287_p3 = pneg %p4286_p2  ;;  %p4293_p8 = por %p4292_p7, %p4291_p4 }
0x1939   : > { %p4294_p9 = pnand %p4293_p8, %p4287_p3 }
0x19ca   : > { %v3435_v24 = vpop.f32.mrf.mxu1 }
0x19cb   : > { %v3436_v25 = vadd.f32 %v3435_v24, %v3365_v23 }
0x19cc   : > { %v4114_v26 = vpop.f32.mrf.mxu1 }
0x19cd   : > { %3440 = vst.msk [vmem:[%s652_s0] sm:$0x1] %vm3439_vm14, %v3436_v25 }
0x19ce   : > { %4297 = shalt.err (!%p4294_p9)
}
0x19cf   : > { %s4298_s19 = scalar_lea.hbm %s5385_s27, 16  ;;  %s4302_s7 = scalar_lea.hbm %s5524_s18, 32 }
0x19d0   : > { %p4299_p10 = scmp.ne.s32.totalorder %s5385_s27, %s4298_s19  ;;  %p4303_p13 = scmp.lt.s32.totalorder %s5385_s27, %s5524_s18 }
0x19d1   : > { %p4304_p0 = scmp.lt.s32.totalorder %s4302_s7, %s4298_s19 }
0x19d2   : > { %p4300_p11 = pnand %p4299_p10, %p4520_p5 }
0x19d3   : > { %p4305_p1 = por %p4304_p0, %p4303_p13 }
0x19d4   : > { %p4301_p12 = pneg %p4300_p11 }
0x19d6   : > { %p4306_p2 = pnand %p4305_p1, %p4301_p12 }
0x19d8   : > { %4309 = shalt.err (!%p4306_p2)
}
0x19d9   : > { %4116 = dma.vmem_to_hbm [thread:$0]  (%p4520_p5), %s3466_s2, 16, %s5385_s27, %s3443_s8  }
0x19da PF: > { %s5525_s0 = sld [smem:[#allocation13_spill]] }
0x19db   : > { %s5526_s1 = sld [smem:[#allocation11_spill]] }
0x19e0   : > { %p4132_p3 = scmp.ge.s32.totalorder %s5525_s0, 2 }
0x19e1   : > { %s3506_s6 = sand.u32 1, %s5526_s1  }
0x19e2   : > { %p4123_p4 = pnand %p4132_p3, %p4524_p6  ;;  %s3507_s3 = scalar_lea.sflag [#allocation5], %s3506_s6 }
0x19e4   : > { %p4124_p7 = pneg %p4123_p4 }
0x19e6   : > { %4327 = dma.done.wait (%p4124_p7), %s3507_s3, 16  }
0x19e7   : > { %4329 = vsyncadd (%p4124_p7), %s3507_s3, 4294967280  ;;  %s5528_s9 = sadd.s32 4294967294, %s5525_s0  }
0x19e8   : > { %s3514_s22 = sand.u32 1, %s5528_s9  }
0x19e9   : > { %s3515_s19 = scalar_lea.sflag [#allocation7], %s3514_s22 }
0x19ea   : > { %4331 = dma.done.wait (%p4124_p7), %s3515_s19, 1152  }
0x19eb   : > { %4333 = vsyncadd (%p4124_p7), %s3515_s19, 4294966144  ;;  %s5529_s27 = sld [smem:[#allocation14_spill]]  ;;  %s5532_s2 = smov %s4340_s25 }
0x19ec   : > { %s5530_s5 = sld [smem:[#allocation12_spill]] }
0x19ed   : > { %s5531_s26 = sld [smem:[#allocation15_spill]] }
0x19f1   : > { %p35_p5 = scmp.ge.s32.totalorder %s5529_s27, 4  }
0x19f2   : > { %s5533_s25 = smov %s5530_s5 }
0x19f3   :  { %37 = sbr.rel (!%p35_p5) target bundleno = 19 (0x13), region = 182 }
0x19f8   :  { %3529 = vsyncpa [#allocation5], 1 }
0x19f9   :  { %3531 = vsyncpa [#allocation5 + $0x1], 1 }
0x19fa   :  { %3532 = vsyncpa [#allocation7], 1 }
0x19fb   :  { %3534 = vsyncpa [#allocation7 + $0x1], 1 }

</bundles_post_ra>
